<compile_context>
chip_gen: v7x
topology: tpu7x:2x2x1
jax: 0.10.0
libtpu: 0.0.40
codegen_flags: <defaults>
</compile_context>

<pallas_src>
import functools

import jax
import jax.numpy as jnp
from jax.experimental import pallas as pl
from jax.experimental.pallas import tpu as pltpu

# Activations / weights in bf16 for the MXU (2x throughput, half the HBM/VMEM
# bytes); all matmul accumulation stays in f32 via preferred_element_type.
ACT_DTYPE = jnp.bfloat16


# ----------------------------- tiling helper --------------------------------

def _tile_rows(m, k, n, *, max_rows=256, vmem_budget=4 * 1024 * 1024):
    """Largest power-of-two row tile that divides m, is a multiple of 8 and fits
    a conservative VMEM budget (double-buffered bf16 in/out + f32 accumulator).
    For real image sizes raise max_rows toward 512-2048; halve the budget on
    v7x (64 MiB physical VMEM) versus v5e/v6e (128 MiB)."""
    per_row = 2 * (2 * k) + 2 * (2 * n) + 4 * n
    cap = min(max_rows, max(8, vmem_budget // max(per_row, 1)))
    t = 8
    while t * 2 <= cap and m % (t * 2) == 0:
        t *= 2
    return t if m % t == 0 else m


# ----------------------------- Pallas kernels --------------------------------

def _matmul_kernel(x_ref, w_ref, b_ref, o_ref, *, relu):
    y = jnp.dot(x_ref[...], w_ref[...], preferred_element_type=jnp.float32)
    y = y + b_ref[...]
    if relu:
        y = jnp.maximum(y, 0.0)
    o_ref[...] = y.astype(o_ref.dtype)


def matmul_bias_act(x2d, w, b, *, relu, out_dtype=ACT_DTYPE):
    """(M, K) @ (K, N) + b, optional ReLU. Row-tiled, bf16 MXU, f32 accumulate."""
    m, k = x2d.shape
    n = w.shape[-1]
    tm = _tile_rows(m, k, n)
    return pl.pallas_call(
        functools.partial(_matmul_kernel, relu=relu),
        out_shape=jax.ShapeDtypeStruct((m, n), out_dtype),
        grid=(m // tm,),
        in_specs=[pl.BlockSpec((tm, k), lambda i: (i, 0)),
                  pl.BlockSpec((k, n), lambda i: (0, 0)),
                  pl.BlockSpec((1, n), lambda i: (0, 0))],
        out_specs=pl.BlockSpec((tm, n), lambda i: (i, 0)),
        compiler_params=pltpu.CompilerParams(
            dimension_semantics=("parallel",),
            vmem_limit_bytes=32 * 1024 * 1024),
    )(x2d.astype(ACT_DTYPE), w.astype(ACT_DTYPE),
      b.reshape(1, n).astype(jnp.float32))


def conv1x1(x, w, b, *, relu=False, out_dtype=ACT_DTYPE):
    """1x1 conv as a plain matmul. x: (B,H,W,Cin), w: (Cin,Cout)."""
    B, H, W, Cin = x.shape
    n = w.shape[-1]
    y = matmul_bias_act(x.reshape(B * H * W, Cin), w, b, relu=relu,
                        out_dtype=out_dtype)
    return y.reshape(B, H, W, n)


def conv3x3(x, w, b, *, relu=True):
    """Same-padded 3x3 conv as ONE fused matmul with K = 9*Cin.
    The im2col (9 shifted views concatenated on the lane axis) is built in XLA
    glue so the kernel sees a lane-dense (rows, 9*Cin) operand.
    # TODO(synk): this still replicates the activation 9x in HBM; for large
    # images the halo/tap construction should move in-kernel (overlapping row
    # blocks) to cut conv input HBM traffic ~9x."""
    B, H, W, Cin = x.shape
    Cout = w.shape[-1]
    xp = jnp.pad(x.astype(ACT_DTYPE), ((0, 0), (1, 1), (1, 1), (0, 0)))
    taps = jnp.concatenate(
        [xp[:, dy:dy + H, dx:dx + W, :] for dy in range(3) for dx in range(3)],
        axis=-1)                                            # (B, H, W, 9*Cin)
    y = matmul_bias_act(taps.reshape(B * H * W, 9 * Cin),
                        w.reshape(9 * Cin, Cout), b, relu=relu)
    return y.reshape(B, H, W, Cout)


def _maxpool2_kernel(x_ref, o_ref):
    x = x_ref[0]                              # (Ho, 2, Wo, 2*C)
    m = jnp.maximum(x[:, 0], x[:, 1])         # reduce row pair   -> (Ho, Wo, 2*C)
    c = m.shape[-1] // 2
    o_ref[0] = jnp.maximum(m[:, :, :c], m[:, :, c:])  # width pair -> (Ho, Wo, C)


def maxpool2(x):
    """2x2 / stride-2 max pool. x: (B,H,W,C) -> (B,H//2,W//2,C)."""
    B, H, W, C = x.shape
    assert H % 2 == 0 and W % 2 == 0, "2x2 maxpool requires even spatial dims"
    Ho, Wo = H // 2, W // 2
    # Free reshape: fold the width pair into the lane axis -> one contiguous
    # load per image; the full 2x2 reduction happens on the VPU in-kernel.
    xg = x.reshape(B, Ho, 2, Wo, 2 * C)
    return pl.pallas_call(
        _maxpool2_kernel,
        out_shape=jax.ShapeDtypeStruct((B, Ho, Wo, C), x.dtype),
        grid=(B,),
        in_specs=[pl.BlockSpec((1, Ho, 2, Wo, 2 * C),
                               lambda b: (b, 0, 0, 0, 0))],
        out_specs=pl.BlockSpec((1, Ho, Wo, C), lambda b: (b, 0, 0, 0)),
        compiler_params=pltpu.CompilerParams(dimension_semantics=("parallel",)),
    )(xg)


def _deconv2x2_kernel(x_ref, w_ref, b_ref, o_ref, y_ref, *, H, W, Cout):
    # ONE matmul with all 4 taps packed on the lane axis: (H*W,Cin)@(Cin,4*Cout).
    y_ref[...] = (jnp.dot(x_ref[0], w_ref[...],
                          preferred_element_type=jnp.float32) + b_ref[...])
    # Input row h -> output rows 2h (taps k00|k01) and 2h+1 (taps k10|k11);
    # the kw interleave stays folded in the lane axis and is undone by a FREE
    # contiguous reshape in the wrapper (no HBM transpose).
    for h in range(H):
        rows = y_ref[pl.ds(h * W, W), :]                  # (W, 4*Cout) f32
        o_ref[0, 2 * h] = rows[:, :2 * Cout].astype(o_ref.dtype)
        o_ref[0, 2 * h + 1] = rows[:, 2 * Cout:].astype(o_ref.dtype)


def conv_transpose2x2(x, w, b):
    """ConvTranspose2d(k=2, s=2). x: (B,H,W,Cin), w: (4,Cin,Cout) taps kh*2+kw."""
    B, H, W, Cin = x.shape
    Cout = w.shape[-1]
    w4 = jnp.transpose(w, (1, 0, 2)).reshape(Cin, 4 * Cout)  # [k00|k01|k10|k11]
    b4 = jnp.tile(b, 4)
    out = pl.pallas_call(
        functools.partial(_deconv2x2_kernel, H=H, W=W, Cout=Cout),
        out_shape=jax.ShapeDtypeStruct((B, 2 * H, W, 2 * Cout), ACT_DTYPE),
        grid=(B,),
        in_specs=[pl.BlockSpec((1, H * W, Cin), lambda i: (i, 0, 0)),
                  pl.BlockSpec((Cin, 4 * Cout), lambda i: (0, 0)),
                  pl.BlockSpec((1, 4 * Cout), lambda i: (0, 0))],
        out_specs=pl.BlockSpec((1, 2 * H, W, 2 * Cout), lambda i: (i, 0, 0, 0)),
        scratch_shapes=[pltpu.VMEM((H * W, 4 * Cout), jnp.float32)],
        compiler_params=pltpu.CompilerParams(dimension_semantics=("parallel",)),
    )(x.reshape(B, H * W, Cin).astype(ACT_DTYPE),
      w4.astype(ACT_DTYPE), b4.reshape(1, 4 * Cout).astype(jnp.float32))
    # (B, 2H, W, 2*Cout) -> (B, 2H, 2W, Cout): pure contiguous reshape (free).
    return out.reshape(B, 2 * H, 2 * W, Cout)


def _cam_kernel(x_ref, w1_ref, w2_ref, o_ref, *, inv_hw):
    x = x_ref[0].astype(jnp.float32)                      # (HW, C)
    avg = jnp.sum(x, axis=0, keepdims=True) * inv_hw      # (1, C)
    mx = jnp.max(x, axis=0, keepdims=True)                # (1, C)

    def mlp(v):
        h = jnp.maximum(jnp.dot(v, w1_ref[...],
                                preferred_element_type=jnp.float32), 0.0)
        return jnp.dot(h, w2_ref[...], preferred_element_type=jnp.float32)

    scale = jax.nn.sigmoid(mlp(avg) + mlp(mx))            # (1, C)
    o_ref[0] = (x * scale).astype(o_ref.dtype)


def channel_attention(x, w1, w2):
    """CBAM-style channel attention (bias-free shared MLP). x: (B,H,W,C).
    # TODO(synk): for images that no longer fit a whole-image VMEM block,
    # switch to a two-phase tiled sum/max reduction with @pl.when finalize."""
    B, H, W, C = x.shape
    Cr = w1.shape[-1]
    out = pl.pallas_call(
        functools.partial(_cam_kernel, inv_hw=1.0 / (H * W)),
        out_shape=jax.ShapeDtypeStruct((B, H * W, C), ACT_DTYPE),
        grid=(B,),
        in_specs=[pl.BlockSpec((1, H * W, C), lambda b: (b, 0, 0)),
                  pl.BlockSpec((C, Cr), lambda b: (0, 0)),
                  pl.BlockSpec((Cr, C), lambda b: (0, 0))],
        out_specs=pl.BlockSpec((1, H * W, C), lambda b: (b, 0, 0)),
        compiler_params=pltpu.CompilerParams(dimension_semantics=("parallel",)),
    )(x.reshape(B, H * W, C).astype(ACT_DTYPE),
      w1.astype(jnp.float32), w2.astype(jnp.float32))
    return out.reshape(B, H, W, C)


# ----------------------------- model wrapper ---------------------------------

def basic_conv(x, p):
    # Conv3x3 -> BN -> ReLU -> Conv3x3 -> BN -> ReLU, residual=False.
    # TODO(synk): BatchNorm folded to identity (eval mode, default gamma/beta).
    # TODO(synk): the two convs could be fused into a single pallas_call with a
    # VMEM scratch for the intermediate (needs in-kernel halo handling).
    x = conv3x3(x, p['w1'], p['b1'], relu=True)
    x = conv3x3(x, p['w2'], p['b2'], relu=True)
    return x


def cam_unet_forward(params, x, *, window_size):
    # x: (B, T=window_size, C=input_channels, H, W); target_time=None path.
    B, T, C, H, W = x.shape
    assert T == window_size
    # NCHW(+time) -> NHWC(T,C): one transpose of the raw input, then the shared
    # 1x1 embedding of ALL window slices as a single matmul; the resulting
    # channel order (t, e) matches torch's concatenation over time.
    xt = jnp.transpose(x, (0, 3, 4, 1, 2)).astype(ACT_DTYPE)   # (B,H,W,T,C)
    E = params['emb_w'].shape[-1]
    emb = matmul_bias_act(xt.reshape(B * H * W * T, C),
                          params['emb_w'], params['emb_b'], relu=False)
    out = emb.reshape(B, H, W, T * E)

    cam = params['cam']
    out = channel_attention(out, cam['w1'], cam['w2'])
    # TODO(synk): target_time / ste (LearnablePosition) / use_tte extra channel /
    # LCN2DLayer branches are not exercised (target_time=None, use_tte=False,
    # use_lcn=False) and are therefore not implemented.

    out = basic_conv(out, params['inc'])
    long_residual = [out]
    for p in params['down']:
        out = basic_conv(maxpool2(out), p)
        long_residual.append(out)

    out = basic_conv(out, params['bridge'])

    for i, p in enumerate(params['up']):
        up = conv_transpose2x2(out, p['up_w'], p['up_b'])
        skip = long_residual[-(i + 2)]
        out = basic_conv(jnp.concatenate([skip, up], axis=-1), p['conv'])

    logit = conv1x1(out, params['out_w'], params['out_b'], relu=False,
                    out_dtype=jnp.float32)
    return jnp.transpose(logit, (0, 3, 1, 2))  # NHWC -> NCHW (B, n_classes, H, W)


# ----------------------------- params init -----------------------------------

def init_params(key, *, window_size, input_channels, embedding_dim,
                start_channels, n_blocks, n_classes, cam_reduction=2):
    keys = iter(jax.random.split(key, 128))

    def nrm(shape, scale=0.1):
        return scale * jax.random.normal(next(keys), shape, jnp.float32)

    def basic(cin, cout):
        return dict(w1=nrm((3, 3, cin, cout)), b1=nrm((cout,)),
                    w2=nrm((3, 3, cout, cout)), b2=nrm((cout,)))

    params = {}
    params['emb_w'] = nrm((input_channels, embedding_dim))
    params['emb_b'] = nrm((embedding_dim,))

    c_att = embedding_dim * window_size
    cr = max(1, c_att // cam_reduction)
    params['cam'] = dict(w1=nrm((c_att, cr)), w2=nrm((cr, c_att)))

    params['inc'] = basic(c_att, start_channels)

    params['down'] = []
    for i in range(n_blocks):
        cin = start_channels << i
        params['down'].append(basic(cin, cin * 2))

    bc = start_channels << n_blocks
    params['bridge'] = basic(bc, bc)

    params['up'] = []
    for i in range(n_blocks, 0, -1):
        cin = start_channels << i
        params['up'].append(dict(
            up_w=nrm((4, cin, cin // 2)),      # taps ordered kh*2+kw
            up_b=nrm((cin // 2,)),
            conv=basic(cin, cin // 2),         # concat(skip cin//2, up cin//2)
        ))

    params['out_w'] = nrm((start_channels, n_classes))
    params['out_b'] = nrm((n_classes,))
    return params


# ----------------------------- main -------------------------------------------

if __name__ == "__main__":
    # Small test configuration consistent with the module:
    # window_size=2, n_channels=4 -> input_channels=2, embedding_dim=4,
    # start_channels=8, n_blocks=2, n_classes=2, spatial 16x16, batch 2.
    B, T, Cw, H, W = 2, 2, 2, 16, 16
    embedding_dim = 4
    start_channels = 8
    n_blocks = 2
    n_classes = 2

    key = jax.random.PRNGKey(0)
    kx, kp = jax.random.split(key)
    x = jax.random.normal(kx, (B, T, Cw, H, W), jnp.float32)

    params = init_params(kp, window_size=T, input_channels=Cw,
                         embedding_dim=embedding_dim,
                         start_channels=start_channels,
                         n_blocks=n_blocks, n_classes=n_classes)

    fwd = jax.jit(functools.partial(cam_unet_forward, window_size=T))
    logit = fwd(params, x)
    jax.block_until_ready(logit)
    assert logit.shape == (B, n_classes, H, W), logit.shape
    assert bool(jnp.all(jnp.isfinite(logit)))
    print("KERNEL_OK")
</pallas_src>

<mosaic_0001>
module attributes {stable_mosaic.version = 11 : i64} {
  func.func @_matmul_kernel(%arg0: i32, %arg1: memref<256x2xbf16, #tpu.memory_space<vmem>>, %arg2: memref<2x4xbf16, #tpu.memory_space<vmem>>, %arg3: memref<1x4xf32, #tpu.memory_space<vmem>>, %arg4: memref<256x4xbf16, #tpu.memory_space<vmem>>) attributes {dimension_semantics = [#tpu.dimension_semantics<parallel>], iteration_bounds = array<i64: 4>, scalar_prefetch = 0 : i64, scratch_operands = 0 : i64, tpu.core_type = #tpu.core_type<tc>, window_params = [{transform_indices = @transform_0, window_bounds = array<i64: 256, 2>}, {pipeline_mode = #tpu.pipeline_mode<synchronous>, transform_indices = @transform_1, window_bounds = array<i64: 2, 4>}, {pipeline_mode = #tpu.pipeline_mode<synchronous>, transform_indices = @transform_2, window_bounds = array<i64: 1, 4>}, {transform_indices = @transform_3, window_bounds = array<i64: 256, 4>}]} {
    %c0 = arith.constant 0 : index
    %c0_0 = arith.constant 0 : index
    %0 = vector.load %arg1[%c0, %c0_0] : memref<256x2xbf16, #tpu.memory_space<vmem>>, vector<256x2xbf16>
    %c0_1 = arith.constant 0 : index
    %c0_2 = arith.constant 0 : index
    %1 = vector.load %arg2[%c0_1, %c0_2] : memref<2x4xbf16, #tpu.memory_space<vmem>>, vector<2x4xbf16>
    %cst = arith.constant dense<0.000000e+00> : vector<256x4xf32>
    %2 = tpu.matmul %0, %1, %cst {dimension_numbers = #tpu.dot_dimension_numbers<[1], [0], [0], [1], [0, 0, 1, 1], [], []>} : vector<256x2xbf16>, vector<2x4xbf16>, vector<256x4xf32> -> vector<256x4xf32>
    %c0_3 = arith.constant 0 : index
    %c0_4 = arith.constant 0 : index
    %3 = vector.load %arg3[%c0_3, %c0_4] : memref<1x4xf32, #tpu.memory_space<vmem>>, vector<1x4xf32>
    %4 = vector.broadcast %3 : vector<1x4xf32> to vector<256x4xf32>
    %5 = arith.addf %2, %4 : vector<256x4xf32>
    %6 = arith.truncf %5 : vector<256x4xf32> to vector<256x4xbf16>
    %c0_5 = arith.constant 0 : index
    %c0_6 = arith.constant 0 : index
    %7 = vector.load %arg4[%c0_5, %c0_6] : memref<256x4xbf16, #tpu.memory_space<vmem>>, vector<256x4xbf16>
    tpu.vector_store %arg4[%c0_5, %c0_6], %6 {strides = array<i32>} : memref<256x4xbf16, #tpu.memory_space<vmem>>, vector<256x4xbf16>,
    return
  }
  func.func @transform_0(%arg0: i32) -> (i32, i32) {
    %c0_i32 = arith.constant 0 : i32
    %c0_i32_0 = arith.constant 0 : i32
    return %arg0, %c0_i32 : i32, i32
  }
  func.func @transform_1(%arg0: i32) -> (i32, i32) {
    %c0_i32 = arith.constant 0 : i32
    %c0_i32_0 = arith.constant 0 : i32
    %c0_i32_1 = arith.constant 0 : i32
    return %c0_i32, %c0_i32_0 : i32, i32
  }
  func.func @transform_2(%arg0: i32) -> (i32, i32) {
    %c0_i32 = arith.constant 0 : i32
    %c0_i32_0 = arith.constant 0 : i32
    %c0_i32_1 = arith.constant 0 : i32
    return %c0_i32, %c0_i32_0 : i32, i32
  }
  func.func @transform_3(%arg0: i32) -> (i32, i32) {
    %c0_i32 = arith.constant 0 : i32
    %c0_i32_0 = arith.constant 0 : i32
    return %arg0, %c0_i32 : i32, i32
  }
}

module attributes {stable_mosaic.version = 11 : i64} {
  func.func @_cam_kernel(%arg0: i32, %arg1: memref<1x256x8xbf16, #tpu.memory_space<vmem>>, %arg2: memref<8x4xf32, #tpu.memory_space<vmem>>, %arg3: memref<4x8xf32, #tpu.memory_space<vmem>>, %arg4: memref<1x256x8xbf16, #tpu.memory_space<vmem>>) attributes {dimension_semantics = [#tpu.dimension_semantics<parallel>], iteration_bounds = array<i64: 2>, scalar_prefetch = 0 : i64, scratch_operands = 0 : i64, tpu.core_type = #tpu.core_type<tc>, window_params = [{transform_indices = @transform_0, window_bounds = array<i64: 1, 256, 8>}, {pipeline_mode = #tpu.pipeline_mode<synchronous>, transform_indices = @transform_1, window_bounds = array<i64: 8, 4>}, {pipeline_mode = #tpu.pipeline_mode<synchronous>, transform_indices = @transform_2, window_bounds = array<i64: 4, 8>}, {transform_indices = @transform_3, window_bounds = array<i64: 1, 256, 8>}]} {
    %c0 = arith.constant 0 : index
    %c0_0 = arith.constant 0 : index
    %c0_1 = arith.constant 0 : index
    %0 = vector.load %arg1[%c0, %c0_0, %c0_1] : memref<1x256x8xbf16, #tpu.memory_space<vmem>>, vector<1x256x8xbf16>
    %1 = vector.shape_cast %0 : vector<1x256x8xbf16> to vector<256x8xbf16>
    %2 = arith.extf %1 : vector<256x8xbf16> to vector<256x8xf32>
    %cst = arith.constant dense<0.000000e+00> : vector<8xf32>
    %3 = vector.multi_reduction <add>, %2, %cst [0] : vector<256x8xf32> to vector<8xf32>
    %4 = vector.shape_cast %3 : vector<8xf32> to vector<1x8xf32>
    %cst_2 = arith.constant 3.906250e-03 : f32
    %5 = vector.broadcast %cst_2 : f32 to vector<1x8xf32>
    %6 = arith.mulf %4, %5 : vector<1x8xf32>
    %cst_3 = arith.constant dense<0xFF800000> : vector<8xf32>
    %7 = vector.multi_reduction <maximumf>, %2, %cst_3 [0] : vector<256x8xf32> to vector<8xf32>
    %8 = vector.shape_cast %7 : vector<8xf32> to vector<1x8xf32>
    %c0_4 = arith.constant 0 : index
    %c0_5 = arith.constant 0 : index
    %9 = vector.load %arg2[%c0_4, %c0_5] : memref<8x4xf32, #tpu.memory_space<vmem>>, vector<8x4xf32>
    %cst_6 = arith.constant dense<0.000000e+00> : vector<1x4xf32>
    %10 = tpu.matmul %6, %9, %cst_6 {dimension_numbers = #tpu.dot_dimension_numbers<[1], [0], [0], [1], [0, 0, 1, 1], [], []>} : vector<1x8xf32>, vector<8x4xf32>, vector<1x4xf32> -> vector<1x4xf32>
    %cst_7 = arith.constant 0.000000e+00 : f32
    %11 = vector.broadcast %cst_7 : f32 to vector<1x4xf32>
    %12 = arith.maximumf %10, %11 : vector<1x4xf32>
    %c0_8 = arith.constant 0 : index
    %c0_9 = arith.constant 0 : index
    %13 = vector.load %arg3[%c0_8, %c0_9] : memref<4x8xf32, #tpu.memory_space<vmem>>, vector<4x8xf32>
    %cst_10 = arith.constant dense<0.000000e+00> : vector<1x8xf32>
    %14 = tpu.matmul %12, %13, %cst_10 {dimension_numbers = #tpu.dot_dimension_numbers<[1], [0], [0], [1], [0, 0, 1, 1], [], []>} : vector<1x4xf32>, vector<4x8xf32>, vector<1x8xf32> -> vector<1x8xf32>
    %c0_11 = arith.constant 0 : index
    %c0_12 = arith.constant 0 : index
    %15 = vector.load %arg2[%c0_11, %c0_12] : memref<8x4xf32, #tpu.memory_space<vmem>>, vector<8x4xf32>
    %cst_13 = arith.constant dense<0.000000e+00> : vector<1x4xf32>
    %16 = tpu.matmul %8, %15, %cst_13 {dimension_numbers = #tpu.dot_dimension_numbers<[1], [0], [0], [1], [0, 0, 1, 1], [], []>} : vector<1x8xf32>, vector<8x4xf32>, vector<1x4xf32> -> vector<1x4xf32>
    %cst_14 = arith.constant 0.000000e+00 : f32
    %17 = vector.broadcast %cst_14 : f32 to vector<1x4xf32>
    %18 = arith.maximumf %16, %17 : vector<1x4xf32>
    %c0_15 = arith.constant 0 : index
    %c0_16 = arith.constant 0 : index
    %19 = vector.load %arg3[%c0_15, %c0_16] : memref<4x8xf32, #tpu.memory_space<vmem>>, vector<4x8xf32>
    %cst_17 = arith.constant dense<0.000000e+00> : vector<1x8xf32>
    %20 = tpu.matmul %18, %19, %cst_17 {dimension_numbers = #tpu.dot_dimension_numbers<[1], [0], [0], [1], [0, 0, 1, 1], [], []>} : vector<1x4xf32>, vector<4x8xf32>, vector<1x8xf32> -> vector<1x8xf32>
    %21 = arith.addf %14, %20 : vector<1x8xf32>
    %22 = arith.negf %21 : vector<1x8xf32>
    %23 = math.exp %22 : vector<1x8xf32>
    %cst_18 = arith.constant 1.000000e+00 : f32
    %24 = vector.broadcast %cst_18 : f32 to vector<1x8xf32>
    %25 = arith.addf %24, %23 : vector<1x8xf32>
    %26 = arith.divf %24, %25 : vector<1x8xf32>
    %27 = vector.broadcast %26 : vector<1x8xf32> to vector<256x8xf32>
    %28 = arith.mulf %2, %27 : vector<256x8xf32>
    %29 = arith.truncf %28 : vector<256x8xf32> to vector<256x8xbf16>
    %c0_19 = arith.constant 0 : index
    %c0_20 = arith.constant 0 : index
    %c0_21 = arith.constant 0 : index
    %30 = vector.load %arg4[%c0_19, %c0_20, %c0_21] : memref<1x256x8xbf16, #tpu.memory_space<vmem>>, vector<1x256x8xbf16>
    %31 = vector.shape_cast %30 : vector<1x256x8xbf16> to vector<256x8xbf16>
    %32 = vector.shape_cast %29 : vector<256x8xbf16> to vector<1x256x8xbf16>
    tpu.vector_store %arg4[%c0_19, %c0_20, %c0_21], %32 {strides = array<i32>} : memref<1x256x8xbf16, #tpu.memory_space<vmem>>, vector<1x256x8xbf16>,
    return
  }
  func.func @transform_0(%arg0: i32) -> (i32, i32, i32) {
    %c0_i32 = arith.constant 0 : i32
    %c0_i32_0 = arith.constant 0 : i32
    %c0_i32_1 = arith.constant 0 : i32
    return %arg0, %c0_i32, %c0_i32_0 : i32, i32, i32
  }
  func.func @transform_1(%arg0: i32) -> (i32, i32) {
    %c0_i32 = arith.constant 0 : i32
    %c0_i32_0 = arith.constant 0 : i32
    %c0_i32_1 = arith.constant 0 : i32
    return %c0_i32, %c0_i32_0 : i32, i32
  }
  func.func @transform_2(%arg0: i32) -> (i32, i32) {
    %c0_i32 = arith.constant 0 : i32
    %c0_i32_0 = arith.constant 0 : i32
    %c0_i32_1 = arith.constant 0 : i32
    return %c0_i32, %c0_i32_0 : i32, i32
  }
  func.func @transform_3(%arg0: i32) -> (i32, i32, i32) {
    %c0_i32 = arith.constant 0 : i32
    %c0_i32_0 = arith.constant 0 : i32
    %c0_i32_1 = arith.constant 0 : i32
    return %arg0, %c0_i32, %c0_i32_0 : i32, i32, i32
  }
}

module attributes {stable_mosaic.version = 11 : i64} {
  func.func @_matmul_kernel(%arg0: i32, %arg1: memref<256x72xbf16, #tpu.memory_space<vmem>>, %arg2: memref<72x8xbf16, #tpu.memory_space<vmem>>, %arg3: memref<1x8xf32, #tpu.memory_space<vmem>>, %arg4: memref<256x8xbf16, #tpu.memory_space<vmem>>) attributes {dimension_semantics = [#tpu.dimension_semantics<parallel>], iteration_bounds = array<i64: 2>, scalar_prefetch = 0 : i64, scratch_operands = 0 : i64, tpu.core_type = #tpu.core_type<tc>, window_params = [{transform_indices = @transform_0, window_bounds = array<i64: 256, 72>}, {pipeline_mode = #tpu.pipeline_mode<synchronous>, transform_indices = @transform_1, window_bounds = array<i64: 72, 8>}, {pipeline_mode = #tpu.pipeline_mode<synchronous>, transform_indices = @transform_2, window_bounds = array<i64: 1, 8>}, {transform_indices = @transform_3, window_bounds = array<i64: 256, 8>}]} {
    %c0 = arith.constant 0 : index
    %c0_0 = arith.constant 0 : index
    %0 = vector.load %arg1[%c0, %c0_0] : memref<256x72xbf16, #tpu.memory_space<vmem>>, vector<256x72xbf16>
    %c0_1 = arith.constant 0 : index
    %c0_2 = arith.constant 0 : index
    %1 = vector.load %arg2[%c0_1, %c0_2] : memref<72x8xbf16, #tpu.memory_space<vmem>>, vector<72x8xbf16>
    %cst = arith.constant dense<0.000000e+00> : vector<256x8xf32>
    %2 = tpu.matmul %0, %1, %cst {dimension_numbers = #tpu.dot_dimension_numbers<[1], [0], [0], [1], [0, 0, 1, 1], [], []>} : vector<256x72xbf16>, vector<72x8xbf16>, vector<256x8xf32> -> vector<256x8xf32>
    %c0_3 = arith.constant 0 : index
    %c0_4 = arith.constant 0 : index
    %3 = vector.load %arg3[%c0_3, %c0_4] : memref<1x8xf32, #tpu.memory_space<vmem>>, vector<1x8xf32>
    %4 = vector.broadcast %3 : vector<1x8xf32> to vector<256x8xf32>
    %5 = arith.addf %2, %4 : vector<256x8xf32>
    %cst_5 = arith.constant 0.000000e+00 : f32
    %6 = vector.broadcast %cst_5 : f32 to vector<256x8xf32>
    %7 = arith.maximumf %5, %6 : vector<256x8xf32>
    %8 = arith.truncf %7 : vector<256x8xf32> to vector<256x8xbf16>
    %c0_6 = arith.constant 0 : index
    %c0_7 = arith.constant 0 : index
    %9 = vector.load %arg4[%c0_6, %c0_7] : memref<256x8xbf16, #tpu.memory_space<vmem>>, vector<256x8xbf16>
    tpu.vector_store %arg4[%c0_6, %c0_7], %8 {strides = array<i32>} : memref<256x8xbf16, #tpu.memory_space<vmem>>, vector<256x8xbf16>,
    return
  }
  func.func @transform_0(%arg0: i32) -> (i32, i32) {
    %c0_i32 = arith.constant 0 : i32
    %c0_i32_0 = arith.constant 0 : i32
    return %arg0, %c0_i32 : i32, i32
  }
  func.func @transform_1(%arg0: i32) -> (i32, i32) {
    %c0_i32 = arith.constant 0 : i32
    %c0_i32_0 = arith.constant 0 : i32
    %c0_i32_1 = arith.constant 0 : i32
    return %c0_i32, %c0_i32_0 : i32, i32
  }
  func.func @transform_2(%arg0: i32) -> (i32, i32) {
    %c0_i32 = arith.constant 0 : i32
    %c0_i32_0 = arith.constant 0 : i32
    %c0_i32_1 = arith.constant 0 : i32
    return %c0_i32, %c0_i32_0 : i32, i32
  }
  func.func @transform_3(%arg0: i32) -> (i32, i32) {
    %c0_i32 = arith.constant 0 : i32
    %c0_i32_0 = arith.constant 0 : i32
    return %arg0, %c0_i32 : i32, i32
  }
}

module attributes {stable_mosaic.version = 11 : i64} {
  func.func @_maxpool2_kernel(%arg0: i32, %arg1: memref<1x8x2x8x16xbf16, #tpu.memory_space<vmem>>, %arg2: memref<1x8x8x8xbf16, #tpu.memory_space<vmem>>) attributes {dimension_semantics = [#tpu.dimension_semantics<parallel>], iteration_bounds = array<i64: 2>, scalar_prefetch = 0 : i64, scratch_operands = 0 : i64, tpu.core_type = #tpu.core_type<tc>, window_params = [{transform_indices = @transform_0, window_bounds = array<i64: 1, 8, 2, 8, 16>}, {transform_indices = @transform_1, window_bounds = array<i64: 1, 8, 8, 8>}]} {
    %c0 = arith.constant 0 : index
    %c0_0 = arith.constant 0 : index
    %c0_1 = arith.constant 0 : index
    %c0_2 = arith.constant 0 : index
    %c0_3 = arith.constant 0 : index
    %0 = vector.load %arg1[%c0, %c0_0, %c0_1, %c0_2, %c0_3] : memref<1x8x2x8x16xbf16, #tpu.memory_space<vmem>>, vector<1x8x2x8x16xbf16>
    %1 = vector.shape_cast %0 : vector<1x8x2x8x16xbf16> to vector<8x2x8x16xbf16>
    %2 = vector.extract_strided_slice %1 {offsets = [0, 0, 0, 0], sizes = [8, 1, 8, 16], strides = [1, 1, 1, 1]} : vector<8x2x8x16xbf16> to vector<8x1x8x16xbf16>
    %3 = vector.shape_cast %2 : vector<8x1x8x16xbf16> to vector<8x8x16xbf16>
    %4 = vector.extract_strided_slice %1 {offsets = [0, 1, 0, 0], sizes = [8, 1, 8, 16], strides = [1, 1, 1, 1]} : vector<8x2x8x16xbf16> to vector<8x1x8x16xbf16>
    %5 = vector.shape_cast %4 : vector<8x1x8x16xbf16> to vector<8x8x16xbf16>
    %6 = arith.maximumf %3, %5 : vector<8x8x16xbf16>
    %7 = vector.extract_strided_slice %6 {offsets = [0, 0, 0], sizes = [8, 8, 8], strides = [1, 1, 1]} : vector<8x8x16xbf16> to vector<8x8x8xbf16>
    %8 = vector.extract_strided_slice %6 {offsets = [0, 0, 8], sizes = [8, 8, 8], strides = [1, 1, 1]} : vector<8x8x16xbf16> to vector<8x8x8xbf16>
    %9 = arith.maximumf %7, %8 : vector<8x8x8xbf16>
    %c0_4 = arith.constant 0 : index
    %c0_5 = arith.constant 0 : index
    %c0_6 = arith.constant 0 : index
    %c0_7 = arith.constant 0 : index
    %10 = vector.load %arg2[%c0_4, %c0_5, %c0_6, %c0_7] : memref<1x8x8x8xbf16, #tpu.memory_space<vmem>>, vector<1x8x8x8xbf16>
    %11 = vector.shape_cast %10 : vector<1x8x8x8xbf16> to vector<8x8x8xbf16>
    %12 = vector.shape_cast %9 : vector<8x8x8xbf16> to vector<1x8x8x8xbf16>
    tpu.vector_store %arg2[%c0_4, %c0_5, %c0_6, %c0_7], %12 {strides = array<i32>} : memref<1x8x8x8xbf16, #tpu.memory_space<vmem>>, vector<1x8x8x8xbf16>,
    return
  }
  func.func @transform_0(%arg0: i32) -> (i32, i32, i32, i32, i32) {
    %c0_i32 = arith.constant 0 : i32
    %c0_i32_0 = arith.constant 0 : i32
    %c0_i32_1 = arith.constant 0 : i32
    %c0_i32_2 = arith.constant 0 : i32
    %c0_i32_3 = arith.constant 0 : i32
    return %arg0, %c0_i32, %c0_i32_0, %c0_i32_1, %c0_i32_2 : i32, i32, i32, i32, i32
  }
  func.func @transform_1(%arg0: i32) -> (i32, i32, i32, i32) {
    %c0_i32 = arith.constant 0 : i32
    %c0_i32_0 = arith.constant 0 : i32
    %c0_i32_1 = arith.constant 0 : i32
    %c0_i32_2 = arith.constant 0 : i32
    return %arg0, %c0_i32, %c0_i32_0, %c0_i32_1 : i32, i32, i32, i32
  }
}

module attributes {stable_mosaic.version = 11 : i64} {
  func.func @_matmul_kernel(%arg0: i32, %arg1: memref<128x72xbf16, #tpu.memory_space<vmem>>, %arg2: memref<72x16xbf16, #tpu.memory_space<vmem>>, %arg3: memref<1x16xf32, #tpu.memory_space<vmem>>, %arg4: memref<128x16xbf16, #tpu.memory_space<vmem>>) attributes {dimension_semantics = [#tpu.dimension_semantics<parallel>], iteration_bounds = array<i64: 1>, scalar_prefetch = 0 : i64, scratch_operands = 0 : i64, tpu.core_type = #tpu.core_type<tc>, window_params = [{transform_indices = @transform_0, window_bounds = array<i64: 128, 72>}, {pipeline_mode = #tpu.pipeline_mode<synchronous>, transform_indices = @transform_1, window_bounds = array<i64: 72, 16>}, {pipeline_mode = #tpu.pipeline_mode<synchronous>, transform_indices = @transform_2, window_bounds = array<i64: 1, 16>}, {transform_indices = @transform_3, window_bounds = array<i64: 128, 16>}]} {
    %c0 = arith.constant 0 : index
    %c0_0 = arith.constant 0 : index
    %0 = vector.load %arg1[%c0, %c0_0] : memref<128x72xbf16, #tpu.memory_space<vmem>>, vector<128x72xbf16>
    %c0_1 = arith.constant 0 : index
    %c0_2 = arith.constant 0 : index
    %1 = vector.load %arg2[%c0_1, %c0_2] : memref<72x16xbf16, #tpu.memory_space<vmem>>, vector<72x16xbf16>
    %cst = arith.constant dense<0.000000e+00> : vector<128x16xf32>
    %2 = tpu.matmul %0, %1, %cst {dimension_numbers = #tpu.dot_dimension_numbers<[1], [0], [0], [1], [0, 0, 1, 1], [], []>} : vector<128x72xbf16>, vector<72x16xbf16>, vector<128x16xf32> -> vector<128x16xf32>
    %c0_3 = arith.constant 0 : index
    %c0_4 = arith.constant 0 : index
    %3 = vector.load %arg3[%c0_3, %c0_4] : memref<1x16xf32, #tpu.memory_space<vmem>>, vector<1x16xf32>
    %4 = vector.broadcast %3 : vector<1x16xf32> to vector<128x16xf32>
    %5 = arith.addf %2, %4 : vector<128x16xf32>
    %cst_5 = arith.constant 0.000000e+00 : f32
    %6 = vector.broadcast %cst_5 : f32 to vector<128x16xf32>
    %7 = arith.maximumf %5, %6 : vector<128x16xf32>
    %8 = arith.truncf %7 : vector<128x16xf32> to vector<128x16xbf16>
    %c0_6 = arith.constant 0 : index
    %c0_7 = arith.constant 0 : index
    %9 = vector.load %arg4[%c0_6, %c0_7] : memref<128x16xbf16, #tpu.memory_space<vmem>>, vector<128x16xbf16>
    tpu.vector_store %arg4[%c0_6, %c0_7], %8 {strides = array<i32>} : memref<128x16xbf16, #tpu.memory_space<vmem>>, vector<128x16xbf16>,
    return
  }
  func.func @transform_0(%arg0: i32) -> (i32, i32) {
    %c0_i32 = arith.constant 0 : i32
    %c0_i32_0 = arith.constant 0 : i32
    return %arg0, %c0_i32 : i32, i32
  }
  func.func @transform_1(%arg0: i32) -> (i32, i32) {
    %c0_i32 = arith.constant 0 : i32
    %c0_i32_0 = arith.constant 0 : i32
    %c0_i32_1 = arith.constant 0 : i32
    return %c0_i32, %c0_i32_0 : i32, i32
  }
  func.func @transform_2(%arg0: i32) -> (i32, i32) {
    %c0_i32 = arith.constant 0 : i32
    %c0_i32_0 = arith.constant 0 : i32
    %c0_i32_1 = arith.constant 0 : i32
    return %c0_i32, %c0_i32_0 : i32, i32
  }
  func.func @transform_3(%arg0: i32) -> (i32, i32) {
    %c0_i32 = arith.constant 0 : i32
    %c0_i32_0 = arith.constant 0 : i32
    return %arg0, %c0_i32 : i32, i32
  }
}

module attributes {stable_mosaic.version = 11 : i64} {
  func.func @_matmul_kernel(%arg0: i32, %arg1: memref<128x144xbf16, #tpu.memory_space<vmem>>, %arg2: memref<144x16xbf16, #tpu.memory_space<vmem>>, %arg3: memref<1x16xf32, #tpu.memory_space<vmem>>, %arg4: memref<128x16xbf16, #tpu.memory_space<vmem>>) attributes {dimension_semantics = [#tpu.dimension_semantics<parallel>], iteration_bounds = array<i64: 1>, scalar_prefetch = 0 : i64, scratch_operands = 0 : i64, tpu.core_type = #tpu.core_type<tc>, window_params = [{transform_indices = @transform_0, window_bounds = array<i64: 128, 144>}, {pipeline_mode = #tpu.pipeline_mode<synchronous>, transform_indices = @transform_1, window_bounds = array<i64: 144, 16>}, {pipeline_mode = #tpu.pipeline_mode<synchronous>, transform_indices = @transform_2, window_bounds = array<i64: 1, 16>}, {transform_indices = @transform_3, window_bounds = array<i64: 128, 16>}]} {
    %c0 = arith.constant 0 : index
    %c0_0 = arith.constant 0 : index
    %0 = vector.load %arg1[%c0, %c0_0] : memref<128x144xbf16, #tpu.memory_space<vmem>>, vector<128x144xbf16>
    %c0_1 = arith.constant 0 : index
    %c0_2 = arith.constant 0 : index
    %1 = vector.load %arg2[%c0_1, %c0_2] : memref<144x16xbf16, #tpu.memory_space<vmem>>, vector<144x16xbf16>
    %cst = arith.constant dense<0.000000e+00> : vector<128x16xf32>
    %2 = tpu.matmul %0, %1, %cst {dimension_numbers = #tpu.dot_dimension_numbers<[1], [0], [0], [1], [0, 0, 1, 1], [], []>} : vector<128x144xbf16>, vector<144x16xbf16>, vector<128x16xf32> -> vector<128x16xf32>
    %c0_3 = arith.constant 0 : index
    %c0_4 = arith.constant 0 : index
    %3 = vector.load %arg3[%c0_3, %c0_4] : memref<1x16xf32, #tpu.memory_space<vmem>>, vector<1x16xf32>
    %4 = vector.broadcast %3 : vector<1x16xf32> to vector<128x16xf32>
    %5 = arith.addf %2, %4 : vector<128x16xf32>
    %cst_5 = arith.constant 0.000000e+00 : f32
    %6 = vector.broadcast %cst_5 : f32 to vector<128x16xf32>
    %7 = arith.maximumf %5, %6 : vector<128x16xf32>
    %8 = arith.truncf %7 : vector<128x16xf32> to vector<128x16xbf16>
    %c0_6 = arith.constant 0 : index
    %c0_7 = arith.constant 0 : index
    %9 = vector.load %arg4[%c0_6, %c0_7] : memref<128x16xbf16, #tpu.memory_space<vmem>>, vector<128x16xbf16>
    tpu.vector_store %arg4[%c0_6, %c0_7], %8 {strides = array<i32>} : memref<128x16xbf16, #tpu.memory_space<vmem>>, vector<128x16xbf16>,
    return
  }
  func.func @transform_0(%arg0: i32) -> (i32, i32) {
    %c0_i32 = arith.constant 0 : i32
    %c0_i32_0 = arith.constant 0 : i32
    return %arg0, %c0_i32 : i32, i32
  }
  func.func @transform_1(%arg0: i32) -> (i32, i32) {
    %c0_i32 = arith.constant 0 : i32
    %c0_i32_0 = arith.constant 0 : i32
    %c0_i32_1 = arith.constant 0 : i32
    return %c0_i32, %c0_i32_0 : i32, i32
  }
  func.func @transform_2(%arg0: i32) -> (i32, i32) {
    %c0_i32 = arith.constant 0 : i32
    %c0_i32_0 = arith.constant 0 : i32
    %c0_i32_1 = arith.constant 0 : i32
    return %c0_i32, %c0_i32_0 : i32, i32
  }
  func.func @transform_3(%arg0: i32) -> (i32, i32) {
    %c0_i32 = arith.constant 0 : i32
    %c0_i32_0 = arith.constant 0 : i32
    return %arg0, %c0_i32 : i32, i32
  }
}

module attributes {stable_mosaic.version = 11 : i64} {
  func.func @_maxpool2_kernel(%arg0: i32, %arg1: memref<1x4x2x4x32xbf16, #tpu.memory_space<vmem>>, %arg2: memref<1x4x4x16xbf16, #tpu.memory_space<vmem>>) attributes {dimension_semantics = [#tpu.dimension_semantics<parallel>], iteration_bounds = array<i64: 2>, scalar_prefetch = 0 : i64, scratch_operands = 0 : i64, tpu.core_type = #tpu.core_type<tc>, window_params = [{transform_indices = @transform_0, window_bounds = array<i64: 1, 4, 2, 4, 32>}, {transform_indices = @transform_1, window_bounds = array<i64: 1, 4, 4, 16>}]} {
    %c0 = arith.constant 0 : index
    %c0_0 = arith.constant 0 : index
    %c0_1 = arith.constant 0 : index
    %c0_2 = arith.constant 0 : index
    %c0_3 = arith.constant 0 : index
    %0 = vector.load %arg1[%c0, %c0_0, %c0_1, %c0_2, %c0_3] : memref<1x4x2x4x32xbf16, #tpu.memory_space<vmem>>, vector<1x4x2x4x32xbf16>
    %1 = vector.shape_cast %0 : vector<1x4x2x4x32xbf16> to vector<4x2x4x32xbf16>
    %2 = vector.extract_strided_slice %1 {offsets = [0, 0, 0, 0], sizes = [4, 1, 4, 32], strides = [1, 1, 1, 1]} : vector<4x2x4x32xbf16> to vector<4x1x4x32xbf16>
    %3 = vector.shape_cast %2 : vector<4x1x4x32xbf16> to vector<4x4x32xbf16>
    %4 = vector.extract_strided_slice %1 {offsets = [0, 1, 0, 0], sizes = [4, 1, 4, 32], strides = [1, 1, 1, 1]} : vector<4x2x4x32xbf16> to vector<4x1x4x32xbf16>
    %5 = vector.shape_cast %4 : vector<4x1x4x32xbf16> to vector<4x4x32xbf16>
    %6 = arith.maximumf %3, %5 : vector<4x4x32xbf16>
    %7 = vector.extract_strided_slice %6 {offsets = [0, 0, 0], sizes = [4, 4, 16], strides = [1, 1, 1]} : vector<4x4x32xbf16> to vector<4x4x16xbf16>
    %8 = vector.extract_strided_slice %6 {offsets = [0, 0, 16], sizes = [4, 4, 16], strides = [1, 1, 1]} : vector<4x4x32xbf16> to vector<4x4x16xbf16>
    %9 = arith.maximumf %7, %8 : vector<4x4x16xbf16>
    %c0_4 = arith.constant 0 : index
    %c0_5 = arith.constant 0 : index
    %c0_6 = arith.constant 0 : index
    %c0_7 = arith.constant 0 : index
    %10 = vector.load %arg2[%c0_4, %c0_5, %c0_6, %c0_7] : memref<1x4x4x16xbf16, #tpu.memory_space<vmem>>, vector<1x4x4x16xbf16>
    %11 = vector.shape_cast %10 : vector<1x4x4x16xbf16> to vector<4x4x16xbf16>
    %12 = vector.shape_cast %9 : vector<4x4x16xbf16> to vector<1x4x4x16xbf16>
    tpu.vector_store %arg2[%c0_4, %c0_5, %c0_6, %c0_7], %12 {strides = array<i32>} : memref<1x4x4x16xbf16, #tpu.memory_space<vmem>>, vector<1x4x4x16xbf16>,
    return
  }
  func.func @transform_0(%arg0: i32) -> (i32, i32, i32, i32, i32) {
    %c0_i32 = arith.constant 0 : i32
    %c0_i32_0 = arith.constant 0 : i32
    %c0_i32_1 = arith.constant 0 : i32
    %c0_i32_2 = arith.constant 0 : i32
    %c0_i32_3 = arith.constant 0 : i32
    return %arg0, %c0_i32, %c0_i32_0, %c0_i32_1, %c0_i32_2 : i32, i32, i32, i32, i32
  }
  func.func @transform_1(%arg0: i32) -> (i32, i32, i32, i32) {
    %c0_i32 = arith.constant 0 : i32
    %c0_i32_0 = arith.constant 0 : i32
    %c0_i32_1 = arith.constant 0 : i32
    %c0_i32_2 = arith.constant 0 : i32
    return %arg0, %c0_i32, %c0_i32_0, %c0_i32_1 : i32, i32, i32, i32
  }
}

module attributes {stable_mosaic.version = 11 : i64} {
  func.func @_matmul_kernel(%arg0: i32, %arg1: memref<32x144xbf16, #tpu.memory_space<vmem>>, %arg2: memref<144x32xbf16, #tpu.memory_space<vmem>>, %arg3: memref<1x32xf32, #tpu.memory_space<vmem>>, %arg4: memref<32x32xbf16, #tpu.memory_space<vmem>>) attributes {dimension_semantics = [#tpu.dimension_semantics<parallel>], iteration_bounds = array<i64: 1>, scalar_prefetch = 0 : i64, scratch_operands = 0 : i64, tpu.core_type = #tpu.core_type<tc>, window_params = [{transform_indices = @transform_0, window_bounds = array<i64: 32, 144>}, {pipeline_mode = #tpu.pipeline_mode<synchronous>, transform_indices = @transform_1, window_bounds = array<i64: 144, 32>}, {pipeline_mode = #tpu.pipeline_mode<synchronous>, transform_indices = @transform_2, window_bounds = array<i64: 1, 32>}, {transform_indices = @transform_3, window_bounds = array<i64: 32, 32>}]} {
    %c0 = arith.constant 0 : index
    %c0_0 = arith.constant 0 : index
    %0 = vector.load %arg1[%c0, %c0_0] : memref<32x144xbf16, #tpu.memory_space<vmem>>, vector<32x144xbf16>
    %c0_1 = arith.constant 0 : index
    %c0_2 = arith.constant 0 : index
    %1 = vector.load %arg2[%c0_1, %c0_2] : memref<144x32xbf16, #tpu.memory_space<vmem>>, vector<144x32xbf16>
    %cst = arith.constant dense<0.000000e+00> : vector<32x32xf32>
    %2 = tpu.matmul %0, %1, %cst {dimension_numbers = #tpu.dot_dimension_numbers<[1], [0], [0], [1], [0, 0, 1, 1], [], []>} : vector<32x144xbf16>, vector<144x32xbf16>, vector<32x32xf32> -> vector<32x32xf32>
    %c0_3 = arith.constant 0 : index
    %c0_4 = arith.constant 0 : index
    %3 = vector.load %arg3[%c0_3, %c0_4] : memref<1x32xf32, #tpu.memory_space<vmem>>, vector<1x32xf32>
    %4 = vector.broadcast %3 : vector<1x32xf32> to vector<32x32xf32>
    %5 = arith.addf %2, %4 : vector<32x32xf32>
    %cst_5 = arith.constant 0.000000e+00 : f32
    %6 = vector.broadcast %cst_5 : f32 to vector<32x32xf32>
    %7 = arith.maximumf %5, %6 : vector<32x32xf32>
    %8 = arith.truncf %7 : vector<32x32xf32> to vector<32x32xbf16>
    %c0_6 = arith.constant 0 : index
    %c0_7 = arith.constant 0 : index
    %9 = vector.load %arg4[%c0_6, %c0_7] : memref<32x32xbf16, #tpu.memory_space<vmem>>, vector<32x32xbf16>
    tpu.vector_store %arg4[%c0_6, %c0_7], %8 {strides = array<i32>} : memref<32x32xbf16, #tpu.memory_space<vmem>>, vector<32x32xbf16>,
    return
  }
  func.func @transform_0(%arg0: i32) -> (i32, i32) {
    %c0_i32 = arith.constant 0 : i32
    %c0_i32_0 = arith.constant 0 : i32
    return %arg0, %c0_i32 : i32, i32
  }
  func.func @transform_1(%arg0: i32) -> (i32, i32) {
    %c0_i32 = arith.constant 0 : i32
    %c0_i32_0 = arith.constant 0 : i32
    %c0_i32_1 = arith.constant 0 : i32
    return %c0_i32, %c0_i32_0 : i32, i32
  }
  func.func @transform_2(%arg0: i32) -> (i32, i32) {
    %c0_i32 = arith.constant 0 : i32
    %c0_i32_0 = arith.constant 0 : i32
    %c0_i32_1 = arith.constant 0 : i32
    return %c0_i32, %c0_i32_0 : i32, i32
  }
  func.func @transform_3(%arg0: i32) -> (i32, i32) {
    %c0_i32 = arith.constant 0 : i32
    %c0_i32_0 = arith.constant 0 : i32
    return %arg0, %c0_i32 : i32, i32
  }
}

module attributes {stable_mosaic.version = 11 : i64} {
  func.func @_matmul_kernel(%arg0: i32, %arg1: memref<32x288xbf16, #tpu.memory_space<vmem>>, %arg2: memref<288x32xbf16, #tpu.memory_space<vmem>>, %arg3: memref<1x32xf32, #tpu.memory_space<vmem>>, %arg4: memref<32x32xbf16, #tpu.memory_space<vmem>>) attributes {dimension_semantics = [#tpu.dimension_semantics<parallel>], iteration_bounds = array<i64: 1>, scalar_prefetch = 0 : i64, scratch_operands = 0 : i64, tpu.core_type = #tpu.core_type<tc>, window_params = [{transform_indices = @transform_0, window_bounds = array<i64: 32, 288>}, {pipeline_mode = #tpu.pipeline_mode<synchronous>, transform_indices = @transform_1, window_bounds = array<i64: 288, 32>}, {pipeline_mode = #tpu.pipeline_mode<synchronous>, transform_indices = @transform_2, window_bounds = array<i64: 1, 32>}, {transform_indices = @transform_3, window_bounds = array<i64: 32, 32>}]} {
    %c0 = arith.constant 0 : index
    %c0_0 = arith.constant 0 : index
    %0 = vector.load %arg1[%c0, %c0_0] : memref<32x288xbf16, #tpu.memory_space<vmem>>, vector<32x288xbf16>
    %c0_1 = arith.constant 0 : index
    %c0_2 = arith.constant 0 : index
    %1 = vector.load %arg2[%c0_1, %c0_2] : memref<288x32xbf16, #tpu.memory_space<vmem>>, vector<288x32xbf16>
    %cst = arith.constant dense<0.000000e+00> : vector<32x32xf32>
    %2 = tpu.matmul %0, %1, %cst {dimension_numbers = #tpu.dot_dimension_numbers<[1], [0], [0], [1], [0, 0, 1, 1], [], []>} : vector<32x288xbf16>, vector<288x32xbf16>, vector<32x32xf32> -> vector<32x32xf32>
    %c0_3 = arith.constant 0 : index
    %c0_4 = arith.constant 0 : index
    %3 = vector.load %arg3[%c0_3, %c0_4] : memref<1x32xf32, #tpu.memory_space<vmem>>, vector<1x32xf32>
    %4 = vector.broadcast %3 : vector<1x32xf32> to vector<32x32xf32>
    %5 = arith.addf %2, %4 : vector<32x32xf32>
    %cst_5 = arith.constant 0.000000e+00 : f32
    %6 = vector.broadcast %cst_5 : f32 to vector<32x32xf32>
    %7 = arith.maximumf %5, %6 : vector<32x32xf32>
    %8 = arith.truncf %7 : vector<32x32xf32> to vector<32x32xbf16>
    %c0_6 = arith.constant 0 : index
    %c0_7 = arith.constant 0 : index
    %9 = vector.load %arg4[%c0_6, %c0_7] : memref<32x32xbf16, #tpu.memory_space<vmem>>, vector<32x32xbf16>
    tpu.vector_store %arg4[%c0_6, %c0_7], %8 {strides = array<i32>} : memref<32x32xbf16, #tpu.memory_space<vmem>>, vector<32x32xbf16>,
    return
  }
  func.func @transform_0(%arg0: i32) -> (i32, i32) {
    %c0_i32 = arith.constant 0 : i32
    %c0_i32_0 = arith.constant 0 : i32
    return %arg0, %c0_i32 : i32, i32
  }
  func.func @transform_1(%arg0: i32) -> (i32, i32) {
    %c0_i32 = arith.constant 0 : i32
    %c0_i32_0 = arith.constant 0 : i32
    %c0_i32_1 = arith.constant 0 : i32
    return %c0_i32, %c0_i32_0 : i32, i32
  }
  func.func @transform_2(%arg0: i32) -> (i32, i32) {
    %c0_i32 = arith.constant 0 : i32
    %c0_i32_0 = arith.constant 0 : i32
    %c0_i32_1 = arith.constant 0 : i32
    return %c0_i32, %c0_i32_0 : i32, i32
  }
  func.func @transform_3(%arg0: i32) -> (i32, i32) {
    %c0_i32 = arith.constant 0 : i32
    %c0_i32_0 = arith.constant 0 : i32
    return %arg0, %c0_i32 : i32, i32
  }
}

module attributes {stable_mosaic.version = 11 : i64} {
  func.func @_deconv2x2_kernel(%arg0: i32, %arg1: memref<1x16x32xbf16, #tpu.memory_space<vmem>>, %arg2: memref<32x64xbf16, #tpu.memory_space<vmem>>, %arg3: memref<1x64xf32, #tpu.memory_space<vmem>>, %arg4: memref<1x8x4x32xbf16, #tpu.memory_space<vmem>>, %arg5: memref<16x64xf32, #tpu.memory_space<vmem>>) attributes {dimension_semantics = [#tpu.dimension_semantics<parallel>], iteration_bounds = array<i64: 2>, scalar_prefetch = 0 : i64, scratch_operands = 1 : i64, tpu.core_type = #tpu.core_type<tc>, window_params = [{transform_indices = @transform_0, window_bounds = array<i64: 1, 16, 32>}, {pipeline_mode = #tpu.pipeline_mode<synchronous>, transform_indices = @transform_1, window_bounds = array<i64: 32, 64>}, {pipeline_mode = #tpu.pipeline_mode<synchronous>, transform_indices = @transform_2, window_bounds = array<i64: 1, 64>}, {transform_indices = @transform_3, window_bounds = array<i64: 1, 8, 4, 32>}]} {
    %c0 = arith.constant 0 : index
    %c0_0 = arith.constant 0 : index
    %c0_1 = arith.constant 0 : index
    %0 = vector.load %arg1[%c0, %c0_0, %c0_1] : memref<1x16x32xbf16, #tpu.memory_space<vmem>>, vector<1x16x32xbf16>
    %1 = vector.shape_cast %0 : vector<1x16x32xbf16> to vector<16x32xbf16>
    %c0_2 = arith.constant 0 : index
    %c0_3 = arith.constant 0 : index
    %2 = vector.load %arg2[%c0_2, %c0_3] : memref<32x64xbf16, #tpu.memory_space<vmem>>, vector<32x64xbf16>
    %cst = arith.constant dense<0.000000e+00> : vector<16x64xf32>
    %3 = tpu.matmul %1, %2, %cst {dimension_numbers = #tpu.dot_dimension_numbers<[1], [0], [0], [1], [0, 0, 1, 1], [], []>} : vector<16x32xbf16>, vector<32x64xbf16>, vector<16x64xf32> -> vector<16x64xf32>
    %c0_4 = arith.constant 0 : index
    %c0_5 = arith.constant 0 : index
    %4 = vector.load %arg3[%c0_4, %c0_5] : memref<1x64xf32, #tpu.memory_space<vmem>>, vector<1x64xf32>
    %5 = vector.broadcast %4 : vector<1x64xf32> to vector<16x64xf32>
    %6 = arith.addf %3, %5 : vector<16x64xf32>
    %c0_6 = arith.constant 0 : index
    %c0_7 = arith.constant 0 : index
    %7 = vector.load %arg5[%c0_6, %c0_7] : memref<16x64xf32, #tpu.memory_space<vmem>>, vector<16x64xf32>
    tpu.vector_store %arg5[%c0_6, %c0_7], %6 {strides = array<i32>} : memref<16x64xf32, #tpu.memory_space<vmem>>, vector<16x64xf32>,
    %c0_8 = arith.constant 0 : index
    %c0_9 = arith.constant 0 : index
    %8 = vector.load %arg5[%c0_8, %c0_9] : memref<16x64xf32, #tpu.memory_space<vmem>>, vector<4x64xf32>
    %9 = vector.extract_strided_slice %8 {offsets = [0, 0], sizes = [4, 32], strides = [1, 1]} : vector<4x64xf32> to vector<4x32xf32>
    %10 = arith.truncf %9 : vector<4x32xf32> to vector<4x32xbf16>
    %c0_10 = arith.constant 0 : index
    %c0_11 = arith.constant 0 : index
    %c0_12 = arith.constant 0 : index
    %c0_13 = arith.constant 0 : index
    %11 = vector.load %arg4[%c0_10, %c0_11, %c0_12, %c0_13] : memref<1x8x4x32xbf16, #tpu.memory_space<vmem>>, vector<1x1x4x32xbf16>
    %12 = vector.shape_cast %11 : vector<1x1x4x32xbf16> to vector<4x32xbf16>
    %13 = vector.shape_cast %10 : vector<4x32xbf16> to vector<1x1x4x32xbf16>
    tpu.vector_store %arg4[%c0_10, %c0_11, %c0_12, %c0_13], %13 {strides = array<i32>} : memref<1x8x4x32xbf16, #tpu.memory_space<vmem>>, vector<1x1x4x32xbf16>,
    %14 = vector.extract_strided_slice %8 {offsets = [0, 32], sizes = [4, 32], strides = [1, 1]} : vector<4x64xf32> to vector<4x32xf32>
    %15 = arith.truncf %14 : vector<4x32xf32> to vector<4x32xbf16>
    %c0_14 = arith.constant 0 : index
    %c1 = arith.constant 1 : index
    %c0_15 = arith.constant 0 : index
    %c0_16 = arith.constant 0 : index
    %16 = vector.load %arg4[%c0_14, %c1, %c0_15, %c0_16] : memref<1x8x4x32xbf16, #tpu.memory_space<vmem>>, vector<1x1x4x32xbf16>
    %17 = vector.shape_cast %16 : vector<1x1x4x32xbf16> to vector<4x32xbf16>
    %18 = vector.shape_cast %15 : vector<4x32xbf16> to vector<1x1x4x32xbf16>
    tpu.vector_store %arg4[%c0_14, %c1, %c0_15, %c0_16], %18 {strides = array<i32>} : memref<1x8x4x32xbf16, #tpu.memory_space<vmem>>, vector<1x1x4x32xbf16>,
    %c4 = arith.constant 4 : index
    %c0_17 = arith.constant 0 : index
    %19 = vector.load %arg5[%c4, %c0_17] : memref<16x64xf32, #tpu.memory_space<vmem>>, vector<4x64xf32>
    %20 = vector.extract_strided_slice %19 {offsets = [0, 0], sizes = [4, 32], strides = [1, 1]} : vector<4x64xf32> to vector<4x32xf32>
    %21 = arith.truncf %20 : vector<4x32xf32> to vector<4x32xbf16>
    %c0_18 = arith.constant 0 : index
    %c2 = arith.constant 2 : index
    %c0_19 = arith.constant 0 : index
    %c0_20 = arith.constant 0 : index
    %22 = vector.load %arg4[%c0_18, %c2, %c0_19, %c0_20] : memref<1x8x4x32xbf16, #tpu.memory_space<vmem>>, vector<1x1x4x32xbf16>
    %23 = vector.shape_cast %22 : vector<1x1x4x32xbf16> to vector<4x32xbf16>
    %24 = vector.shape_cast %21 : vector<4x32xbf16> to vector<1x1x4x32xbf16>
    tpu.vector_store %arg4[%c0_18, %c2, %c0_19, %c0_20], %24 {strides = array<i32>} : memref<1x8x4x32xbf16, #tpu.memory_space<vmem>>, vector<1x1x4x32xbf16>,
    %25 = vector.extract_strided_slice %19 {offsets = [0, 32], sizes = [4, 32], strides = [1, 1]} : vector<4x64xf32> to vector<4x32xf32>
    %26 = arith.truncf %25 : vector<4x32xf32> to vector<4x32xbf16>
    %c0_21 = arith.constant 0 : index
    %c3 = arith.constant 3 : index
    %c0_22 = arith.constant 0 : index
    %c0_23 = arith.constant 0 : index
    %27 = vector.load %arg4[%c0_21, %c3, %c0_22, %c0_23] : memref<1x8x4x32xbf16, #tpu.memory_space<vmem>>, vector<1x1x4x32xbf16>
    %28 = vector.shape_cast %27 : vector<1x1x4x32xbf16> to vector<4x32xbf16>
    %29 = vector.shape_cast %26 : vector<4x32xbf16> to vector<1x1x4x32xbf16>
    tpu.vector_store %arg4[%c0_21, %c3, %c0_22, %c0_23], %29 {strides = array<i32>} : memref<1x8x4x32xbf16, #tpu.memory_space<vmem>>, vector<1x1x4x32xbf16>,
    %c8 = arith.constant 8 : index
    %c0_24 = arith.constant 0 : index
    %30 = vector.load %arg5[%c8, %c0_24] : memref<16x64xf32, #tpu.memory_space<vmem>>, vector<4x64xf32>
    %31 = vector.extract_strided_slice %30 {offsets = [0, 0], sizes = [4, 32], strides = [1, 1]} : vector<4x64xf32> to vector<4x32xf32>
    %32 = arith.truncf %31 : vector<4x32xf32> to vector<4x32xbf16>
    %c0_25 = arith.constant 0 : index
    %c4_26 = arith.constant 4 : index
    %c0_27 = arith.constant 0 : index
    %c0_28 = arith.constant 0 : index
    %33 = vector.load %arg4[%c0_25, %c4_26, %c0_27, %c0_28] : memref<1x8x4x32xbf16, #tpu.memory_space<vmem>>, vector<1x1x4x32xbf16>
    %34 = vector.shape_cast %33 : vector<1x1x4x32xbf16> to vector<4x32xbf16>
    %35 = vector.shape_cast %32 : vector<4x32xbf16> to vector<1x1x4x32xbf16>
    tpu.vector_store %arg4[%c0_25, %c4_26, %c0_27, %c0_28], %35 {strides = array<i32>} : memref<1x8x4x32xbf16, #tpu.memory_space<vmem>>, vector<1x1x4x32xbf16>,
    %36 = vector.extract_strided_slice %30 {offsets = [0, 32], sizes = [4, 32], strides = [1, 1]} : vector<4x64xf32> to vector<4x32xf32>
    %37 = arith.truncf %36 : vector<4x32xf32> to vector<4x32xbf16>
    %c0_29 = arith.constant 0 : index
    %c5 = arith.constant 5 : index
    %c0_30 = arith.constant 0 : index
    %c0_31 = arith.constant 0 : index
    %38 = vector.load %arg4[%c0_29, %c5, %c0_30, %c0_31] : memref<1x8x4x32xbf16, #tpu.memory_space<vmem>>, vector<1x1x4x32xbf16>
    %39 = vector.shape_cast %38 : vector<1x1x4x32xbf16> to vector<4x32xbf16>
    %40 = vector.shape_cast %37 : vector<4x32xbf16> to vector<1x1x4x32xbf16>
    tpu.vector_store %arg4[%c0_29, %c5, %c0_30, %c0_31], %40 {strides = array<i32>} : memref<1x8x4x32xbf16, #tpu.memory_space<vmem>>, vector<1x1x4x32xbf16>,
    %c12 = arith.constant 12 : index
    %c0_32 = arith.constant 0 : index
    %41 = vector.load %arg5[%c12, %c0_32] : memref<16x64xf32, #tpu.memory_space<vmem>>, vector<4x64xf32>
    %42 = vector.extract_strided_slice %41 {offsets = [0, 0], sizes = [4, 32], strides = [1, 1]} : vector<4x64xf32> to vector<4x32xf32>
    %43 = arith.truncf %42 : vector<4x32xf32> to vector<4x32xbf16>
    %c0_33 = arith.constant 0 : index
    %c6 = arith.constant 6 : index
    %c0_34 = arith.constant 0 : index
    %c0_35 = arith.constant 0 : index
    %44 = vector.load %arg4[%c0_33, %c6, %c0_34, %c0_35] : memref<1x8x4x32xbf16, #tpu.memory_space<vmem>>, vector<1x1x4x32xbf16>
    %45 = vector.shape_cast %44 : vector<1x1x4x32xbf16> to vector<4x32xbf16>
    %46 = vector.shape_cast %43 : vector<4x32xbf16> to vector<1x1x4x32xbf16>
    tpu.vector_store %arg4[%c0_33, %c6, %c0_34, %c0_35], %46 {strides = array<i32>} : memref<1x8x4x32xbf16, #tpu.memory_space<vmem>>, vector<1x1x4x32xbf16>,
    %47 = vector.extract_strided_slice %41 {offsets = [0, 32], sizes = [4, 32], strides = [1, 1]} : vector<4x64xf32> to vector<4x32xf32>
    %48 = arith.truncf %47 : vector<4x32xf32> to vector<4x32xbf16>
    %c0_36 = arith.constant 0 : index
    %c7 = arith.constant 7 : index
    %c0_37 = arith.constant 0 : index
    %c0_38 = arith.constant 0 : index
    %49 = vector.load %arg4[%c0_36, %c7, %c0_37, %c0_38] : memref<1x8x4x32xbf16, #tpu.memory_space<vmem>>, vector<1x1x4x32xbf16>
    %50 = vector.shape_cast %49 : vector<1x1x4x32xbf16> to vector<4x32xbf16>
    %51 = vector.shape_cast %48 : vector<4x32xbf16> to vector<1x1x4x32xbf16>
    tpu.vector_store %arg4[%c0_36, %c7, %c0_37, %c0_38], %51 {strides = array<i32>} : memref<1x8x4x32xbf16, #tpu.memory_space<vmem>>, vector<1x1x4x32xbf16>,
    return
  }
  func.func @transform_0(%arg0: i32) -> (i32, i32, i32) {
    %c0_i32 = arith.constant 0 : i32
    %c0_i32_0 = arith.constant 0 : i32
    %c0_i32_1 = arith.constant 0 : i32
    return %arg0, %c0_i32, %c0_i32_0 : i32, i32, i32
  }
  func.func @transform_1(%arg0: i32) -> (i32, i32) {
    %c0_i32 = arith.constant 0 : i32
    %c0_i32_0 = arith.constant 0 : i32
    %c0_i32_1 = arith.constant 0 : i32
    return %c0_i32, %c0_i32_0 : i32, i32
  }
  func.func @transform_2(%arg0: i32) -> (i32, i32) {
    %c0_i32 = arith.constant 0 : i32
    %c0_i32_0 = arith.constant 0 : i32
    %c0_i32_1 = arith.constant 0 : i32
    return %c0_i32, %c0_i32_0 : i32, i32
  }
  func.func @transform_3(%arg0: i32) -> (i32, i32, i32, i32) {
    %c0_i32 = arith.constant 0 : i32
    %c0_i32_0 = arith.constant 0 : i32
    %c0_i32_1 = arith.constant 0 : i32
    %c0_i32_2 = arith.constant 0 : i32
    return %arg0, %c0_i32, %c0_i32_0, %c0_i32_1 : i32, i32, i32, i32
  }
}

module attributes {stable_mosaic.version = 11 : i64} {
  func.func @_matmul_kernel(%arg0: i32, %arg1: memref<128x288xbf16, #tpu.memory_space<vmem>>, %arg2: memref<288x16xbf16, #tpu.memory_space<vmem>>, %arg3: memref<1x16xf32, #tpu.memory_space<vmem>>, %arg4: memref<128x16xbf16, #tpu.memory_space<vmem>>) attributes {dimension_semantics = [#tpu.dimension_semantics<parallel>], iteration_bounds = array<i64: 1>, scalar_prefetch = 0 : i64, scratch_operands = 0 : i64, tpu.core_type = #tpu.core_type<tc>, window_params = [{transform_indices = @transform_0, window_bounds = array<i64: 128, 288>}, {pipeline_mode = #tpu.pipeline_mode<synchronous>, transform_indices = @transform_1, window_bounds = array<i64: 288, 16>}, {pipeline_mode = #tpu.pipeline_mode<synchronous>, transform_indices = @transform_2, window_bounds = array<i64: 1, 16>}, {transform_indices = @transform_3, window_bounds = array<i64: 128, 16>}]} {
    %c0 = arith.constant 0 : index
    %c0_0 = arith.constant 0 : index
    %0 = vector.load %arg1[%c0, %c0_0] : memref<128x288xbf16, #tpu.memory_space<vmem>>, vector<128x288xbf16>
    %c0_1 = arith.constant 0 : index
    %c0_2 = arith.constant 0 : index
    %1 = vector.load %arg2[%c0_1, %c0_2] : memref<288x16xbf16, #tpu.memory_space<vmem>>, vector<288x16xbf16>
    %cst = arith.constant dense<0.000000e+00> : vector<128x16xf32>
    %2 = tpu.matmul %0, %1, %cst {dimension_numbers = #tpu.dot_dimension_numbers<[1], [0], [0], [1], [0, 0, 1, 1], [], []>} : vector<128x288xbf16>, vector<288x16xbf16>, vector<128x16xf32> -> vector<128x16xf32>
    %c0_3 = arith.constant 0 : index
    %c0_4 = arith.constant 0 : index
    %3 = vector.load %arg3[%c0_3, %c0_4] : memref<1x16xf32, #tpu.memory_space<vmem>>, vector<1x16xf32>
    %4 = vector.broadcast %3 : vector<1x16xf32> to vector<128x16xf32>
    %5 = arith.addf %2, %4 : vector<128x16xf32>
    %cst_5 = arith.constant 0.000000e+00 : f32
    %6 = vector.broadcast %cst_5 : f32 to vector<128x16xf32>
    %7 = arith.maximumf %5, %6 : vector<128x16xf32>
    %8 = arith.truncf %7 : vector<128x16xf32> to vector<128x16xbf16>
    %c0_6 = arith.constant 0 : index
    %c0_7 = arith.constant 0 : index
    %9 = vector.load %arg4[%c0_6, %c0_7] : memref<128x16xbf16, #tpu.memory_space<vmem>>, vector<128x16xbf16>
    tpu.vector_store %arg4[%c0_6, %c0_7], %8 {strides = array<i32>} : memref<128x16xbf16, #tpu.memory_space<vmem>>, vector<128x16xbf16>,
    return
  }
  func.func @transform_0(%arg0: i32) -> (i32, i32) {
    %c0_i32 = arith.constant 0 : i32
    %c0_i32_0 = arith.constant 0 : i32
    return %arg0, %c0_i32 : i32, i32
  }
  func.func @transform_1(%arg0: i32) -> (i32, i32) {
    %c0_i32 = arith.constant 0 : i32
    %c0_i32_0 = arith.constant 0 : i32
    %c0_i32_1 = arith.constant 0 : i32
    return %c0_i32, %c0_i32_0 : i32, i32
  }
  func.func @transform_2(%arg0: i32) -> (i32, i32) {
    %c0_i32 = arith.constant 0 : i32
    %c0_i32_0 = arith.constant 0 : i32
    %c0_i32_1 = arith.constant 0 : i32
    return %c0_i32, %c0_i32_0 : i32, i32
  }
  func.func @transform_3(%arg0: i32) -> (i32, i32) {
    %c0_i32 = arith.constant 0 : i32
    %c0_i32_0 = arith.constant 0 : i32
    return %arg0, %c0_i32 : i32, i32
  }
}

module attributes {stable_mosaic.version = 11 : i64} {
  func.func @_deconv2x2_kernel(%arg0: i32, %arg1: memref<1x64x16xbf16, #tpu.memory_space<vmem>>, %arg2: memref<16x32xbf16, #tpu.memory_space<vmem>>, %arg3: memref<1x32xf32, #tpu.memory_space<vmem>>, %arg4: memref<1x16x8x16xbf16, #tpu.memory_space<vmem>>, %arg5: memref<64x32xf32, #tpu.memory_space<vmem>>) attributes {dimension_semantics = [#tpu.dimension_semantics<parallel>], iteration_bounds = array<i64: 2>, scalar_prefetch = 0 : i64, scratch_operands = 1 : i64, tpu.core_type = #tpu.core_type<tc>, window_params = [{transform_indices = @transform_0, window_bounds = array<i64: 1, 64, 16>}, {pipeline_mode = #tpu.pipeline_mode<synchronous>, transform_indices = @transform_1, window_bounds = array<i64: 16, 32>}, {pipeline_mode = #tpu.pipeline_mode<synchronous>, transform_indices = @transform_2, window_bounds = array<i64: 1, 32>}, {transform_indices = @transform_3, window_bounds = array<i64: 1, 16, 8, 16>}]} {
    %c0 = arith.constant 0 : index
    %c0_0 = arith.constant 0 : index
    %c0_1 = arith.constant 0 : index
    %0 = vector.load %arg1[%c0, %c0_0, %c0_1] : memref<1x64x16xbf16, #tpu.memory_space<vmem>>, vector<1x64x16xbf16>
    %1 = vector.shape_cast %0 : vector<1x64x16xbf16> to vector<64x16xbf16>
    %c0_2 = arith.constant 0 : index
    %c0_3 = arith.constant 0 : index
    %2 = vector.load %arg2[%c0_2, %c0_3] : memref<16x32xbf16, #tpu.memory_space<vmem>>, vector<16x32xbf16>
    %cst = arith.constant dense<0.000000e+00> : vector<64x32xf32>
    %3 = tpu.matmul %1, %2, %cst {dimension_numbers = #tpu.dot_dimension_numbers<[1], [0], [0], [1], [0, 0, 1, 1], [], []>} : vector<64x16xbf16>, vector<16x32xbf16>, vector<64x32xf32> -> vector<64x32xf32>
    %c0_4 = arith.constant 0 : index
    %c0_5 = arith.constant 0 : index
    %4 = vector.load %arg3[%c0_4, %c0_5] : memref<1x32xf32, #tpu.memory_space<vmem>>, vector<1x32xf32>
    %5 = vector.broadcast %4 : vector<1x32xf32> to vector<64x32xf32>
    %6 = arith.addf %3, %5 : vector<64x32xf32>
    %c0_6 = arith.constant 0 : index
    %c0_7 = arith.constant 0 : index
    %7 = vector.load %arg5[%c0_6, %c0_7] : memref<64x32xf32, #tpu.memory_space<vmem>>, vector<64x32xf32>
    tpu.vector_store %arg5[%c0_6, %c0_7], %6 {strides = array<i32>} : memref<64x32xf32, #tpu.memory_space<vmem>>, vector<64x32xf32>,
    %c0_8 = arith.constant 0 : index
    %c0_9 = arith.constant 0 : index
    %8 = vector.load %arg5[%c0_8, %c0_9] : memref<64x32xf32, #tpu.memory_space<vmem>>, vector<8x32xf32>
    %9 = vector.extract_strided_slice %8 {offsets = [0, 0], sizes = [8, 16], strides = [1, 1]} : vector<8x32xf32> to vector<8x16xf32>
    %10 = arith.truncf %9 : vector<8x16xf32> to vector<8x16xbf16>
    %c0_10 = arith.constant 0 : index
    %c0_11 = arith.constant 0 : index
    %c0_12 = arith.constant 0 : index
    %c0_13 = arith.constant 0 : index
    %11 = vector.load %arg4[%c0_10, %c0_11, %c0_12, %c0_13] : memref<1x16x8x16xbf16, #tpu.memory_space<vmem>>, vector<1x1x8x16xbf16>
    %12 = vector.shape_cast %11 : vector<1x1x8x16xbf16> to vector<8x16xbf16>
    %13 = vector.shape_cast %10 : vector<8x16xbf16> to vector<1x1x8x16xbf16>
    tpu.vector_store %arg4[%c0_10, %c0_11, %c0_12, %c0_13], %13 {strides = array<i32>} : memref<1x16x8x16xbf16, #tpu.memory_space<vmem>>, vector<1x1x8x16xbf16>,
    %14 = vector.extract_strided_slice %8 {offsets = [0, 16], sizes = [8, 16], strides = [1, 1]} : vector<8x32xf32> to vector<8x16xf32>
    %15 = arith.truncf %14 : vector<8x16xf32> to vector<8x16xbf16>
    %c0_14 = arith.constant 0 : index
    %c1 = arith.constant 1 : index
    %c0_15 = arith.constant 0 : index
    %c0_16 = arith.constant 0 : index
    %16 = vector.load %arg4[%c0_14, %c1, %c0_15, %c0_16] : memref<1x16x8x16xbf16, #tpu.memory_space<vmem>>, vector<1x1x8x16xbf16>
    %17 = vector.shape_cast %16 : vector<1x1x8x16xbf16> to vector<8x16xbf16>
    %18 = vector.shape_cast %15 : vector<8x16xbf16> to vector<1x1x8x16xbf16>
    tpu.vector_store %arg4[%c0_14, %c1, %c0_15, %c0_16], %18 {strides = array<i32>} : memref<1x16x8x16xbf16, #tpu.memory_space<vmem>>, vector<1x1x8x16xbf16>,
    %c8 = arith.constant 8 : index
    %c0_17 = arith.constant 0 : index
    %19 = vector.load %arg5[%c8, %c0_17] : memref<64x32xf32, #tpu.memory_space<vmem>>, vector<8x32xf32>
    %20 = vector.extract_strided_slice %19 {offsets = [0, 0], sizes = [8, 16], strides = [1, 1]} : vector<8x32xf32> to vector<8x16xf32>
    %21 = arith.truncf %20 : vector<8x16xf32> to vector<8x16xbf16>
    %c0_18 = arith.constant 0 : index
    %c2 = arith.constant 2 : index
    %c0_19 = arith.constant 0 : index
    %c0_20 = arith.constant 0 : index
    %22 = vector.load %arg4[%c0_18, %c2, %c0_19, %c0_20] : memref<1x16x8x16xbf16, #tpu.memory_space<vmem>>, vector<1x1x8x16xbf16>
    %23 = vector.shape_cast %22 : vector<1x1x8x16xbf16> to vector<8x16xbf16>
    %24 = vector.shape_cast %21 : vector<8x16xbf16> to vector<1x1x8x16xbf16>
    tpu.vector_store %arg4[%c0_18, %c2, %c0_19, %c0_20], %24 {strides = array<i32>} : memref<1x16x8x16xbf16, #tpu.memory_space<vmem>>, vector<1x1x8x16xbf16>,
    %25 = vector.extract_strided_slice %19 {offsets = [0, 16], sizes = [8, 16], strides = [1, 1]} : vector<8x32xf32> to vector<8x16xf32>
    %26 = arith.truncf %25 : vector<8x16xf32> to vector<8x16xbf16>
    %c0_21 = arith.constant 0 : index
    %c3 = arith.constant 3 : index
    %c0_22 = arith.constant 0 : index
    %c0_23 = arith.constant 0 : index
    %27 = vector.load %arg4[%c0_21, %c3, %c0_22, %c0_23] : memref<1x16x8x16xbf16, #tpu.memory_space<vmem>>, vector<1x1x8x16xbf16>
    %28 = vector.shape_cast %27 : vector<1x1x8x16xbf16> to vector<8x16xbf16>
    %29 = vector.shape_cast %26 : vector<8x16xbf16> to vector<1x1x8x16xbf16>
    tpu.vector_store %arg4[%c0_21, %c3, %c0_22, %c0_23], %29 {strides = array<i32>} : memref<1x16x8x16xbf16, #tpu.memory_space<vmem>>, vector<1x1x8x16xbf16>,
    %c16 = arith.constant 16 : index
    %c0_24 = arith.constant 0 : index
    %30 = vector.load %arg5[%c16, %c0_24] : memref<64x32xf32, #tpu.memory_space<vmem>>, vector<8x32xf32>
    %31 = vector.extract_strided_slice %30 {offsets = [0, 0], sizes = [8, 16], strides = [1, 1]} : vector<8x32xf32> to vector<8x16xf32>
    %32 = arith.truncf %31 : vector<8x16xf32> to vector<8x16xbf16>
    %c0_25 = arith.constant 0 : index
    %c4 = arith.constant 4 : index
    %c0_26 = arith.constant 0 : index
    %c0_27 = arith.constant 0 : index
    %33 = vector.load %arg4[%c0_25, %c4, %c0_26, %c0_27] : memref<1x16x8x16xbf16, #tpu.memory_space<vmem>>, vector<1x1x8x16xbf16>
    %34 = vector.shape_cast %33 : vector<1x1x8x16xbf16> to vector<8x16xbf16>
    %35 = vector.shape_cast %32 : vector<8x16xbf16> to vector<1x1x8x16xbf16>
    tpu.vector_store %arg4[%c0_25, %c4, %c0_26, %c0_27], %35 {strides = array<i32>} : memref<1x16x8x16xbf16, #tpu.memory_space<vmem>>, vector<1x1x8x16xbf16>,
    %36 = vector.extract_strided_slice %30 {offsets = [0, 16], sizes = [8, 16], strides = [1, 1]} : vector<8x32xf32> to vector<8x16xf32>
    %37 = arith.truncf %36 : vector<8x16xf32> to vector<8x16xbf16>
    %c0_28 = arith.constant 0 : index
    %c5 = arith.constant 5 : index
    %c0_29 = arith.constant 0 : index
    %c0_30 = arith.constant 0 : index
    %38 = vector.load %arg4[%c0_28, %c5, %c0_29, %c0_30] : memref<1x16x8x16xbf16, #tpu.memory_space<vmem>>, vector<1x1x8x16xbf16>
    %39 = vector.shape_cast %38 : vector<1x1x8x16xbf16> to vector<8x16xbf16>
    %40 = vector.shape_cast %37 : vector<8x16xbf16> to vector<1x1x8x16xbf16>
    tpu.vector_store %arg4[%c0_28, %c5, %c0_29, %c0_30], %40 {strides = array<i32>} : memref<1x16x8x16xbf16, #tpu.memory_space<vmem>>, vector<1x1x8x16xbf16>,
    %c24 = arith.constant 24 : index
    %c0_31 = arith.constant 0 : index
    %41 = vector.load %arg5[%c24, %c0_31] : memref<64x32xf32, #tpu.memory_space<vmem>>, vector<8x32xf32>
    %42 = vector.extract_strided_slice %41 {offsets = [0, 0], sizes = [8, 16], strides = [1, 1]} : vector<8x32xf32> to vector<8x16xf32>
    %43 = arith.truncf %42 : vector<8x16xf32> to vector<8x16xbf16>
    %c0_32 = arith.constant 0 : index
    %c6 = arith.constant 6 : index
    %c0_33 = arith.constant 0 : index
    %c0_34 = arith.constant 0 : index
    %44 = vector.load %arg4[%c0_32, %c6, %c0_33, %c0_34] : memref<1x16x8x16xbf16, #tpu.memory_space<vmem>>, vector<1x1x8x16xbf16>
    %45 = vector.shape_cast %44 : vector<1x1x8x16xbf16> to vector<8x16xbf16>
    %46 = vector.shape_cast %43 : vector<8x16xbf16> to vector<1x1x8x16xbf16>
    tpu.vector_store %arg4[%c0_32, %c6, %c0_33, %c0_34], %46 {strides = array<i32>} : memref<1x16x8x16xbf16, #tpu.memory_space<vmem>>, vector<1x1x8x16xbf16>,
    %47 = vector.extract_strided_slice %41 {offsets = [0, 16], sizes = [8, 16], strides = [1, 1]} : vector<8x32xf32> to vector<8x16xf32>
    %48 = arith.truncf %47 : vector<8x16xf32> to vector<8x16xbf16>
    %c0_35 = arith.constant 0 : index
    %c7 = arith.constant 7 : index
    %c0_36 = arith.constant 0 : index
    %c0_37 = arith.constant 0 : index
    %49 = vector.load %arg4[%c0_35, %c7, %c0_36, %c0_37] : memref<1x16x8x16xbf16, #tpu.memory_space<vmem>>, vector<1x1x8x16xbf16>
    %50 = vector.shape_cast %49 : vector<1x1x8x16xbf16> to vector<8x16xbf16>
    %51 = vector.shape_cast %48 : vector<8x16xbf16> to vector<1x1x8x16xbf16>
    tpu.vector_store %arg4[%c0_35, %c7, %c0_36, %c0_37], %51 {strides = array<i32>} : memref<1x16x8x16xbf16, #tpu.memory_space<vmem>>, vector<1x1x8x16xbf16>,
    %c32 = arith.constant 32 : index
    %c0_38 = arith.constant 0 : index
    %52 = vector.load %arg5[%c32, %c0_38] : memref<64x32xf32, #tpu.memory_space<vmem>>, vector<8x32xf32>
    %53 = vector.extract_strided_slice %52 {offsets = [0, 0], sizes = [8, 16], strides = [1, 1]} : vector<8x32xf32> to vector<8x16xf32>
    %54 = arith.truncf %53 : vector<8x16xf32> to vector<8x16xbf16>
    %c0_39 = arith.constant 0 : index
    %c8_40 = arith.constant 8 : index
    %c0_41 = arith.constant 0 : index
    %c0_42 = arith.constant 0 : index
    %55 = vector.load %arg4[%c0_39, %c8_40, %c0_41, %c0_42] : memref<1x16x8x16xbf16, #tpu.memory_space<vmem>>, vector<1x1x8x16xbf16>
    %56 = vector.shape_cast %55 : vector<1x1x8x16xbf16> to vector<8x16xbf16>
    %57 = vector.shape_cast %54 : vector<8x16xbf16> to vector<1x1x8x16xbf16>
    tpu.vector_store %arg4[%c0_39, %c8_40, %c0_41, %c0_42], %57 {strides = array<i32>} : memref<1x16x8x16xbf16, #tpu.memory_space<vmem>>, vector<1x1x8x16xbf16>,
    %58 = vector.extract_strided_slice %52 {offsets = [0, 16], sizes = [8, 16], strides = [1, 1]} : vector<8x32xf32> to vector<8x16xf32>
    %59 = arith.truncf %58 : vector<8x16xf32> to vector<8x16xbf16>
    %c0_43 = arith.constant 0 : index
    %c9 = arith.constant 9 : index
    %c0_44 = arith.constant 0 : index
    %c0_45 = arith.constant 0 : index
    %60 = vector.load %arg4[%c0_43, %c9, %c0_44, %c0_45] : memref<1x16x8x16xbf16, #tpu.memory_space<vmem>>, vector<1x1x8x16xbf16>
    %61 = vector.shape_cast %60 : vector<1x1x8x16xbf16> to vector<8x16xbf16>
    %62 = vector.shape_cast %59 : vector<8x16xbf16> to vector<1x1x8x16xbf16>
    tpu.vector_store %arg4[%c0_43, %c9, %c0_44, %c0_45], %62 {strides = array<i32>} : memref<1x16x8x16xbf16, #tpu.memory_space<vmem>>, vector<1x1x8x16xbf16>,
    %c40 = arith.constant 40 : index
    %c0_46 = arith.constant 0 : index
    %63 = vector.load %arg5[%c40, %c0_46] : memref<64x32xf32, #tpu.memory_space<vmem>>, vector<8x32xf32>
    %64 = vector.extract_strided_slice %63 {offsets = [0, 0], sizes = [8, 16], strides = [1, 1]} : vector<8x32xf32> to vector<8x16xf32>
    %65 = arith.truncf %64 : vector<8x16xf32> to vector<8x16xbf16>
    %c0_47 = arith.constant 0 : index
    %c10 = arith.constant 10 : index
    %c0_48 = arith.constant 0 : index
    %c0_49 = arith.constant 0 : index
    %66 = vector.load %arg4[%c0_47, %c10, %c0_48, %c0_49] : memref<1x16x8x16xbf16, #tpu.memory_space<vmem>>, vector<1x1x8x16xbf16>
    %67 = vector.shape_cast %66 : vector<1x1x8x16xbf16> to vector<8x16xbf16>
    %68 = vector.shape_cast %65 : vector<8x16xbf16> to vector<1x1x8x16xbf16>
    tpu.vector_store %arg4[%c0_47, %c10, %c0_48, %c0_49], %68 {strides = array<i32>} : memref<1x16x8x16xbf16, #tpu.memory_space<vmem>>, vector<1x1x8x16xbf16>,
    %69 = vector.extract_strided_slice %63 {offsets = [0, 16], sizes = [8, 16], strides = [1, 1]} : vector<8x32xf32> to vector<8x16xf32>
    %70 = arith.truncf %69 : vector<8x16xf32> to vector<8x16xbf16>
    %c0_50 = arith.constant 0 : index
    %c11 = arith.constant 11 : index
    %c0_51 = arith.constant 0 : index
    %c0_52 = arith.constant 0 : index
    %71 = vector.load %arg4[%c0_50, %c11, %c0_51, %c0_52] : memref<1x16x8x16xbf16, #tpu.memory_space<vmem>>, vector<1x1x8x16xbf16>
    %72 = vector.shape_cast %71 : vector<1x1x8x16xbf16> to vector<8x16xbf16>
    %73 = vector.shape_cast %70 : vector<8x16xbf16> to vector<1x1x8x16xbf16>
    tpu.vector_store %arg4[%c0_50, %c11, %c0_51, %c0_52], %73 {strides = array<i32>} : memref<1x16x8x16xbf16, #tpu.memory_space<vmem>>, vector<1x1x8x16xbf16>,
    %c48 = arith.constant 48 : index
    %c0_53 = arith.constant 0 : index
    %74 = vector.load %arg5[%c48, %c0_53] : memref<64x32xf32, #tpu.memory_space<vmem>>, vector<8x32xf32>
    %75 = vector.extract_strided_slice %74 {offsets = [0, 0], sizes = [8, 16], strides = [1, 1]} : vector<8x32xf32> to vector<8x16xf32>
    %76 = arith.truncf %75 : vector<8x16xf32> to vector<8x16xbf16>
    %c0_54 = arith.constant 0 : index
    %c12 = arith.constant 12 : index
    %c0_55 = arith.constant 0 : index
    %c0_56 = arith.constant 0 : index
    %77 = vector.load %arg4[%c0_54, %c12, %c0_55, %c0_56] : memref<1x16x8x16xbf16, #tpu.memory_space<vmem>>, vector<1x1x8x16xbf16>
    %78 = vector.shape_cast %77 : vector<1x1x8x16xbf16> to vector<8x16xbf16>
    %79 = vector.shape_cast %76 : vector<8x16xbf16> to vector<1x1x8x16xbf16>
    tpu.vector_store %arg4[%c0_54, %c12, %c0_55, %c0_56], %79 {strides = array<i32>} : memref<1x16x8x16xbf16, #tpu.memory_space<vmem>>, vector<1x1x8x16xbf16>,
    %80 = vector.extract_strided_slice %74 {offsets = [0, 16], sizes = [8, 16], strides = [1, 1]} : vector<8x32xf32> to vector<8x16xf32>
    %81 = arith.truncf %80 : vector<8x16xf32> to vector<8x16xbf16>
    %c0_57 = arith.constant 0 : index
    %c13 = arith.constant 13 : index
    %c0_58 = arith.constant 0 : index
    %c0_59 = arith.constant 0 : index
    %82 = vector.load %arg4[%c0_57, %c13, %c0_58, %c0_59] : memref<1x16x8x16xbf16, #tpu.memory_space<vmem>>, vector<1x1x8x16xbf16>
    %83 = vector.shape_cast %82 : vector<1x1x8x16xbf16> to vector<8x16xbf16>
    %84 = vector.shape_cast %81 : vector<8x16xbf16> to vector<1x1x8x16xbf16>
    tpu.vector_store %arg4[%c0_57, %c13, %c0_58, %c0_59], %84 {strides = array<i32>} : memref<1x16x8x16xbf16, #tpu.memory_space<vmem>>, vector<1x1x8x16xbf16>,
    %c56 = arith.constant 56 : index
    %c0_60 = arith.constant 0 : index
    %85 = vector.load %arg5[%c56, %c0_60] : memref<64x32xf32, #tpu.memory_space<vmem>>, vector<8x32xf32>
    %86 = vector.extract_strided_slice %85 {offsets = [0, 0], sizes = [8, 16], strides = [1, 1]} : vector<8x32xf32> to vector<8x16xf32>
    %87 = arith.truncf %86 : vector<8x16xf32> to vector<8x16xbf16>
    %c0_61 = arith.constant 0 : index
    %c14 = arith.constant 14 : index
    %c0_62 = arith.constant 0 : index
    %c0_63 = arith.constant 0 : index
    %88 = vector.load %arg4[%c0_61, %c14, %c0_62, %c0_63] : memref<1x16x8x16xbf16, #tpu.memory_space<vmem>>, vector<1x1x8x16xbf16>
    %89 = vector.shape_cast %88 : vector<1x1x8x16xbf16> to vector<8x16xbf16>
    %90 = vector.shape_cast %87 : vector<8x16xbf16> to vector<1x1x8x16xbf16>
    tpu.vector_store %arg4[%c0_61, %c14, %c0_62, %c0_63], %90 {strides = array<i32>} : memref<1x16x8x16xbf16, #tpu.memory_space<vmem>>, vector<1x1x8x16xbf16>,
    %91 = vector.extract_strided_slice %85 {offsets = [0, 16], sizes = [8, 16], strides = [1, 1]} : vector<8x32xf32> to vector<8x16xf32>
    %92 = arith.truncf %91 : vector<8x16xf32> to vector<8x16xbf16>
    %c0_64 = arith.constant 0 : index
    %c15 = arith.constant 15 : index
    %c0_65 = arith.constant 0 : index
    %c0_66 = arith.constant 0 : index
    %93 = vector.load %arg4[%c0_64, %c15, %c0_65, %c0_66] : memref<1x16x8x16xbf16, #tpu.memory_space<vmem>>, vector<1x1x8x16xbf16>
    %94 = vector.shape_cast %93 : vector<1x1x8x16xbf16> to vector<8x16xbf16>
    %95 = vector.shape_cast %92 : vector<8x16xbf16> to vector<1x1x8x16xbf16>
    tpu.vector_store %arg4[%c0_64, %c15, %c0_65, %c0_66], %95 {strides = array<i32>} : memref<1x16x8x16xbf16, #tpu.memory_space<vmem>>, vector<1x1x8x16xbf16>,
    return
  }
  func.func @transform_0(%arg0: i32) -> (i32, i32, i32) {
    %c0_i32 = arith.constant 0 : i32
    %c0_i32_0 = arith.constant 0 : i32
    %c0_i32_1 = arith.constant 0 : i32
    return %arg0, %c0_i32, %c0_i32_0 : i32, i32, i32
  }
  func.func @transform_1(%arg0: i32) -> (i32, i32) {
    %c0_i32 = arith.constant 0 : i32
    %c0_i32_0 = arith.constant 0 : i32
    %c0_i32_1 = arith.constant 0 : i32
    return %c0_i32, %c0_i32_0 : i32, i32
  }
  func.func @transform_2(%arg0: i32) -> (i32, i32) {
    %c0_i32 = arith.constant 0 : i32
    %c0_i32_0 = arith.constant 0 : i32
    %c0_i32_1 = arith.constant 0 : i32
    return %c0_i32, %c0_i32_0 : i32, i32
  }
  func.func @transform_3(%arg0: i32) -> (i32, i32, i32, i32) {
    %c0_i32 = arith.constant 0 : i32
    %c0_i32_0 = arith.constant 0 : i32
    %c0_i32_1 = arith.constant 0 : i32
    %c0_i32_2 = arith.constant 0 : i32
    return %arg0, %c0_i32, %c0_i32_0, %c0_i32_1 : i32, i32, i32, i32
  }
}

module attributes {stable_mosaic.version = 11 : i64} {
  func.func @_matmul_kernel(%arg0: i32, %arg1: memref<256x144xbf16, #tpu.memory_space<vmem>>, %arg2: memref<144x8xbf16, #tpu.memory_space<vmem>>, %arg3: memref<1x8xf32, #tpu.memory_space<vmem>>, %arg4: memref<256x8xbf16, #tpu.memory_space<vmem>>) attributes {dimension_semantics = [#tpu.dimension_semantics<parallel>], iteration_bounds = array<i64: 2>, scalar_prefetch = 0 : i64, scratch_operands = 0 : i64, tpu.core_type = #tpu.core_type<tc>, window_params = [{transform_indices = @transform_0, window_bounds = array<i64: 256, 144>}, {pipeline_mode = #tpu.pipeline_mode<synchronous>, transform_indices = @transform_1, window_bounds = array<i64: 144, 8>}, {pipeline_mode = #tpu.pipeline_mode<synchronous>, transform_indices = @transform_2, window_bounds = array<i64: 1, 8>}, {transform_indices = @transform_3, window_bounds = array<i64: 256, 8>}]} {
    %c0 = arith.constant 0 : index
    %c0_0 = arith.constant 0 : index
    %0 = vector.load %arg1[%c0, %c0_0] : memref<256x144xbf16, #tpu.memory_space<vmem>>, vector<256x144xbf16>
    %c0_1 = arith.constant 0 : index
    %c0_2 = arith.constant 0 : index
    %1 = vector.load %arg2[%c0_1, %c0_2] : memref<144x8xbf16, #tpu.memory_space<vmem>>, vector<144x8xbf16>
    %cst = arith.constant dense<0.000000e+00> : vector<256x8xf32>
    %2 = tpu.matmul %0, %1, %cst {dimension_numbers = #tpu.dot_dimension_numbers<[1], [0], [0], [1], [0, 0, 1, 1], [], []>} : vector<256x144xbf16>, vector<144x8xbf16>, vector<256x8xf32> -> vector<256x8xf32>
    %c0_3 = arith.constant 0 : index
    %c0_4 = arith.constant 0 : index
    %3 = vector.load %arg3[%c0_3, %c0_4] : memref<1x8xf32, #tpu.memory_space<vmem>>, vector<1x8xf32>
    %4 = vector.broadcast %3 : vector<1x8xf32> to vector<256x8xf32>
    %5 = arith.addf %2, %4 : vector<256x8xf32>
    %cst_5 = arith.constant 0.000000e+00 : f32
    %6 = vector.broadcast %cst_5 : f32 to vector<256x8xf32>
    %7 = arith.maximumf %5, %6 : vector<256x8xf32>
    %8 = arith.truncf %7 : vector<256x8xf32> to vector<256x8xbf16>
    %c0_6 = arith.constant 0 : index
    %c0_7 = arith.constant 0 : index
    %9 = vector.load %arg4[%c0_6, %c0_7] : memref<256x8xbf16, #tpu.memory_space<vmem>>, vector<256x8xbf16>
    tpu.vector_store %arg4[%c0_6, %c0_7], %8 {strides = array<i32>} : memref<256x8xbf16, #tpu.memory_space<vmem>>, vector<256x8xbf16>,
    return
  }
  func.func @transform_0(%arg0: i32) -> (i32, i32) {
    %c0_i32 = arith.constant 0 : i32
    %c0_i32_0 = arith.constant 0 : i32
    return %arg0, %c0_i32 : i32, i32
  }
  func.func @transform_1(%arg0: i32) -> (i32, i32) {
    %c0_i32 = arith.constant 0 : i32
    %c0_i32_0 = arith.constant 0 : i32
    %c0_i32_1 = arith.constant 0 : i32
    return %c0_i32, %c0_i32_0 : i32, i32
  }
  func.func @transform_2(%arg0: i32) -> (i32, i32) {
    %c0_i32 = arith.constant 0 : i32
    %c0_i32_0 = arith.constant 0 : i32
    %c0_i32_1 = arith.constant 0 : i32
    return %c0_i32, %c0_i32_0 : i32, i32
  }
  func.func @transform_3(%arg0: i32) -> (i32, i32) {
    %c0_i32 = arith.constant 0 : i32
    %c0_i32_0 = arith.constant 0 : i32
    return %arg0, %c0_i32 : i32, i32
  }
}

module attributes {stable_mosaic.version = 11 : i64} {
  func.func @_matmul_kernel(%arg0: i32, %arg1: memref<256x8xbf16, #tpu.memory_space<vmem>>, %arg2: memref<8x2xbf16, #tpu.memory_space<vmem>>, %arg3: memref<1x2xf32, #tpu.memory_space<vmem>>, %arg4: memref<256x2xf32, #tpu.memory_space<vmem>>) attributes {dimension_semantics = [#tpu.dimension_semantics<parallel>], iteration_bounds = array<i64: 2>, scalar_prefetch = 0 : i64, scratch_operands = 0 : i64, tpu.core_type = #tpu.core_type<tc>, window_params = [{transform_indices = @transform_0, window_bounds = array<i64: 256, 8>}, {pipeline_mode = #tpu.pipeline_mode<synchronous>, transform_indices = @transform_1, window_bounds = array<i64: 8, 2>}, {pipeline_mode = #tpu.pipeline_mode<synchronous>, transform_indices = @transform_2, window_bounds = array<i64: 1, 2>}, {transform_indices = @transform_3, window_bounds = array<i64: 256, 2>}]} {
    %c0 = arith.constant 0 : index
    %c0_0 = arith.constant 0 : index
    %0 = vector.load %arg1[%c0, %c0_0] : memref<256x8xbf16, #tpu.memory_space<vmem>>, vector<256x8xbf16>
    %c0_1 = arith.constant 0 : index
    %c0_2 = arith.constant 0 : index
    %1 = vector.load %arg2[%c0_1, %c0_2] : memref<8x2xbf16, #tpu.memory_space<vmem>>, vector<8x2xbf16>
    %cst = arith.constant dense<0.000000e+00> : vector<256x2xf32>
    %2 = tpu.matmul %0, %1, %cst {dimension_numbers = #tpu.dot_dimension_numbers<[1], [0], [0], [1], [0, 0, 1, 1], [], []>} : vector<256x8xbf16>, vector<8x2xbf16>, vector<256x2xf32> -> vector<256x2xf32>
    %c0_3 = arith.constant 0 : index
    %c0_4 = arith.constant 0 : index
    %3 = vector.load %arg3[%c0_3, %c0_4] : memref<1x2xf32, #tpu.memory_space<vmem>>, vector<1x2xf32>
    %4 = vector.broadcast %3 : vector<1x2xf32> to vector<256x2xf32>
    %5 = arith.addf %2, %4 : vector<256x2xf32>
    %c0_5 = arith.constant 0 : index
    %c0_6 = arith.constant 0 : index
    %6 = vector.load %arg4[%c0_5, %c0_6] : memref<256x2xf32, #tpu.memory_space<vmem>>, vector<256x2xf32>
    tpu.vector_store %arg4[%c0_5, %c0_6], %5 {strides = array<i32>} : memref<256x2xf32, #tpu.memory_space<vmem>>, vector<256x2xf32>,
    return
  }
  func.func @transform_0(%arg0: i32) -> (i32, i32) {
    %c0_i32 = arith.constant 0 : i32
    %c0_i32_0 = arith.constant 0 : i32
    return %arg0, %c0_i32 : i32, i32
  }
  func.func @transform_1(%arg0: i32) -> (i32, i32) {
    %c0_i32 = arith.constant 0 : i32
    %c0_i32_0 = arith.constant 0 : i32
    %c0_i32_1 = arith.constant 0 : i32
    return %c0_i32, %c0_i32_0 : i32, i32
  }
  func.func @transform_2(%arg0: i32) -> (i32, i32) {
    %c0_i32 = arith.constant 0 : i32
    %c0_i32_0 = arith.constant 0 : i32
    %c0_i32_1 = arith.constant 0 : i32
    return %c0_i32, %c0_i32_0 : i32, i32
  }
  func.func @transform_3(%arg0: i32) -> (i32, i32) {
    %c0_i32 = arith.constant 0 : i32
    %c0_i32_0 = arith.constant 0 : i32
    return %arg0, %c0_i32 : i32, i32
  }
}

</mosaic_0001>

<bundles_post_ra>
// kernel: cam_unet_forward.19
= control target key start
LH: loop header
LB: loop body
LE: loop exit
PB: predicated region body
PF: predicated region fallthrough
CT: control target
= control target key end

     0   :  { %s941_s12 = smov 0   ;;  %s1105_s0 = inlined_call_operand.vmem [shape: bf16[1024,2], index: 0, kind: input, shape index: {}]   ;;  %s1106_s1 = inlined_call_operand.vmem [shape: bf16[2,4], index: 1, kind: input, shape index: {}]   ;;  %s1107_s2 = inlined_call_operand.vmem [shape: f32[1,4], index: 2, kind: input, shape index: {}]   ;;  %s1108_s3 = inlined_call_operand.vmem [shape: bf16[1024,4], index: 3, kind: output, shape index: {}]  }
   0x1 LB: > { %s726_s13 = sadd.s32 4294967295, %s919_s12   ;;  %p730_p0 = scmp.ge.s32.totalorder %s919_s12, 1  ;;  %s919_s12 = sphi %s941_s12, %s13_s12  }
   0x2   : > { %p138_p1 = scmp.lt.s32.totalorder %s919_s12, 5 }
   0x4   : > { %p139_p2 = pnand %p730_p0, %p138_p1 }
   0x5   : > { %v207_v0 = vld [vmem:[%s1106_s1] sm:$0x1] (!%p139_p2)  ;;  %vm344_vm0 = vcmask (!%p139_p2), 1040384   ;;  %s731_s16 = sshll.u32 (!%p139_p2), %s726_s13, 5  ;;  %vm295_vm1 = vcmask (!%p139_p2), 15360   ;;  %vm637_vm2 = vcmask (!%p139_p2), 27648  }
   0x6   : > { %142 = sbr.rel (%p139_p2) target bundleno = 263 (0x107), region = 32  ;;  %887 = vmatprep.subr.msk.bf16.mxu0 (!%p139_p2), %vm344_vm0, %v207_v0  ;;  %888 = vmatprep.subr.msk.bf16.mxu1 (!%p139_p2), %vm344_vm0, %v207_v0  ;;  %v346_v1 = vsel (!%p139_p2), %vm344_vm0, %v207_v0, 0  ;;  %p163_p3 = scmp.lt.s32.totalorder (!%p139_p2), %s731_s16, 127  ;;  %v997_v18 = vld [vmem:[%s1107_s2] ss:$0 sm:$0xff] (!%p139_p2) }
   0x7   : > { %852 = vmatpush3.bf16.msra.mxu0 (!%p139_p2), %v346_v1  ;;  %886 = vmatpush3.bf16.msra.mxu1 (!%p139_p2), %v346_v1 }
   0xd   : > { %s1110_s16 = smov (!%p163_p3, %s731_s16), 127 }
   0xe   : > { %s732_s17 = sshll.u32 %s1110_s16, 2 }
   0xf   : > { %s960_s20 = scalar_lea.vmem %s1105_s0, %s732_s17  ;;  %s1005_s25 = scalar_lea.vmem %s1108_s3, %s732_s17 }
  0x10   : > { %v897_v2 = vld [vmem:[%s960_s20] sm:$0xff]   ;;  %v899_v4 = vld [vmem:[%s960_s20 + $0x8] sm:$0xff]   ;;  %v901_v6 = vld [vmem:[%s960_s20 + $0x10] sm:$0xff]  }
  0x11   : > { %v898_v3 = vld [vmem:[%s960_s20 + $0x40] sm:$0xff]   ;;  %853 = vmatprep.mubr.msk.bf16.mxu0 %vm295_vm1, %v897_v2  ;;  %v900_v5 = vld [vmem:[%s960_s20 + $0x48] sm:$0xff]   ;;  %v902_v7 = vld [vmem:[%s960_s20 + $0x50] sm:$0xff]  }
  0x12   : > { %869 = vmatprep.mubr.msk.bf16.mxu1 %vm295_vm1, %v898_v3  ;;  %854 = vmatmul.mubr.msk.bf16.vlgmr.msra.gmra.mrb[0].mxu0 %vm295_vm1, %v899_v4  ;;  %v903_v8 = vld [vmem:[%s960_s20 + $0x18] sm:$0xff]   ;;  %v905_v10 = vld [vmem:[%s960_s20 + $0x20] sm:$0xff]   ;;  %v907_v12 = vld [vmem:[%s960_s20 + $0x28] sm:$0xff]  }
  0x13   : > { %870 = vmatmul.mubr.msk.bf16.vlgmr.msra.gmra.mrb[0].mxu1 %vm295_vm1, %v900_v5  ;;  %857 = vmatprep.mubr.msk.bf16.mxu0 %vm295_vm1, %v901_v6  ;;  %v904_v9 = vld [vmem:[%s960_s20 + $0x58] sm:$0xff]   ;;  %v906_v11 = vld [vmem:[%s960_s20 + $0x60] sm:$0xff]   ;;  %v908_v13 = vld [vmem:[%s960_s20 + $0x68] sm:$0xff]  }
  0x14   : > { %873 = vmatprep.mubr.msk.bf16.mxu1 %vm295_vm1, %v902_v7  ;;  %v909_v14 = vld [vmem:[%s960_s20 + $0x30] sm:$0xff]   ;;  %v911_v16 = vld [vmem:[%s960_s20 + $0x38] sm:$0xff]  }
  0x15   : > { %v910_v15 = vld [vmem:[%s960_s20 + $0x70] sm:$0xff]   ;;  %v912_v17 = vld [vmem:[%s960_s20 + $0x78] sm:$0xff]  }
  0x1a   : > { %858 = vmatmul.mubr.msk.bf16.gmra.mrb[4].mxu0 %vm295_vm1, %v903_v8 }
  0x1b   : > { %874 = vmatmul.mubr.msk.bf16.gmra.mrb[4].mxu1 %vm295_vm1, %v904_v9  ;;  %861 = vmatprep.mubr.msk.bf16.mxu0 %vm295_vm1, %v905_v10 }
  0x1c   : > { %877 = vmatprep.mubr.msk.bf16.mxu1 %vm295_vm1, %v906_v11 }
  0x22   : > { %862 = vmatmul.mubr.msk.bf16.gmra.mrb[8].mxu0 %vm295_vm1, %v907_v12 }
  0x23   : > { %878 = vmatmul.mubr.msk.bf16.gmra.mrb[8].mxu1 %vm295_vm1, %v908_v13  ;;  %865 = vmatprep.mubr.msk.bf16.mxu0 %vm295_vm1, %v909_v14 }
  0x24   : > { %881 = vmatprep.mubr.msk.bf16.mxu1 %vm295_vm1, %v910_v15 }
  0x2a   : > { %866 = vmatmul.mubr.msk.bf16.gmra.mrb[12].mxu0 %vm295_vm1, %v911_v16 }
  0x2b   : > { %882 = vmatmul.mubr.msk.bf16.gmra.mrb[12].mxu1 %vm295_vm1, %v912_v17 }
  0xe5   : > { %v855_v19 = vpop.f32.mrb[0].mxu0 }
  0xe6   : > { %v391_v20 = vadd.f32 %v855_v19, %v997_v18  ;;  %v871_v21 = vpop.f32.mrb[0].mxu1  ;;  %v382_v22 = vpop.f32.mrb[1].mxu0 }
  0xe7   : > { %v455_v23 = vadd.f32 %v871_v21, %v997_v18  ;;  %v383_v24 = vadd.f32 %v997_v18, %v382_v22  ;;  %v446_v25 = vpop.f32.mrb[1].mxu1  ;;  %v856_v26 = vpop.f32.mrb[2].mxu0 }
  0xe8   : > { %v804_v27 = vpack.c.bf16 %v391_v20, %v391_v20  ;;  %v447_v28 = vadd.f32 %v997_v18, %v446_v25  ;;  %v394_v29 = vadd.f32 %v856_v26, %v997_v18  ;;  %v872_v30 = vpop.f32.mrb[2].mxu1  ;;  %v385_v31 = vpop.f32.mrb[3].mxu0 }
  0xe9   : > { %v820_v32 = vpack.c.bf16 %v455_v23, %v455_v23  ;;  %v802_v33 = vpack.c.bf16 %v383_v24, %v383_v24  ;;  %v458_v34 = vadd.f32 %v872_v30, %v997_v18  ;;  %v386_v35 = vadd.f32 %v997_v18, %v385_v31  ;;  %v449_v36 = vpop.f32.mrb[3].mxu1 }
  0xea   : > { %640 = vst.msk [vmem:[%s1005_s25 + $0x8] sm:$0xf] %vm637_vm2, %v804_v27  ;;  %v818_v37 = vpack.c.bf16 %v447_v28, %v447_v28  ;;  %v805_v38 = vpack.c.bf16 %v394_v29, %v394_v29  ;;  %v450_v39 = vadd.f32 %v997_v18, %v449_v36 }
  0xeb   : > { %656 = vst.msk [vmem:[%s1005_s25 + $0x48] sm:$0xf] %vm637_vm2, %v820_v32  ;;  %638 = vst.msk [vmem:[%s1005_s25] sm:$0xf] %vm637_vm2, %v802_v33  ;;  %v821_v40 = vpack.c.bf16 %v458_v34, %v458_v34  ;;  %v803_v41 = vpack.c.bf16 %v386_v35, %v386_v35 }
  0xec   : > { %654 = vst.msk [vmem:[%s1005_s25 + $0x40] sm:$0xf] %vm637_vm2, %v818_v37  ;;  %641 = vst.msk [vmem:[%s1005_s25 + $0xc] sm:$0xf] %vm637_vm2, %v805_v38  ;;  %v819_v42 = vpack.c.bf16 %v450_v39, %v450_v39 }
  0xed   : > { %657 = vst.msk [vmem:[%s1005_s25 + $0x4c] sm:$0xf] %vm637_vm2, %v821_v40  ;;  %639 = vst.msk [vmem:[%s1005_s25 + $0x4] sm:$0xf] %vm637_vm2, %v803_v41  ;;  %v859_v43 = vpop.f32.mrb[4].mxu0 }
  0xee   : > { %655 = vst.msk [vmem:[%s1005_s25 + $0x44] sm:$0xf] %vm637_vm2, %v819_v42  ;;  %v407_v44 = vadd.f32 %v859_v43, %v997_v18  ;;  %v875_v45 = vpop.f32.mrb[4].mxu1  ;;  %v398_v46 = vpop.f32.mrb[5].mxu0 }
  0xef   : > { %v471_v47 = vadd.f32 %v875_v45, %v997_v18  ;;  %v399_v48 = vadd.f32 %v997_v18, %v398_v46  ;;  %v462_v49 = vpop.f32.mrb[5].mxu1  ;;  %v860_v50 = vpop.f32.mrb[6].mxu0 }
  0xf0   : > { %v808_v51 = vpack.c.bf16 %v407_v44, %v407_v44  ;;  %v463_v52 = vadd.f32 %v997_v18, %v462_v49  ;;  %v410_v53 = vadd.f32 %v860_v50, %v997_v18  ;;  %v876_v54 = vpop.f32.mrb[6].mxu1  ;;  %v401_v55 = vpop.f32.mrb[7].mxu0 }
  0xf1   : > { %v824_v56 = vpack.c.bf16 %v471_v47, %v471_v47  ;;  %v806_v57 = vpack.c.bf16 %v399_v48, %v399_v48  ;;  %v474_v58 = vadd.f32 %v876_v54, %v997_v18  ;;  %v402_v59 = vadd.f32 %v997_v18, %v401_v55  ;;  %v465_v60 = vpop.f32.mrb[7].mxu1 }
  0xf2   : > { %644 = vst.msk [vmem:[%s1005_s25 + $0x18] sm:$0xf] %vm637_vm2, %v808_v51  ;;  %v822_v61 = vpack.c.bf16 %v463_v52, %v463_v52  ;;  %v809_v62 = vpack.c.bf16 %v410_v53, %v410_v53  ;;  %v466_v63 = vadd.f32 %v997_v18, %v465_v60 }
  0xf3   : > { %660 = vst.msk [vmem:[%s1005_s25 + $0x58] sm:$0xf] %vm637_vm2, %v824_v56  ;;  %642 = vst.msk [vmem:[%s1005_s25 + $0x10] sm:$0xf] %vm637_vm2, %v806_v57  ;;  %v825_v0 = vpack.c.bf16 %v474_v58, %v474_v58  ;;  %v807_v1 = vpack.c.bf16 %v402_v59, %v402_v59 }
  0xf4   : > { %658 = vst.msk [vmem:[%s1005_s25 + $0x50] sm:$0xf] %vm637_vm2, %v822_v61  ;;  %645 = vst.msk [vmem:[%s1005_s25 + $0x1c] sm:$0xf] %vm637_vm2, %v809_v62  ;;  %v823_v2 = vpack.c.bf16 %v466_v63, %v466_v63 }
  0xf5   : > { %661 = vst.msk [vmem:[%s1005_s25 + $0x5c] sm:$0xf] %vm637_vm2, %v825_v0  ;;  %643 = vst.msk [vmem:[%s1005_s25 + $0x14] sm:$0xf] %vm637_vm2, %v807_v1  ;;  %v863_v3 = vpop.f32.mrb[8].mxu0 }
  0xf6   : > { %659 = vst.msk [vmem:[%s1005_s25 + $0x54] sm:$0xf] %vm637_vm2, %v823_v2  ;;  %v423_v4 = vadd.f32 %v863_v3, %v997_v18  ;;  %v879_v5 = vpop.f32.mrb[8].mxu1  ;;  %v414_v6 = vpop.f32.mrb[9].mxu0 }
  0xf7   : > { %v487_v7 = vadd.f32 %v879_v5, %v997_v18  ;;  %v415_v8 = vadd.f32 %v997_v18, %v414_v6  ;;  %v478_v9 = vpop.f32.mrb[9].mxu1  ;;  %v864_v10 = vpop.f32.mrb[10].mxu0 }
  0xf8   : > { %v812_v11 = vpack.c.bf16 %v423_v4, %v423_v4  ;;  %v479_v12 = vadd.f32 %v997_v18, %v478_v9  ;;  %v426_v13 = vadd.f32 %v864_v10, %v997_v18  ;;  %v880_v14 = vpop.f32.mrb[10].mxu1  ;;  %v417_v15 = vpop.f32.mrb[11].mxu0 }
  0xf9   : > { %v828_v16 = vpack.c.bf16 %v487_v7, %v487_v7  ;;  %v810_v17 = vpack.c.bf16 %v415_v8, %v415_v8  ;;  %v490_v19 = vadd.f32 %v880_v14, %v997_v18  ;;  %v418_v20 = vadd.f32 %v997_v18, %v417_v15  ;;  %v481_v21 = vpop.f32.mrb[11].mxu1 }
  0xfa   : > { %648 = vst.msk [vmem:[%s1005_s25 + $0x28] sm:$0xf] %vm637_vm2, %v812_v11  ;;  %v826_v22 = vpack.c.bf16 %v479_v12, %v479_v12  ;;  %v813_v23 = vpack.c.bf16 %v426_v13, %v426_v13  ;;  %v482_v24 = vadd.f32 %v997_v18, %v481_v21 }
  0xfb   : > { %664 = vst.msk [vmem:[%s1005_s25 + $0x68] sm:$0xf] %vm637_vm2, %v828_v16  ;;  %646 = vst.msk [vmem:[%s1005_s25 + $0x20] sm:$0xf] %vm637_vm2, %v810_v17  ;;  %v829_v25 = vpack.c.bf16 %v490_v19, %v490_v19  ;;  %v811_v26 = vpack.c.bf16 %v418_v20, %v418_v20 }
  0xfc   : > { %662 = vst.msk [vmem:[%s1005_s25 + $0x60] sm:$0xf] %vm637_vm2, %v826_v22  ;;  %649 = vst.msk [vmem:[%s1005_s25 + $0x2c] sm:$0xf] %vm637_vm2, %v813_v23  ;;  %v827_v27 = vpack.c.bf16 %v482_v24, %v482_v24 }
  0xfd   : > { %665 = vst.msk [vmem:[%s1005_s25 + $0x6c] sm:$0xf] %vm637_vm2, %v829_v25  ;;  %647 = vst.msk [vmem:[%s1005_s25 + $0x24] sm:$0xf] %vm637_vm2, %v811_v26  ;;  %v867_v28 = vpop.f32.mrb[12].mxu0 }
  0xfe   : > { %663 = vst.msk [vmem:[%s1005_s25 + $0x64] sm:$0xf] %vm637_vm2, %v827_v27  ;;  %v439_v29 = vadd.f32 %v867_v28, %v997_v18  ;;  %v883_v30 = vpop.f32.mrb[12].mxu1  ;;  %v430_v31 = vpop.f32.mrb[13].mxu0 }
  0xff   : > { %v503_v32 = vadd.f32 %v883_v30, %v997_v18  ;;  %v431_v33 = vadd.f32 %v997_v18, %v430_v31  ;;  %v494_v34 = vpop.f32.mrb[13].mxu1  ;;  %v868_v35 = vpop.f32.mrb[14].mxu0 }
 0x100   : > { %v816_v36 = vpack.c.bf16 %v439_v29, %v439_v29  ;;  %v495_v37 = vadd.f32 %v997_v18, %v494_v34  ;;  %v442_v38 = vadd.f32 %v868_v35, %v997_v18  ;;  %v884_v39 = vpop.f32.mrb[14].mxu1  ;;  %v433_v40 = vpop.f32.mrb[15].mxu0 }
 0x101   : > { %v832_v41 = vpack.c.bf16 %v503_v32, %v503_v32  ;;  %v814_v42 = vpack.c.bf16 %v431_v33, %v431_v33  ;;  %v506_v43 = vadd.f32 %v884_v39, %v997_v18  ;;  %v434_v44 = vadd.f32 %v997_v18, %v433_v40  ;;  %v497_v45 = vpop.f32.mrb[15].mxu1 }
 0x102   : > { %652 = vst.msk [vmem:[%s1005_s25 + $0x38] sm:$0xf] %vm637_vm2, %v816_v36  ;;  %v830_v46 = vpack.c.bf16 %v495_v37, %v495_v37  ;;  %v817_v47 = vpack.c.bf16 %v442_v38, %v442_v38  ;;  %v498_v48 = vadd.f32 %v997_v18, %v497_v45 }
 0x103   : > { %668 = vst.msk [vmem:[%s1005_s25 + $0x78] sm:$0xf] %vm637_vm2, %v832_v41  ;;  %650 = vst.msk [vmem:[%s1005_s25 + $0x30] sm:$0xf] %vm637_vm2, %v814_v42  ;;  %v833_v49 = vpack.c.bf16 %v506_v43, %v506_v43  ;;  %v815_v50 = vpack.c.bf16 %v434_v44, %v434_v44 }
 0x104   : > { %666 = vst.msk [vmem:[%s1005_s25 + $0x70] sm:$0xf] %vm637_vm2, %v830_v46  ;;  %653 = vst.msk [vmem:[%s1005_s25 + $0x3c] sm:$0xf] %vm637_vm2, %v817_v47  ;;  %v831_v51 = vpack.c.bf16 %v498_v48, %v498_v48 }
 0x105   : > { %669 = vst.msk [vmem:[%s1005_s25 + $0x7c] sm:$0xf] %vm637_vm2, %v833_v49  ;;  %651 = vst.msk [vmem:[%s1005_s25 + $0x34] sm:$0xf] %vm637_vm2, %v815_v50 }
 0x106   : > { %667 = vst.msk [vmem:[%s1005_s25 + $0x74] sm:$0xf] %vm637_vm2, %v831_v51 }
 0x107 PF: > { %s13_s12 = sadd.s32 1, %s919_s12  }
 0x108   : > { %p10_p4 = scmp.ge.s32.totalorder %s13_s12, 6  }
 0x10a   :  { %12 = sbr.rel (!%p10_p4) target bundleno = 1 (0x1), region = 62 }

// kernel: cam_unet_forward.20
= control target key start
LH: loop header
LB: loop body
LE: loop exit
PB: predicated region body
PF: predicated region fallthrough
CT: control target
= control target key end

     0   :  { %s1171_s12 = smov 0   ;;  %s1575_s0 = inlined_call_operand.vmem [shape: bf16[2,256,8], index: 0, kind: input, shape index: {}]   ;;  %s1576_s1 = inlined_call_operand.vmem [shape: f32[8,4], index: 1, kind: input, shape index: {}]   ;;  %s1577_s2 = inlined_call_operand.vmem [shape: f32[4,8], index: 2, kind: input, shape index: {}]   ;;  %s1578_s3 = inlined_call_operand.vmem [shape: bf16[2,256,8], index: 3, kind: output, shape index: {}]  }
   0x1 LB: > { %s934_s13 = sadd.s32 4294967295, %s1147_s12   ;;  %p938_p0 = scmp.ge.s32.totalorder %s1147_s12, 1  ;;  %s1147_s12 = sphi %s1171_s12, %s13_s12  }
   0x2   : > { %p137_p1 = scmp.lt.s32.totalorder %s1147_s12, 3 }
   0x4   : > { %p138_p2 = pnand %p938_p0, %p137_p1 }
   0x5   : > { %v1182_v0 = vld [vmem:[%s1576_s1] sm:$0xff] (!%p138_p2)  ;;  %p161_p3 = scmp.lt.s32.totalorder (!%p138_p2), %s934_s13, 1  ;;  %v1149_v1 = vmov (!%p138_p2), 0.0   ;;  %vm1150_vm0 = vmmov (!%p138_p2), 0   ;;  %vm235_vm1 = vcmask (!%p138_p2), 64512   ;;  %vm529_vm2 = vcmask (!%p138_p2), 1043456  }
   0x6   : > { %141 = sbr.rel (%p138_p2) target bundleno = 589 (0x24d), region = 32  ;;  %1105 = vmatprep.subr.mxu1 (!%p138_p2), %v1149_v1  ;;  %1107 = vmatprep.mubr.msk.f32.mxu1 (!%p138_p2), %vm1150_vm0, %v1149_v1  ;;  %vm525_vm3 = vcmask (!%p138_p2), 31744   ;;  %vm846_vm4 = vcmask (!%p138_p2), 60416  }
   0x7   : > { %1106 = vmatpush3.msra.mxu1 (!%p138_p2), %v1182_v0  ;;  %1115 = vmatprep.subr.mxu0 (!%p138_p2), %v1149_v1 }
   0x8   : > { %1110 = vmatprep.subr.mxu1 (!%p138_p2), %v1149_v1  ;;  %1117 = vmatprep.mubr.msk.f32.mxu0 (!%p138_p2), %vm1150_vm0, %v1149_v1 }
   0xd   : > { %s1580_s13 = smov (!%p161_p3, %s934_s13), 1 }
   0xe   : > { %s984_s16 = sshll.u32 %s1580_s13, 7 }
   0xf   : > { %s1200_s19 = scalar_lea.vmem %s1575_s0, %s984_s16  ;;  %s1470_s24 = scalar_lea.vmem %s1578_s3, %s984_s16 }
  0x10   : > { %v1019_v2 = vld [vmem:[%s1200_s19] sm:$0xff]   ;;  %v1082_v3 = vld [vmem:[%s1200_s19 + $0x8] sm:$0xff]   ;;  %v1083_v7 = vld [vmem:[%s1200_s19 + $0x10] sm:$0xff]  }
  0x11   : > { %v1204_v4 = vunpack.c.l.bf16 %v1019_v2  ;;  %v1206_v5 = vunpack.c.h.bf16 %v1019_v2  ;;  %v1208_v6 = vunpack.c.l.bf16 %v1082_v3  ;;  %v1211_v8 = vunpack.c.h.bf16 %v1082_v3  ;;  %v1084_v13 = vld [vmem:[%s1200_s19 + $0x18] sm:$0xff]   ;;  %v1085_v20 = vld [vmem:[%s1200_s19 + $0x20] sm:$0xff]   ;;  %v1086_v27 = vld [vmem:[%s1200_s19 + $0x28] sm:$0xff]  }
  0x12   : > { %v1213_v9 = vunpack.c.l.bf16 %v1083_v7  ;;  %v1222_v15 = vunpack.c.h.bf16 %v1083_v7  ;;  %v1226_v18 = vunpack.c.l.bf16 %v1084_v13  ;;  %v1231_v22 = vunpack.c.h.bf16 %v1084_v13  ;;  %v1087_v33 = vld [vmem:[%s1200_s19 + $0x30] sm:$0xff]   ;;  %v1088_v40 = vld [vmem:[%s1200_s19 + $0x38] sm:$0xff]   ;;  %v1089_v56 = vld [vmem:[%s1200_s19 + $0x40] sm:$0xff]  }
  0x13   : > { %v236_v10 = vsel %vm235_vm1, %v1204_v4, 0.0  ;;  %v237_v11 = vsel %vm235_vm1, %v1206_v5, 0.0  ;;  %v239_v12 = vsel %vm235_vm1, %v1208_v6, 0.0  ;;  %v241_v16 = vsel %vm235_vm1, %v1211_v8, 0.0  ;;  %v1090_v13 = vld [vmem:[%s1200_s19 + $0x48] sm:$0xff]  }
  0x14   : > { %v238_v14 = vadd.f32 %v237_v11, %v236_v10  ;;  %v243_v19 = vsel %vm235_vm1, %v1213_v9, 0.0  ;;  %v245_v23 = vsel %vm235_vm1, %v1222_v15, 0.0  ;;  %v1235_v25 = vunpack.c.l.bf16 %v1085_v20 }
  0x15   : > { %v247_v26 = vsel %vm235_vm1, %v1226_v18, 0.0  ;;  %v1240_v29 = vunpack.c.h.bf16 %v1085_v20  ;;  %v249_v30 = vsel %vm235_vm1, %v1231_v22, 0.0  ;;  %v1244_v32 = vunpack.c.l.bf16 %v1086_v27 }
  0x16   : > { %v240_v17 = vadd.f32 %v239_v12, %v238_v14  ;;  %v251_v34 = vsel %vm235_vm1, %v1235_v25, 0.0  ;;  %v1249_v36 = vunpack.c.h.bf16 %v1086_v27  ;;  %v1253_v38 = vunpack.c.l.bf16 %v1087_v33 }
  0x17   : > { %v253_v37 = vsel %vm235_vm1, %v1240_v29, 0.0  ;;  %v255_v41 = vsel %vm235_vm1, %v1244_v32, 0.0  ;;  %v306_v42 = vsel %vm235_vm1, %v1204_v4, -inf  ;;  %v307_v43 = vsel %vm235_vm1, %v1206_v5, -inf }
  0x18   : > { %v242_v21 = vadd.f32 %v241_v16, %v240_v17  ;;  %v308_v44 = vsel %vm235_vm1, %v1208_v6, -inf  ;;  %v310_v46 = vsel %vm235_vm1, %v1213_v9, -inf  ;;  %v312_v47 = vsel %vm235_vm1, %v1222_v15, -inf }
  0x19   : > { %v314_v48 = vsel %vm235_vm1, %v1226_v18, -inf  ;;  %v1270_v49 = vunpack.c.h.bf16 %v1087_v33  ;;  %v257_v50 = vsel %vm235_vm1, %v1249_v36, 0.0  ;;  %v309_v51 = vsel %vm235_vm1, %v1211_v8, -inf }
  0x1a   : > { %v244_v24 = vadd.f32 %v243_v19, %v242_v21  ;;  %v316_v52 = vsel %vm235_vm1, %v1231_v22, -inf  ;;  %v1278_v53 = vunpack.c.l.bf16 %v1088_v40  ;;  %v259_v55 = vsel %vm235_vm1, %v1253_v38, 0.0 }
  0x1b   : > { %v311_v57 = vmax.f32 %v306_v42, %v310_v46  ;;  %v313_v58 = vmax.f32 %v307_v43, %v312_v47  ;;  %v315_v59 = vmax.f32 %v308_v44, %v314_v48  ;;  %v318_v60 = vsel %vm235_vm1, %v1235_v25, -inf }
  0x1c   : > { %v246_v28 = vadd.f32 %v245_v23, %v244_v24  ;;  %v317_v62 = vmax.f32 %v309_v51, %v316_v52  ;;  %v320_v63 = vsel %vm235_vm1, %v1240_v29, -inf  ;;  %v322_v2 = vsel %vm235_vm1, %v1244_v32, -inf }
  0x1d   : > { %v1289_v3 = vunpack.c.h.bf16 %v1088_v40  ;;  %v261_v7 = vsel %vm235_vm1, %v1270_v49, 0.0  ;;  %v324_v10 = vsel %vm235_vm1, %v1249_v36, -inf  ;;  %v1295_v11 = vunpack.c.l.bf16 %v1089_v56 }
  0x1e   : > { %v248_v31 = vadd.f32 %v247_v26, %v246_v28  ;;  %v263_v14 = vsel %vm235_vm1, %v1278_v53, 0.0  ;;  %v319_v16 = vmax.f32 %v311_v57, %v318_v60  ;;  %v321_v17 = vmax.f32 %v313_v58, %v320_v63  ;;  %v1094_v58 = vld [vmem:[%s1200_s19 + $0x68] sm:$0xff]  }
  0x1f   : > { %v323_v19 = vmax.f32 %v315_v59, %v322_v2  ;;  %v325_v21 = vmax.f32 %v317_v62, %v324_v10  ;;  %v326_v23 = vsel %vm235_vm1, %v1253_v38, -inf  ;;  %v328_v24 = vsel %vm235_vm1, %v1270_v49, -inf }
  0x20   : > { %v250_v35 = vadd.f32 %v249_v30, %v248_v31  ;;  %v1304_v26 = vunpack.c.h.bf16 %v1089_v56  ;;  %v265_v27 = vsel %vm235_vm1, %v1289_v3, 0.0  ;;  %v330_v28 = vsel %vm235_vm1, %v1278_v53, -inf  ;;  %v1093_v56 = vld [vmem:[%s1200_s19 + $0x60] sm:$0xff]  }
  0x21   : > { %v332_v30 = vsel %vm235_vm1, %v1289_v3, -inf  ;;  %v1312_v31 = vunpack.c.l.bf16 %v1090_v13  ;;  %v1314_v33 = vunpack.c.h.bf16 %v1090_v13  ;;  %v327_v40 = vmax.f32 %v319_v16, %v326_v23  ;;  %v1095_v23 = vld [vmem:[%s1200_s19 + $0x70] sm:$0xff]  }
  0x22   : > { %v252_v39 = vadd.f32 %v251_v34, %v250_v35  ;;  %v1091_v34 = vld [vmem:[%s1200_s19 + $0x50] sm:$0xff]   ;;  %v334_v42 = vsel %vm235_vm1, %v1295_v11, -inf  ;;  %v331_v44 = vmax.f32 %v323_v19, %v330_v28  ;;  %v336_v46 = vsel %vm235_vm1, %v1304_v26, -inf }
  0x23   : > { %v1324_v47 = vunpack.c.l.bf16 %v1091_v34  ;;  %v269_v48 = vsel %vm235_vm1, %v1304_v26, 0.0  ;;  %v340_v51 = vsel %vm235_vm1, %v1314_v33, -inf  ;;  %v1332_v52 = vunpack.c.h.bf16 %v1091_v34 }
  0x24   : > { %v254_v45 = vadd.f32 %v253_v37, %v252_v39  ;;  %v1092_v37 = vld [vmem:[%s1200_s19 + $0x58] sm:$0xff]   ;;  %v267_v39 = vsel %vm235_vm1, %v1295_v11, 0.0  ;;  %v271_v59 = vsel %vm235_vm1, %v1312_v31, 0.0  ;;  %v335_v60 = vmax.f32 %v327_v40, %v334_v42 }
  0x25   : > { %v342_v62 = vsel %vm235_vm1, %v1324_v47, -inf  ;;  %v344_v10 = vsel %vm235_vm1, %v1332_v52, -inf  ;;  %v273_v13 = vsel %vm235_vm1, %v1314_v33, 0.0  ;;  %v1356_v19 = vunpack.c.l.bf16 %v1094_v58 }
  0x26   : > { %v256_v54 = vadd.f32 %v255_v41, %v254_v45  ;;  %v329_v41 = vmax.f32 %v321_v17, %v328_v24  ;;  %v333_v45 = vmax.f32 %v325_v21, %v332_v30  ;;  %v1354_v17 = vunpack.c.h.bf16 %v1093_v56  ;;  %v1096_v24 = vld [vmem:[%s1200_s19 + $0x78] sm:$0xff]  }
  0x27   : > { %v343_v28 = vmax.f32 %v335_v60, %v342_v62  ;;  %v354_v42 = vsel %vm235_vm1, %v1356_v19, -inf }
  0x28   : > { %v258_v61 = vadd.f32 %v257_v50, %v256_v54  ;;  %v338_v50 = vsel %vm235_vm1, %v1312_v31, -inf  ;;  %v1334_v54 = vunpack.c.l.bf16 %v1092_v37  ;;  %v352_v40 = vsel %vm235_vm1, %v1354_v17, -inf }
  0x29   : > { %v339_v2 = vmax.f32 %v331_v44, %v338_v50  ;;  %v1374_v44 = vunpack.c.l.bf16 %v1095_v23  ;;  %v1380_v50 = vunpack.c.h.bf16 %v1096_v24 }
  0x2a   : > { %v260_v12 = vadd.f32 %v259_v55, %v258_v61  ;;  %v1336_v55 = vunpack.c.h.bf16 %v1092_v37  ;;  %v337_v61 = vmax.f32 %v329_v41, %v336_v46  ;;  %v277_v41 = vsel %vm235_vm1, %v1332_v52, 0.0 }
  0x2b   : > { %v1378_v46 = vunpack.c.l.bf16 %v1096_v24 }
  0x2c   : > { %v262_v20 = vadd.f32 %v261_v7, %v260_v12  ;;  %v341_v7 = vmax.f32 %v333_v45, %v340_v51  ;;  %v1346_v12 = vunpack.c.l.bf16 %v1093_v56  ;;  %v348_v16 = vsel %vm235_vm1, %v1336_v55, -inf }
  0x2d   : > { %v345_v30 = vmax.f32 %v337_v61, %v344_v10  ;;  %v1376_v45 = vunpack.c.h.bf16 %v1095_v23  ;;  %v279_v51 = vsel %vm235_vm1, %v1334_v54, 0.0  ;;  %v358_v61 = vsel %vm235_vm1, %v1374_v44, -inf }
  0x2e   : > { %v264_v35 = vadd.f32 %v263_v14, %v262_v20  ;;  %v346_v14 = vsel %vm235_vm1, %v1334_v54, -inf  ;;  %v1358_v20 = vunpack.c.h.bf16 %v1094_v58  ;;  %v350_v34 = vsel %vm235_vm1, %v1346_v12, -inf }
  0x2f   : > { %v347_v37 = vmax.f32 %v339_v2, %v346_v14  ;;  %v351_v56 = vmax.f32 %v343_v28, %v350_v34  ;;  %v281_v62 = vsel %vm235_vm1, %v1336_v55, 0.0  ;;  %v362_v2 = vsel %vm235_vm1, %v1378_v46, -inf }
  0x30   : > { %v266_v43 = vadd.f32 %v265_v27, %v264_v35  ;;  %v275_v27 = vsel %vm235_vm1, %v1324_v47, 0.0 }
  0x31   : > { %v359_v14 = vmax.f32 %v351_v56, %v358_v61  ;;  %v295_v56 = vsel %vm235_vm1, %v1378_v46, 0.0 }
  0x32   : > { %v268_v57 = vadd.f32 %v267_v39, %v266_v43  ;;  %v349_v39 = vmax.f32 %v341_v7, %v348_v16  ;;  %v356_v43 = vsel %vm235_vm1, %v1358_v20, -inf  ;;  %v364_v7 = vsel %vm235_vm1, %v1380_v50, -inf }
  0x34   : > { %v270_v63 = vadd.f32 %v269_v48, %v268_v57  ;;  %v353_v57 = vmax.f32 %v345_v30, %v352_v40  ;;  %v357_v60 = vmax.f32 %v349_v39, %v356_v43  ;;  %v287_v30 = vsel %vm235_vm1, %v1356_v19, 0.0 }
  0x35   : > { %v289_v39 = vsel %vm235_vm1, %v1358_v20, 0.0 }
  0x36   : > { %v272_v21 = vadd.f32 %v271_v59, %v270_v63  ;;  %v355_v59 = vmax.f32 %v347_v37, %v354_v42  ;;  %v360_v63 = vsel %vm235_vm1, %v1376_v45, -inf  ;;  %v365_v24 = vmax.f32 %v357_v60, %v364_v7 }
  0x38   : > { %v274_v35 = vadd.f32 %v273_v13, %v272_v21  ;;  %v283_v13 = vsel %vm235_vm1, %v1346_v12, 0.0  ;;  %v361_v21 = vmax.f32 %v353_v57, %v360_v63  ;;  %v363_v23 = vmax.f32 %v355_v59, %v362_v2 }
  0x39   : > { %v297_v59 = vsel %vm235_vm1, %v1380_v50, 0.0 }
  0x3a   : > { %v276_v48 = vadd.f32 %v275_v27, %v274_v35  ;;  %v285_v27 = vsel %vm235_vm1, %v1354_v17, 0.0  ;;  %v366_v35 = vmax.f32 %v359_v14, %v361_v21  ;;  %v367_v37 = vmax.f32 %v363_v23, %v365_v24 }
  0x3c   : > { %v278_v58 = vadd.f32 %v277_v41, %v276_v48  ;;  %v291_v41 = vsel %vm235_vm1, %v1374_v44, 0.0  ;;  %v368_v43 = vmax.f32 %v366_v35, %v367_v37  ;;  %v293_v48 = vsel %vm235_vm1, %v1376_v45, 0.0 }
  0x3e   : > { %v280_v10 = vadd.f32 %v279_v51, %v278_v58  ;;  %v369_v58 = vrot.slane %v368_v43, 4 }
  0x40   : > { %v282_v16 = vadd.f32 %v281_v62, %v280_v10  ;;  %v370_v62 = vmax.f32 %v368_v43, %v369_v58 }
  0x42   : > { %v284_v28 = vadd.f32 %v283_v13, %v282_v16  ;;  %v371_v7 = vrot.slane %v370_v62, 2 }
  0x44   : > { %v286_v34 = vadd.f32 %v285_v27, %v284_v28  ;;  %v372_v14 = vmax.f32 %v370_v62, %v371_v7  ;;  %v450_v28 = vld [vmem:[%s1577_s2] sm:$0xf] }
  0x45   : > { %1116 = vmatpush3.msk.msra.mxu0 %vm529_vm2, %v450_v28 }
  0x46   : > { %v288_v40 = vadd.f32 %v287_v30, %v286_v34  ;;  %v373_v23 = vrot.slane %v372_v14, 1  ;;  %1120 = vmatprep.subr.mxu0 %v1149_v1 }
  0x48   : > { %v290_v42 = vadd.f32 %v289_v39, %v288_v40  ;;  %v374_v27 = vmax.f32 %v372_v14, %v373_v23 }
  0x4a   : > { %v292_v51 = vadd.f32 %v291_v41, %v290_v42 }
  0x4c   : > { %v294_v57 = vadd.f32 %v293_v48, %v292_v51  ;;  %v682_v51 = vlaneseq }
  0x4e   : > { %v296_v60 = vadd.f32 %v295_v56, %v294_v57  ;;  %v683_v56 = vshrl.u32 %v682_v51, 7 }
  0x50   : > { %v298_v61 = vadd.f32 %v297_v59, %v296_v60  ;;  %v684_v57 = vsub.s32 0, %v683_v56 }
  0x52   : > { %v299_v63 = vrot.slane %v298_v61, 4 }
  0x54   : > { %v300_v2 = vadd.f32 %v299_v63, %v298_v61 }
  0x56   : > { %v301_v10 = vrot.slane %v300_v2, 2 }
  0x58   : > { %v302_v13 = vadd.f32 %v301_v10, %v300_v2 }
  0x5a   : > { %v303_v16 = vrot.slane %v302_v13, 1 }
  0x5c   : > { %v304_v21 = vadd.f32 %v303_v16, %v302_v13 }
  0x5e   : > { %v305_v24 = vmul.f32 0.00390625, %v304_v21 }
  0x60   : > { %1108 = vmatmul.mubr.msk.f32.vlgmr.msra.gmra.mrb[0].mxu1 %vm235_vm1, %v305_v24 }
  0x61   : > { %1111 = vmatpush3.msra.mxu1 %v1182_v0  ;;  %1112 = vmatprep.mubr.msk.f32.mxu1 %vm1150_vm0, %v1149_v1 }
  0x64   : > { %1113 = vmatmul.mubr.msk.f32.vlgmr.msra.gmra.mrb[2].mxu1 %vm235_vm1, %v374_v27 }
 0x133   : > { %v445_v30 = vpop.f32.mrb[0].mxu1 }
 0x134   : > { %v1109_v34 = vpop.f32.mrb[1].mxu1  ;;  %v449_v0 = vmax.f32 %v445_v30, 0.0 }
 0x137   : > { %v520_v35 = vpop.f32.mrb[2].mxu1 }
 0x138   : > { %v524_v37 = vmax.f32 %v520_v35, 0.0  ;;  %v1114_v39 = vpop.f32.mrb[3].mxu1 }
 0x13a   : > { %1118 = vmatmul.mubr.msk.f32.vlgmr.msra.gmra.mrb[0].mxu0 %vm525_vm3, %v524_v37 }
 0x13b   : > { %1121 = vmatpush3.msk.msra.mxu0 %vm529_vm2, %v450_v28  ;;  %1122 = vmatprep.mubr.msk.f32.mxu0 %vm1150_vm0, %v1149_v1 }
 0x142   : > { %1123 = vmatmul.mubr.msk.f32.vlgmr.msra.gmra.mrb[0].mxu0 %vm525_vm3, %v449_v0 }
 0x215   : > { %v672_v40 = vpop.f32.mrb[0].mxu0 }
 0x216   : > { %v949_v41 = vmul.f32 -1.442695, %v672_v40  ;;  %v1124_v42 = vpop.f32.mrb[1].mxu0 }
 0x218   : > { %1137 = vpow2.f32 %v949_v41 }
 0x222   : > { %v1138_v43 = vpop.eup %1137 }
 0x223   : > { %v679_v48 = vadd.f32 1.0, %v1138_v43 }
 0x225   : > { %1139 = vrcp.f32 %v679_v48 }
 0x22f   : > { %v1140_v58 = vpop.eup %1139 }
 0x230   : > { %v685_v59 = vrot.slane %v1140_v58, %v684_v57 }
 0x232   : > { %v686_v60 = vmul.f32 %v1204_v4, %v685_v59  ;;  %v687_v61 = vmul.f32 %v1206_v5, %v685_v59  ;;  %v688_v1 = vmul.f32 %v1208_v6, %v685_v59  ;;  %v689_v62 = vmul.f32 %v1211_v8, %v685_v59 }
 0x233   : > { %v690_v63 = vmul.f32 %v1213_v9, %v685_v59  ;;  %v691_v2 = vmul.f32 %v1222_v15, %v685_v59  ;;  %v692_v7 = vmul.f32 %v1226_v18, %v685_v59  ;;  %v693_v10 = vmul.f32 %v1231_v22, %v685_v59 }
 0x234   : > { %v694_v13 = vmul.f32 %v1235_v25, %v685_v59  ;;  %v695_v14 = vmul.f32 %v1240_v29, %v685_v59  ;;  %v696_v4 = vmul.f32 %v1244_v32, %v685_v59  ;;  %v697_v5 = vmul.f32 %v1249_v36, %v685_v59 }
 0x235   : > { %v698_v6 = vmul.f32 %v1253_v38, %v685_v59  ;;  %v699_v8 = vmul.f32 %v1270_v49, %v685_v59  ;;  %v700_v9 = vmul.f32 %v1278_v53, %v685_v59  ;;  %v701_v15 = vmul.f32 %v1289_v3, %v685_v59 }
 0x236   : > { %v702_v18 = vmul.f32 %v1295_v11, %v685_v59  ;;  %v703_v22 = vmul.f32 %v1304_v26, %v685_v59  ;;  %v704_v25 = vmul.f32 %v1312_v31, %v685_v59  ;;  %v705_v29 = vmul.f32 %v1314_v33, %v685_v59 }
 0x237   : > { %v1442_v32 = vmul.f32 %v1324_v47, %v685_v59  ;;  %v1445_v36 = vmul.f32 %v1332_v52, %v685_v59  ;;  %v1448_v38 = vmul.f32 %v1334_v54, %v685_v59  ;;  %v1451_v49 = vmul.f32 %v1336_v55, %v685_v59 }
 0x238   : > { %v1454_v53 = vmul.f32 %v1346_v12, %v685_v59  ;;  %v1457_v3 = vmul.f32 %v1354_v17, %v685_v59  ;;  %v1460_v11 = vmul.f32 %v1356_v19, %v685_v59  ;;  %v1463_v26 = vmul.f32 %v1358_v20, %v685_v59 }
 0x239   : > { %v1473_v31 = vmul.f32 %v1374_v44, %v685_v59  ;;  %v1476_v33 = vmul.f32 %v1376_v45, %v685_v59  ;;  %v1479_v47 = vmul.f32 %v1378_v46, %v685_v59  ;;  %v1482_v52 = vmul.f32 %v1380_v50, %v685_v59 }
 0x23a   : > { %v986_v54 = vpack.c.bf16 %v686_v60, %v686_v60  ;;  %v987_v55 = vpack.c.bf16 %v687_v61, %v687_v61  ;;  %v988_v12 = vpack.c.bf16 %v688_v1, %v688_v1  ;;  %v989_v17 = vpack.c.bf16 %v689_v62, %v689_v62 }
 0x23b   : > { %v990_v19 = vpack.c.bf16 %v690_v63, %v690_v63  ;;  %v991_v20 = vpack.c.bf16 %v691_v2, %v691_v2  ;;  %v992_v44 = vpack.c.bf16 %v692_v7, %v692_v7  ;;  %v993_v45 = vpack.c.bf16 %v693_v10, %v693_v10 }
 0x23c   : > { %v994_v16 = vpack.c.bf16 %v694_v13, %v694_v13  ;;  %v995_v46 = vpack.c.bf16 %v695_v14, %v695_v14  ;;  %v996_v21 = vpack.c.bf16 %v696_v4, %v696_v4  ;;  %v997_v23 = vpack.c.bf16 %v697_v5, %v697_v5  ;;  %847 = vst.msk [vmem:[%s1470_s24] sm:$0xf] %vm846_vm4, %v986_v54 }
 0x23d   : > { %848 = vst.msk [vmem:[%s1470_s24 + $0x4] sm:$0xf] %vm846_vm4, %v987_v55  ;;  %849 = vst.msk [vmem:[%s1470_s24 + $0x8] sm:$0xf] %vm846_vm4, %v988_v12  ;;  %v998_v50 = vpack.c.bf16 %v698_v6, %v698_v6  ;;  %v999_v24 = vpack.c.bf16 %v699_v8, %v699_v8  ;;  %v1000_v27 = vpack.c.bf16 %v700_v9, %v700_v9 }
 0x23e   : > { %850 = vst.msk [vmem:[%s1470_s24 + $0xc] sm:$0xf] %vm846_vm4, %v989_v17  ;;  %v1001_v28 = vpack.c.bf16 %v701_v15, %v701_v15  ;;  %851 = vst.msk [vmem:[%s1470_s24 + $0x10] sm:$0xf] %vm846_vm4, %v990_v19  ;;  %v1002_v30 = vpack.c.bf16 %v702_v18, %v702_v18  ;;  %v1003_v34 = vpack.c.bf16 %v703_v22, %v703_v22 }
 0x23f   : > { %852 = vst.msk [vmem:[%s1470_s24 + $0x14] sm:$0xf] %vm846_vm4, %v991_v20  ;;  %853 = vst.msk [vmem:[%s1470_s24 + $0x18] sm:$0xf] %vm846_vm4, %v992_v44  ;;  %v1004_v35 = vpack.c.bf16 %v704_v25, %v704_v25  ;;  %v1005_v37 = vpack.c.bf16 %v705_v29, %v705_v29  ;;  %v1006_v39 = vpack.c.bf16 %v1442_v32, %v1442_v32 }
 0x240   : > { %854 = vst.msk [vmem:[%s1470_s24 + $0x1c] sm:$0xf] %vm846_vm4, %v993_v45  ;;  %855 = vst.msk [vmem:[%s1470_s24 + $0x20] sm:$0xf] %vm846_vm4, %v994_v16  ;;  %v1007_v0 = vpack.c.bf16 %v1445_v36, %v1445_v36  ;;  %v1008_v40 = vpack.c.bf16 %v1448_v38, %v1448_v38  ;;  %v1009_v41 = vpack.c.bf16 %v1451_v49, %v1451_v49 }
 0x241   : > { %856 = vst.msk [vmem:[%s1470_s24 + $0x24] sm:$0xf] %vm846_vm4, %v995_v46  ;;  %857 = vst.msk [vmem:[%s1470_s24 + $0x28] sm:$0xf] %vm846_vm4, %v996_v21  ;;  %v1010_v42 = vpack.c.bf16 %v1454_v53, %v1454_v53  ;;  %v1011_v43 = vpack.c.bf16 %v1457_v3, %v1457_v3  ;;  %v1012_v48 = vpack.c.bf16 %v1460_v11, %v1460_v11 }
 0x242   : > { %858 = vst.msk [vmem:[%s1470_s24 + $0x2c] sm:$0xf] %vm846_vm4, %v997_v23  ;;  %859 = vst.msk [vmem:[%s1470_s24 + $0x30] sm:$0xf] %vm846_vm4, %v998_v50  ;;  %v1013_v51 = vpack.c.bf16 %v1463_v26, %v1463_v26  ;;  %v1014_v56 = vpack.c.bf16 %v1473_v31, %v1473_v31  ;;  %v1015_v57 = vpack.c.bf16 %v1476_v33, %v1476_v33 }
 0x243   : > { %860 = vst.msk [vmem:[%s1470_s24 + $0x34] sm:$0xf] %vm846_vm4, %v999_v24  ;;  %861 = vst.msk [vmem:[%s1470_s24 + $0x38] sm:$0xf] %vm846_vm4, %v1000_v27  ;;  %v1016_v58 = vpack.c.bf16 %v1479_v47, %v1479_v47  ;;  %v1017_v59 = vpack.c.bf16 %v1482_v52, %v1482_v52 }
 0x244   : > { %862 = vst.msk [vmem:[%s1470_s24 + $0x3c] sm:$0xf] %vm846_vm4, %v1001_v28  ;;  %863 = vst.msk [vmem:[%s1470_s24 + $0x40] sm:$0xf] %vm846_vm4, %v1002_v30 }
 0x245   : > { %864 = vst.msk [vmem:[%s1470_s24 + $0x44] sm:$0xf] %vm846_vm4, %v1003_v34  ;;  %865 = vst.msk [vmem:[%s1470_s24 + $0x48] sm:$0xf] %vm846_vm4, %v1004_v35 }
 0x246   : > { %866 = vst.msk [vmem:[%s1470_s24 + $0x4c] sm:$0xf] %vm846_vm4, %v1005_v37  ;;  %867 = vst.msk [vmem:[%s1470_s24 + $0x50] sm:$0xf] %vm846_vm4, %v1006_v39 }
 0x247   : > { %868 = vst.msk [vmem:[%s1470_s24 + $0x54] sm:$0xf] %vm846_vm4, %v1007_v0  ;;  %869 = vst.msk [vmem:[%s1470_s24 + $0x58] sm:$0xf] %vm846_vm4, %v1008_v40 }
 0x248   : > { %870 = vst.msk [vmem:[%s1470_s24 + $0x5c] sm:$0xf] %vm846_vm4, %v1009_v41  ;;  %871 = vst.msk [vmem:[%s1470_s24 + $0x60] sm:$0xf] %vm846_vm4, %v1010_v42 }
 0x249   : > { %872 = vst.msk [vmem:[%s1470_s24 + $0x64] sm:$0xf] %vm846_vm4, %v1011_v43  ;;  %873 = vst.msk [vmem:[%s1470_s24 + $0x68] sm:$0xf] %vm846_vm4, %v1012_v48 }
 0x24a   : > { %874 = vst.msk [vmem:[%s1470_s24 + $0x6c] sm:$0xf] %vm846_vm4, %v1013_v51  ;;  %875 = vst.msk [vmem:[%s1470_s24 + $0x70] sm:$0xf] %vm846_vm4, %v1014_v56 }
 0x24b   : > { %876 = vst.msk [vmem:[%s1470_s24 + $0x74] sm:$0xf] %vm846_vm4, %v1015_v57  ;;  %877 = vst.msk [vmem:[%s1470_s24 + $0x78] sm:$0xf] %vm846_vm4, %v1016_v58 }
 0x24c   : > { %878 = vst.msk [vmem:[%s1470_s24 + $0x7c] sm:$0xf] %vm846_vm4, %v1017_v59 }
 0x24d PF: > { %s13_s12 = sadd.s32 1, %s1147_s12  }
 0x24e   : > { %p10_p4 = scmp.ge.s32.totalorder %s13_s12, 4  }
 0x250   :  { %12 = sbr.rel (!%p10_p4) target bundleno = 1 (0x1), region = 62 }

// kernel: cam_unet_forward.21
= control target key start
LH: loop header
LB: loop body
LE: loop exit
PB: predicated region body
PF: predicated region fallthrough
CT: control target
= control target key end

     0   :  { %s1038_s12 = smov 0   ;;  %s1214_s0 = inlined_call_operand.vmem [shape: bf16[512,72], index: 0, kind: input, shape index: {}]   ;;  %s1215_s1 = inlined_call_operand.vmem [shape: bf16[72,8], index: 1, kind: input, shape index: {}]   ;;  %s1216_s2 = inlined_call_operand.vmem [shape: f32[1,8], index: 2, kind: input, shape index: {}]   ;;  %s1217_s3 = inlined_call_operand.vmem [shape: bf16[512,8], index: 3, kind: output, shape index: {}]  }
   0x1 LB: > { %s793_s13 = sadd.s32 4294967295, %s1016_s12   ;;  %p797_p0 = scmp.ge.s32.totalorder %s1016_s12, 1  ;;  %s1016_s12 = sphi %s1038_s12, %s13_s12  }
   0x2   : > { %p138_p1 = scmp.lt.s32.totalorder %s1016_s12, 3 }
   0x4   : > { %p139_p2 = pnand %p797_p0, %p138_p1 }
   0x5   : > { %v989_v0 = vld [vmem:[%s1215_s1] sm:$0xff] (!%p139_p2)   ;;  %v990_v1 = vld [vmem:[%s1215_s1 + $0x8] sm:$0xff] (!%p139_p2)   ;;  %s798_s18 = sshll.u32 (!%p139_p2), %s793_s13, 5  ;;  %v991_v2 = vld [vmem:[%s1215_s1 + $0x10] sm:$0xff] (!%p139_p2)   ;;  %vm330_vm0 = vcmask (!%p139_p2), 588800   ;;  %vm379_vm1 = vcmask (!%p139_p2), 1043456  }
   0x6   : > { %142 = sbr.rel (%p139_p2) target bundleno = 272 (0x110), region = 32  ;;  %927 = vmatprep.subr.bf16.mxu0 (!%p139_p2), %v989_v0  ;;  %969 = vmatprep.subr.bf16.mxu1 (!%p139_p2), %v989_v0  ;;  %p163_p3 = scmp.lt.s32.totalorder (!%p139_p2), %s798_s18, 63  ;;  %v992_v3 = vld [vmem:[%s1215_s1 + $0x18] sm:$0xff] (!%p139_p2)   ;;  %v993_v6 = vld [vmem:[%s1215_s1 + $0x20] ss:$0 sps:$4 sm:$0xff] (!%p139_p2)   ;;  %vm704_vm2 = vcmask (!%p139_p2), 60416  }
   0x7   : > { %928 = vmatpush3.bf16.msra.mxu0 (!%p139_p2), %v989_v0  ;;  %974 = vmatpush3.bf16.msra.mxu1 (!%p139_p2), %v989_v0  ;;  %v381_v7 = vsel (!%p139_p2), %vm379_vm1, %v993_v6, 0  ;;  %v1106_v22 = vld [vmem:[%s1216_s2] ss:$0 sm:$0xff] (!%p139_p2) }
   0x8   : > { %929 = vmatprep.subr.bf16.mxu0 (!%p139_p2), %v990_v1  ;;  %970 = vmatprep.subr.bf16.mxu1 (!%p139_p2), %v990_v1 }
   0xb   : > { %930 = vmatpush3.bf16.msra.mxu0 (!%p139_p2), %v990_v1  ;;  %975 = vmatpush3.bf16.msra.mxu1 (!%p139_p2), %v990_v1 }
   0xc   : > { %931 = vmatprep.subr.bf16.mxu0 (!%p139_p2), %v991_v2  ;;  %971 = vmatprep.subr.bf16.mxu1 (!%p139_p2), %v991_v2 }
   0xd   : > { %s1219_s18 = smov (!%p163_p3, %s798_s18), 63 }
   0xe   : > { %s799_s21 = sshll.u32 %s1219_s18, 2 }
   0xf   : > { %s1066_s26 = scalar_lea.vmem %s1214_s0, %s799_s21  ;;  %932 = vmatpush3.bf16.msra.mxu0 %v991_v2  ;;  %976 = vmatpush3.bf16.msra.mxu1 %v991_v2  ;;  %s1119_s6 = scalar_lea.vmem %s1217_s3, %s799_s21 }
  0x10   : > { %v994_v4 = vld [vmem:[%s1066_s26] sm:$0xff]   ;;  %933 = vmatprep.subr.bf16.mxu0 %v992_v3  ;;  %972 = vmatprep.subr.bf16.mxu1 %v992_v3  ;;  %v996_v8 = vld [vmem:[%s1066_s26 + $0x8] sm:$0xff]   ;;  %v998_v10 = vld [vmem:[%s1066_s26 + $0x10] sm:$0xff]  }
  0x11   : > { %v995_v5 = vld [vmem:[%s1066_s26 + $0x40] sm:$0xff]   ;;  %937 = vmatprep.mubr.msk.bf16.mxu0 %vm330_vm0, %v994_v4  ;;  %v997_v9 = vld [vmem:[%s1066_s26 + $0x48] sm:$0xff]   ;;  %v999_v11 = vld [vmem:[%s1066_s26 + $0x50] sm:$0xff]  }
  0x12   : > { %953 = vmatprep.mubr.msk.bf16.mxu1 %vm330_vm0, %v995_v5  ;;  %v1000_v12 = vld [vmem:[%s1066_s26 + $0x18] sm:$0xff]   ;;  %v1002_v14 = vld [vmem:[%s1066_s26 + $0x20] sm:$0xff]   ;;  %v1004_v16 = vld [vmem:[%s1066_s26 + $0x28] sm:$0xff]  }
  0x13   : > { %934 = vmatpush3.bf16.msra.mxu0 %v992_v3  ;;  %977 = vmatpush3.bf16.msra.mxu1 %v992_v3  ;;  %v1001_v13 = vld [vmem:[%s1066_s26 + $0x58] sm:$0xff]   ;;  %v1003_v15 = vld [vmem:[%s1066_s26 + $0x60] sm:$0xff]   ;;  %v1005_v17 = vld [vmem:[%s1066_s26 + $0x68] sm:$0xff]  }
  0x14   : > { %979 = vmatprep.subr.msk.bf16.mxu0 %vm379_vm1, %v993_v6  ;;  %980 = vmatprep.subr.msk.bf16.mxu1 %vm379_vm1, %v993_v6  ;;  %v1006_v18 = vld [vmem:[%s1066_s26 + $0x30] sm:$0xff]   ;;  %v1008_v20 = vld [vmem:[%s1066_s26 + $0x38] sm:$0xff]  }
  0x15   : > { %v1007_v19 = vld [vmem:[%s1066_s26 + $0x70] sm:$0xff]   ;;  %v1009_v21 = vld [vmem:[%s1066_s26 + $0x78] sm:$0xff]  }
  0x17   : > { %936 = vmatpush3.bf16.msra.mxu0 %v381_v7  ;;  %978 = vmatpush3.bf16.msra.mxu1 %v381_v7 }
  0x1a   : > { %938 = vmatmul.mubr.msk.bf16.vlgmr.msra.gmra.mrb[0].mxu0 %vm330_vm0, %v996_v8  ;;  %954 = vmatmul.mubr.msk.bf16.vlgmr.msra.gmra.mrb[0].mxu1 %vm330_vm0, %v997_v9 }
  0x1b   : > { %941 = vmatprep.mubr.msk.bf16.mxu0 %vm330_vm0, %v998_v10  ;;  %957 = vmatprep.mubr.msk.bf16.mxu1 %vm330_vm0, %v999_v11 }
  0x22   : > { %942 = vmatmul.mubr.msk.bf16.gmra.mrb[4].mxu0 %vm330_vm0, %v1000_v12  ;;  %958 = vmatmul.mubr.msk.bf16.gmra.mrb[4].mxu1 %vm330_vm0, %v1001_v13 }
  0x23   : > { %945 = vmatprep.mubr.msk.bf16.mxu0 %vm330_vm0, %v1002_v14  ;;  %961 = vmatprep.mubr.msk.bf16.mxu1 %vm330_vm0, %v1003_v15 }
  0x2a   : > { %946 = vmatmul.mubr.msk.bf16.gmra.mrb[8].mxu0 %vm330_vm0, %v1004_v16  ;;  %962 = vmatmul.mubr.msk.bf16.gmra.mrb[8].mxu1 %vm330_vm0, %v1005_v17 }
  0x2b   : > { %949 = vmatprep.mubr.msk.bf16.mxu0 %vm330_vm0, %v1006_v18  ;;  %965 = vmatprep.mubr.msk.bf16.mxu1 %vm330_vm0, %v1007_v19 }
  0x32   : > { %950 = vmatmul.mubr.msk.bf16.gmra.mrb[12].mxu0 %vm330_vm0, %v1008_v20  ;;  %966 = vmatmul.mubr.msk.bf16.gmra.mrb[12].mxu1 %vm330_vm0, %v1009_v21 }
  0xed   : > { %v939_v23 = vpop.f32.mrb[0].mxu0  ;;  %v955_v24 = vpop.f32.mrb[0].mxu1 }
  0xee   : > { %v426_v25 = vadd.f32 %v939_v23, %v1106_v22  ;;  %v490_v26 = vadd.f32 %v955_v24, %v1106_v22  ;;  %v417_v27 = vpop.f32.mrb[1].mxu0  ;;  %v481_v28 = vpop.f32.mrb[1].mxu1 }
  0xef   : > { %v418_v29 = vadd.f32 %v1106_v22, %v417_v27  ;;  %v482_v30 = vadd.f32 %v1106_v22, %v481_v28  ;;  %v940_v31 = vpop.f32.mrb[2].mxu0  ;;  %v956_v32 = vpop.f32.mrb[2].mxu1 }
  0xf0   : > { %v546_v33 = vmax.f32 %v426_v25, 0.0  ;;  %v562_v34 = vmax.f32 %v490_v26, 0.0  ;;  %v429_v35 = vadd.f32 %v940_v31, %v1106_v22  ;;  %v493_v36 = vadd.f32 %v956_v32, %v1106_v22  ;;  %v420_v37 = vpop.f32.mrb[3].mxu0  ;;  %v484_v38 = vpop.f32.mrb[3].mxu1 }
  0xf1   : > { %v544_v39 = vmax.f32 %v418_v29, 0.0  ;;  %v560_v40 = vmax.f32 %v482_v30, 0.0  ;;  %v421_v41 = vadd.f32 %v1106_v22, %v420_v37  ;;  %v485_v42 = vadd.f32 %v1106_v22, %v484_v38 }
  0xf2   : > { %v876_v43 = vpack.c.bf16 %v546_v33, %v546_v33  ;;  %v892_v44 = vpack.c.bf16 %v562_v34, %v562_v34  ;;  %v547_v45 = vmax.f32 %v429_v35, 0.0  ;;  %v563_v46 = vmax.f32 %v493_v36, 0.0 }
  0xf3   : > { %v874_v47 = vpack.c.bf16 %v544_v39, %v544_v39  ;;  %v890_v48 = vpack.c.bf16 %v560_v40, %v560_v40  ;;  %v545_v49 = vmax.f32 %v421_v41, 0.0  ;;  %v561_v50 = vmax.f32 %v485_v42, 0.0 }
  0xf4   : > { %707 = vst.msk [vmem:[%s1119_s6 + $0x8] sm:$0xf] %vm704_vm2, %v876_v43  ;;  %723 = vst.msk [vmem:[%s1119_s6 + $0x48] sm:$0xf] %vm704_vm2, %v892_v44  ;;  %v877_v51 = vpack.c.bf16 %v547_v45, %v547_v45  ;;  %v893_v52 = vpack.c.bf16 %v563_v46, %v563_v46 }
  0xf5   : > { %705 = vst.msk [vmem:[%s1119_s6] sm:$0xf] %vm704_vm2, %v874_v47  ;;  %721 = vst.msk [vmem:[%s1119_s6 + $0x40] sm:$0xf] %vm704_vm2, %v890_v48  ;;  %v875_v53 = vpack.c.bf16 %v545_v49, %v545_v49  ;;  %v891_v54 = vpack.c.bf16 %v561_v50, %v561_v50  ;;  %v943_v55 = vpop.f32.mrb[4].mxu0  ;;  %v959_v56 = vpop.f32.mrb[4].mxu1 }
  0xf6   : > { %708 = vst.msk [vmem:[%s1119_s6 + $0xc] sm:$0xf] %vm704_vm2, %v877_v51  ;;  %724 = vst.msk [vmem:[%s1119_s6 + $0x4c] sm:$0xf] %vm704_vm2, %v893_v52  ;;  %v442_v57 = vadd.f32 %v943_v55, %v1106_v22  ;;  %v506_v58 = vadd.f32 %v959_v56, %v1106_v22  ;;  %v433_v59 = vpop.f32.mrb[5].mxu0  ;;  %v497_v60 = vpop.f32.mrb[5].mxu1 }
  0xf7   : > { %706 = vst.msk [vmem:[%s1119_s6 + $0x4] sm:$0xf] %vm704_vm2, %v875_v53  ;;  %722 = vst.msk [vmem:[%s1119_s6 + $0x44] sm:$0xf] %vm704_vm2, %v891_v54  ;;  %v434_v61 = vadd.f32 %v1106_v22, %v433_v59  ;;  %v498_v62 = vadd.f32 %v1106_v22, %v497_v60  ;;  %v944_v63 = vpop.f32.mrb[6].mxu0  ;;  %v960_v0 = vpop.f32.mrb[6].mxu1 }
  0xf8   : > { %v550_v1 = vmax.f32 %v442_v57, 0.0  ;;  %v566_v2 = vmax.f32 %v506_v58, 0.0  ;;  %v445_v3 = vadd.f32 %v944_v63, %v1106_v22  ;;  %v509_v4 = vadd.f32 %v960_v0, %v1106_v22  ;;  %v436_v5 = vpop.f32.mrb[7].mxu0  ;;  %v500_v6 = vpop.f32.mrb[7].mxu1 }
  0xf9   : > { %v548_v7 = vmax.f32 %v434_v61, 0.0  ;;  %v564_v8 = vmax.f32 %v498_v62, 0.0  ;;  %v437_v9 = vadd.f32 %v1106_v22, %v436_v5  ;;  %v501_v10 = vadd.f32 %v1106_v22, %v500_v6 }
  0xfa   : > { %v880_v11 = vpack.c.bf16 %v550_v1, %v550_v1  ;;  %v896_v12 = vpack.c.bf16 %v566_v2, %v566_v2  ;;  %v551_v13 = vmax.f32 %v445_v3, 0.0  ;;  %v567_v14 = vmax.f32 %v509_v4, 0.0 }
  0xfb   : > { %v878_v15 = vpack.c.bf16 %v548_v7, %v548_v7  ;;  %v894_v16 = vpack.c.bf16 %v564_v8, %v564_v8  ;;  %v549_v17 = vmax.f32 %v437_v9, 0.0  ;;  %v565_v18 = vmax.f32 %v501_v10, 0.0 }
  0xfc   : > { %711 = vst.msk [vmem:[%s1119_s6 + $0x18] sm:$0xf] %vm704_vm2, %v880_v11  ;;  %727 = vst.msk [vmem:[%s1119_s6 + $0x58] sm:$0xf] %vm704_vm2, %v896_v12  ;;  %v881_v19 = vpack.c.bf16 %v551_v13, %v551_v13  ;;  %v897_v20 = vpack.c.bf16 %v567_v14, %v567_v14 }
  0xfd   : > { %709 = vst.msk [vmem:[%s1119_s6 + $0x10] sm:$0xf] %vm704_vm2, %v878_v15  ;;  %725 = vst.msk [vmem:[%s1119_s6 + $0x50] sm:$0xf] %vm704_vm2, %v894_v16  ;;  %v879_v21 = vpack.c.bf16 %v549_v17, %v549_v17  ;;  %v895_v23 = vpack.c.bf16 %v565_v18, %v565_v18  ;;  %v947_v24 = vpop.f32.mrb[8].mxu0  ;;  %v963_v25 = vpop.f32.mrb[8].mxu1 }
  0xfe   : > { %712 = vst.msk [vmem:[%s1119_s6 + $0x1c] sm:$0xf] %vm704_vm2, %v881_v19  ;;  %728 = vst.msk [vmem:[%s1119_s6 + $0x5c] sm:$0xf] %vm704_vm2, %v897_v20  ;;  %v458_v26 = vadd.f32 %v947_v24, %v1106_v22  ;;  %v522_v27 = vadd.f32 %v963_v25, %v1106_v22  ;;  %v449_v28 = vpop.f32.mrb[9].mxu0  ;;  %v513_v29 = vpop.f32.mrb[9].mxu1 }
  0xff   : > { %710 = vst.msk [vmem:[%s1119_s6 + $0x14] sm:$0xf] %vm704_vm2, %v879_v21  ;;  %726 = vst.msk [vmem:[%s1119_s6 + $0x54] sm:$0xf] %vm704_vm2, %v895_v23  ;;  %v450_v30 = vadd.f32 %v1106_v22, %v449_v28  ;;  %v514_v31 = vadd.f32 %v1106_v22, %v513_v29  ;;  %v948_v32 = vpop.f32.mrb[10].mxu0  ;;  %v964_v33 = vpop.f32.mrb[10].mxu1 }
 0x100   : > { %v554_v34 = vmax.f32 %v458_v26, 0.0  ;;  %v570_v35 = vmax.f32 %v522_v27, 0.0  ;;  %v461_v36 = vadd.f32 %v948_v32, %v1106_v22  ;;  %v525_v37 = vadd.f32 %v964_v33, %v1106_v22  ;;  %v452_v38 = vpop.f32.mrb[11].mxu0  ;;  %v516_v39 = vpop.f32.mrb[11].mxu1 }
 0x101   : > { %v552_v40 = vmax.f32 %v450_v30, 0.0  ;;  %v568_v41 = vmax.f32 %v514_v31, 0.0  ;;  %v453_v42 = vadd.f32 %v1106_v22, %v452_v38  ;;  %v517_v43 = vadd.f32 %v1106_v22, %v516_v39 }
 0x102   : > { %v884_v44 = vpack.c.bf16 %v554_v34, %v554_v34  ;;  %v900_v45 = vpack.c.bf16 %v570_v35, %v570_v35  ;;  %v555_v46 = vmax.f32 %v461_v36, 0.0  ;;  %v571_v47 = vmax.f32 %v525_v37, 0.0 }
 0x103   : > { %v882_v48 = vpack.c.bf16 %v552_v40, %v552_v40  ;;  %v898_v49 = vpack.c.bf16 %v568_v41, %v568_v41  ;;  %v553_v50 = vmax.f32 %v453_v42, 0.0  ;;  %v569_v51 = vmax.f32 %v517_v43, 0.0 }
 0x104   : > { %715 = vst.msk [vmem:[%s1119_s6 + $0x28] sm:$0xf] %vm704_vm2, %v884_v44  ;;  %731 = vst.msk [vmem:[%s1119_s6 + $0x68] sm:$0xf] %vm704_vm2, %v900_v45  ;;  %v885_v52 = vpack.c.bf16 %v555_v46, %v555_v46  ;;  %v901_v53 = vpack.c.bf16 %v571_v47, %v571_v47 }
 0x105   : > { %713 = vst.msk [vmem:[%s1119_s6 + $0x20] sm:$0xf] %vm704_vm2, %v882_v48  ;;  %729 = vst.msk [vmem:[%s1119_s6 + $0x60] sm:$0xf] %vm704_vm2, %v898_v49  ;;  %v883_v54 = vpack.c.bf16 %v553_v50, %v553_v50  ;;  %v899_v55 = vpack.c.bf16 %v569_v51, %v569_v51  ;;  %v951_v56 = vpop.f32.mrb[12].mxu0  ;;  %v967_v57 = vpop.f32.mrb[12].mxu1 }
 0x106   : > { %716 = vst.msk [vmem:[%s1119_s6 + $0x2c] sm:$0xf] %vm704_vm2, %v885_v52  ;;  %732 = vst.msk [vmem:[%s1119_s6 + $0x6c] sm:$0xf] %vm704_vm2, %v901_v53  ;;  %v474_v58 = vadd.f32 %v951_v56, %v1106_v22  ;;  %v538_v59 = vadd.f32 %v967_v57, %v1106_v22  ;;  %v465_v60 = vpop.f32.mrb[13].mxu0  ;;  %v529_v61 = vpop.f32.mrb[13].mxu1 }
 0x107   : > { %714 = vst.msk [vmem:[%s1119_s6 + $0x24] sm:$0xf] %vm704_vm2, %v883_v54  ;;  %730 = vst.msk [vmem:[%s1119_s6 + $0x64] sm:$0xf] %vm704_vm2, %v899_v55  ;;  %v466_v62 = vadd.f32 %v1106_v22, %v465_v60  ;;  %v530_v63 = vadd.f32 %v1106_v22, %v529_v61  ;;  %v952_v0 = vpop.f32.mrb[14].mxu0  ;;  %v968_v1 = vpop.f32.mrb[14].mxu1 }
 0x108   : > { %v558_v2 = vmax.f32 %v474_v58, 0.0  ;;  %v574_v3 = vmax.f32 %v538_v59, 0.0  ;;  %v477_v4 = vadd.f32 %v952_v0, %v1106_v22  ;;  %v541_v5 = vadd.f32 %v968_v1, %v1106_v22  ;;  %v468_v6 = vpop.f32.mrb[15].mxu0  ;;  %v532_v7 = vpop.f32.mrb[15].mxu1 }
 0x109   : > { %v556_v8 = vmax.f32 %v466_v62, 0.0  ;;  %v572_v9 = vmax.f32 %v530_v63, 0.0  ;;  %v469_v10 = vadd.f32 %v1106_v22, %v468_v6  ;;  %v533_v11 = vadd.f32 %v1106_v22, %v532_v7 }
 0x10a   : > { %v888_v12 = vpack.c.bf16 %v558_v2, %v558_v2  ;;  %v904_v13 = vpack.c.bf16 %v574_v3, %v574_v3  ;;  %v559_v14 = vmax.f32 %v477_v4, 0.0  ;;  %v575_v15 = vmax.f32 %v541_v5, 0.0 }
 0x10b   : > { %v886_v16 = vpack.c.bf16 %v556_v8, %v556_v8  ;;  %v902_v17 = vpack.c.bf16 %v572_v9, %v572_v9  ;;  %v557_v18 = vmax.f32 %v469_v10, 0.0  ;;  %v573_v19 = vmax.f32 %v533_v11, 0.0 }
 0x10c   : > { %719 = vst.msk [vmem:[%s1119_s6 + $0x38] sm:$0xf] %vm704_vm2, %v888_v12  ;;  %735 = vst.msk [vmem:[%s1119_s6 + $0x78] sm:$0xf] %vm704_vm2, %v904_v13  ;;  %v889_v20 = vpack.c.bf16 %v559_v14, %v559_v14  ;;  %v905_v21 = vpack.c.bf16 %v575_v15, %v575_v15 }
 0x10d   : > { %717 = vst.msk [vmem:[%s1119_s6 + $0x30] sm:$0xf] %vm704_vm2, %v886_v16  ;;  %733 = vst.msk [vmem:[%s1119_s6 + $0x70] sm:$0xf] %vm704_vm2, %v902_v17  ;;  %v887_v22 = vpack.c.bf16 %v557_v18, %v557_v18  ;;  %v903_v23 = vpack.c.bf16 %v573_v19, %v573_v19 }
 0x10e   : > { %720 = vst.msk [vmem:[%s1119_s6 + $0x3c] sm:$0xf] %vm704_vm2, %v889_v20  ;;  %736 = vst.msk [vmem:[%s1119_s6 + $0x7c] sm:$0xf] %vm704_vm2, %v905_v21 }
 0x10f   : > { %718 = vst.msk [vmem:[%s1119_s6 + $0x34] sm:$0xf] %vm704_vm2, %v887_v22  ;;  %734 = vst.msk [vmem:[%s1119_s6 + $0x74] sm:$0xf] %vm704_vm2, %v903_v23 }
 0x110 PF: > { %s13_s12 = sadd.s32 1, %s1016_s12  }
 0x111   : > { %p10_p4 = scmp.ge.s32.totalorder %s13_s12, 4  }
 0x113   :  { %12 = sbr.rel (!%p10_p4) target bundleno = 1 (0x1), region = 62 }

// kernel: cam_unet_forward.23
= control target key start
LH: loop header
LB: loop body
LE: loop exit
PB: predicated region body
PF: predicated region fallthrough
CT: control target
= control target key end

     0   :  { %s286_s6 = smov 0   ;;  %s315_s0 = inlined_call_operand.vmem [shape: bf16[2,8,2,8,16], index: 0, kind: input, shape index: {}]   ;;  %s316_s1 = inlined_call_operand.vmem [shape: bf16[2,8,8,8], index: 1, kind: output, shape index: {}]  }
   0x1 LB: > { %s245_s7 = sadd.s32 4294967295, %s273_s6   ;;  %p249_p0 = scmp.ge.s32.totalorder %s273_s6, 1  ;;  %s273_s6 = sphi %s286_s6, %s11_s6  }
   0x2   : > { %p87_p1 = scmp.lt.s32.totalorder %s273_s6, 3 }
   0x4   : > { %p88_p2 = pnand %p249_p0, %p87_p1 }
   0x5   : > { %p107_p3 = scmp.lt.s32.totalorder (!%p88_p2), %s245_s7, 1  ;;  %s275_s12 = smov (!%p88_p2), 120   ;;  %vm181_vm0 = vcmask (!%p88_p2), 60416  }
   0x6   : > { %91 = sbr.rel (%p88_p2) target bundleno = 150 (0x96), region = 24 }
   0xd   : > { %s318_s7 = smov (!%p107_p3, %s245_s7), 1 }
   0xe   : > { %s256_s8 = sshll.u32 %s318_s7, 6  ;;  %s257_s13 = sshll.u32 %s318_s7, 5 }
   0xf   : > { %s111_s11 = scalar_lea.vmem %s315_s0, %s256_s8  ;;  %s116_s16 = scalar_lea.vmem %s316_s1, %s257_s13 }
  0x10   : > { %v121_v0 = vld [vmem:[%s111_s11 + $0x10] sm:$0xf]  ;;  %v122_v1 = vld [vmem:[%s111_s11 + $0x14] sm:$0xf]  ;;  %v117_v2 = vld [vmem:[%s111_s11] sm:$0xf] }
  0x11   : > { %v135_v3 = vmax.bf16 %v122_v1, %v121_v0  ;;  %v118_v4 = vld [vmem:[%s111_s11 + $0x4] sm:$0xf]  ;;  %v123_v5 = vld [vmem:[%s111_s11 + $0x18] sm:$0xf]  ;;  %v124_v6 = vld [vmem:[%s111_s11 + $0x1c] sm:$0xf] }
  0x12   : > { %v133_v7 = vmax.bf16 %v118_v4, %v117_v2  ;;  %v119_v8 = vld [vmem:[%s111_s11 + $0x8] sm:$0xf]  ;;  %v120_v9 = vld [vmem:[%s111_s11 + $0xc] sm:$0xf]  ;;  %v136_v10 = vmax.bf16 %v124_v6, %v123_v5  ;;  %v125_v14 = vld [vmem:[%s111_s11 + $0x20] sm:$0xf] }
  0x13   : > { %153 = vrot.lane.b32.xlu1 %v135_v3, %s275_s12  ;;  %v134_v11 = vmax.bf16 %v120_v9, %v119_v8  ;;  %v127_v12 = vld [vmem:[%s111_s11 + $0x28] sm:$0xf]  ;;  %v128_v13 = vld [vmem:[%s111_s11 + $0x2c] sm:$0xf]  ;;  %v126_v15 = vld [vmem:[%s111_s11 + $0x24] sm:$0xf] }
  0x14   : > { %149 = vrot.lane.b32.xlu0 %v133_v7, %s275_s12  ;;  %v138_v16 = vmax.bf16 %v128_v13, %v127_v12  ;;  %v137_v17 = vmax.bf16 %v126_v15, %v125_v14  ;;  %v131_v18 = vld [vmem:[%s111_s11 + $0x38] sm:$0xf]  ;;  %v132_v19 = vld [vmem:[%s111_s11 + $0x3c] sm:$0xf]  ;;  %v129_v20 = vld [vmem:[%s111_s11 + $0x30] sm:$0xf] }
  0x15   : > { %v130_v21 = vld [vmem:[%s111_s11 + $0x34] sm:$0xf]  ;;  %v140_v22 = vmax.bf16 %v132_v19, %v131_v18 }
  0x16   : > { %v139_v23 = vmax.bf16 %v130_v21, %v129_v20 }
  0x17   : > { %155 = vrot.lane.b32.xlu1 %v136_v10, %s275_s12 }
  0x18   : > { %151 = vrot.lane.b32.xlu0 %v134_v11, %s275_s12 }
  0x1b   : > { %159 = vrot.lane.b32.xlu1 %v138_v16, %s275_s12 }
  0x1c   : > { %157 = vrot.lane.b32.xlu0 %v137_v17, %s275_s12 }
  0x1f   : > { %163 = vrot.lane.b32.xlu1 %v140_v22, %s275_s12 }
  0x20   : > { %161 = vrot.lane.b32.xlu0 %v139_v23, %s275_s12 }
  0x85   : > { %v154_v24 = vpop.permute.xlu1 %153 }
  0x86   : > { %v175_v25 = vmax.bf16 %v154_v24, %v135_v3  ;;  %v150_v26 = vpop.permute.xlu0 %149 }
  0x87   : > { %v173_v27 = vmax.bf16 %v150_v26, %v133_v7 }
  0x88   : > { %184 = vst.msk [vmem:[%s116_s16 + $0x8] sm:$0xf] %vm181_vm0, %v175_v25 }
  0x89   : > { %182 = vst.msk [vmem:[%s116_s16] sm:$0xf] %vm181_vm0, %v173_v27  ;;  %v156_v28 = vpop.permute.xlu1 %155 }
  0x8a   : > { %v176_v29 = vmax.bf16 %v156_v28, %v136_v10  ;;  %v152_v30 = vpop.permute.xlu0 %151 }
  0x8b   : > { %v174_v31 = vmax.bf16 %v152_v30, %v134_v11 }
  0x8c   : > { %185 = vst.msk [vmem:[%s116_s16 + $0xc] sm:$0xf] %vm181_vm0, %v176_v29 }
  0x8d   : > { %183 = vst.msk [vmem:[%s116_s16 + $0x4] sm:$0xf] %vm181_vm0, %v174_v31  ;;  %v160_v32 = vpop.permute.xlu1 %159 }
  0x8e   : > { %v178_v33 = vmax.bf16 %v160_v32, %v138_v16  ;;  %v158_v34 = vpop.permute.xlu0 %157 }
  0x8f   : > { %v177_v35 = vmax.bf16 %v158_v34, %v137_v17 }
  0x90   : > { %187 = vst.msk [vmem:[%s116_s16 + $0x14] sm:$0xf] %vm181_vm0, %v178_v33 }
  0x91   : > { %186 = vst.msk [vmem:[%s116_s16 + $0x10] sm:$0xf] %vm181_vm0, %v177_v35  ;;  %v164_v36 = vpop.permute.xlu1 %163 }
  0x92   : > { %v180_v37 = vmax.bf16 %v164_v36, %v140_v22  ;;  %v162_v38 = vpop.permute.xlu0 %161 }
  0x93   : > { %v179_v39 = vmax.bf16 %v162_v38, %v139_v23 }
  0x94   : > { %189 = vst.msk [vmem:[%s116_s16 + $0x1c] sm:$0xf] %vm181_vm0, %v180_v37 }
  0x95   : > { %188 = vst.msk [vmem:[%s116_s16 + $0x18] sm:$0xf] %vm181_vm0, %v179_v39 }
  0x96 PF: > { %s11_s6 = sadd.s32 1, %s273_s6  }
  0x97   : > { %p8_p4 = scmp.ge.s32.totalorder %s11_s6, 4  }
  0x99   :  { %10 = sbr.rel (!%p8_p4) target bundleno = 1 (0x1), region = 54 }

// kernel: cam_unet_forward.24
= control target key start
LH: loop header
LB: loop body
LE: loop exit
PB: predicated region body
PF: predicated region fallthrough
CT: control target
= control target key end

     0   :  { %vm114_vm0 = vcmask 588800   ;;  %vm139_vm1 = vcmask 1043456   ;;  %vm320_vm2 = vcmask 125952   ;;  %s593_s1 = inlined_call_operand.vmem [shape: bf16[72,16], index: 1, kind: input, shape index: {}]   ;;  %s594_s0 = inlined_call_operand.vmem [shape: bf16[128,72], index: 0, kind: input, shape index: {}]   ;;  %s595_s2 = inlined_call_operand.vmem [shape: f32[1,16], index: 2, kind: input, shape index: {}]   ;;  %s596_s3 = inlined_call_operand.vmem [shape: bf16[128,16], index: 3, kind: output, shape index: {}]  }
   0x1   :  { %v446_v0 = vld [vmem:[%s593_s1] sm:$0xff]   ;;  %v447_v1 = vld [vmem:[%s593_s1 + $0x8] sm:$0xff]   ;;  %v448_v2 = vld [vmem:[%s593_s1 + $0x10] sm:$0xff]  }
   0x2   :  { %408 = vmatprep.subr.bf16.mxu0 %v446_v0  ;;  %434 = vmatprep.subr.bf16.mxu1 %v446_v0  ;;  %v451_v3 = vld [vmem:[%s594_s0] sm:$0xff]   ;;  %v449_v5 = vld [vmem:[%s593_s1 + $0x18] sm:$0xff]   ;;  %v453_v8 = vld [vmem:[%s594_s0 + $0x8] sm:$0xff]  }
   0x3   :  { %409 = vmatpush3.bf16.msra.mxu0 %v446_v0  ;;  %439 = vmatpush3.bf16.msra.mxu1 %v446_v0  ;;  %v452_v4 = vld [vmem:[%s594_s0 + $0x20] sm:$0xff]   ;;  %v454_v9 = vld [vmem:[%s594_s0 + $0x28] sm:$0xff]   ;;  %v455_v10 = vld [vmem:[%s594_s0 + $0x10] sm:$0xff]  }
   0x4   :  { %410 = vmatprep.subr.bf16.mxu0 %v447_v1  ;;  %435 = vmatprep.subr.bf16.mxu1 %v447_v1  ;;  %v450_v6 = vld [vmem:[%s593_s1 + $0x20] ss:$0 sps:$4 sm:$0xff]   ;;  %v456_v11 = vld [vmem:[%s594_s0 + $0x30] sm:$0xff]   ;;  %v457_v12 = vld [vmem:[%s594_s0 + $0x18] sm:$0xff]  }
   0x5   :  { %418 = vmatprep.mubr.msk.bf16.mxu0 %vm114_vm0, %v451_v3  ;;  %426 = vmatprep.mubr.msk.bf16.mxu1 %vm114_vm0, %v452_v4  ;;  %v141_v7 = vsel %vm139_vm1, %v450_v6, 0  ;;  %v458_v13 = vld [vmem:[%s594_s0 + $0x38] sm:$0xff]   ;;  %v341_v14 = vld [vmem:[%s595_s2] ss:$0 sm:$0xff] }
   0x7   :  { %411 = vmatpush3.bf16.msra.mxu0 %v447_v1  ;;  %440 = vmatpush3.bf16.msra.mxu1 %v447_v1 }
   0x8   :  { %412 = vmatprep.subr.bf16.mxu0 %v448_v2  ;;  %436 = vmatprep.subr.bf16.mxu1 %v448_v2 }
   0xb   :  { %413 = vmatpush3.bf16.msra.mxu0 %v448_v2  ;;  %441 = vmatpush3.bf16.msra.mxu1 %v448_v2 }
   0xc   :  { %414 = vmatprep.subr.bf16.mxu0 %v449_v5  ;;  %437 = vmatprep.subr.bf16.mxu1 %v449_v5 }
   0xf   :  { %415 = vmatpush3.bf16.msra.mxu0 %v449_v5  ;;  %442 = vmatpush3.bf16.msra.mxu1 %v449_v5 }
  0x10   :  { %444 = vmatprep.subr.msk.bf16.mxu0 %vm139_vm1, %v450_v6  ;;  %445 = vmatprep.subr.msk.bf16.mxu1 %vm139_vm1, %v450_v6 }
  0x13   :  { %417 = vmatpush3.bf16.msra.mxu0 %v141_v7  ;;  %443 = vmatpush3.bf16.msra.mxu1 %v141_v7 }
  0x16   :  { %419 = vmatmul.mubr.msk.bf16.vlgmr.msra.gmra.mrb[0].mxu0 %vm114_vm0, %v453_v8  ;;  %427 = vmatmul.mubr.msk.bf16.vlgmr.msra.gmra.mrb[0].mxu1 %vm114_vm0, %v454_v9 }
  0x17   :  { %422 = vmatprep.mubr.msk.bf16.mxu0 %vm114_vm0, %v455_v10  ;;  %430 = vmatprep.mubr.msk.bf16.mxu1 %vm114_vm0, %v456_v11 }
  0x1e   :  { %423 = vmatmul.mubr.msk.bf16.gmra.mrb[4].mxu0 %vm114_vm0, %v457_v12  ;;  %431 = vmatmul.mubr.msk.bf16.gmra.mrb[4].mxu1 %vm114_vm0, %v458_v13 }
  0xe9   :  { %v420_v15 = vpop.f32.mrb[0].mxu0  ;;  %v428_v16 = vpop.f32.mrb[0].mxu1 }
  0xea   :  { %v186_v17 = vadd.f32 %v420_v15, %v341_v14  ;;  %v218_v18 = vadd.f32 %v428_v16, %v341_v14  ;;  %v177_v19 = vpop.f32.mrb[1].mxu0  ;;  %v209_v20 = vpop.f32.mrb[1].mxu1 }
  0xeb   :  { %v178_v21 = vadd.f32 %v341_v14, %v177_v19  ;;  %v210_v22 = vadd.f32 %v341_v14, %v209_v20  ;;  %v421_v23 = vpop.f32.mrb[2].mxu0  ;;  %v429_v24 = vpop.f32.mrb[2].mxu1 }
  0xec   :  { %v242_v25 = vmax.f32 %v186_v17, 0.0  ;;  %v250_v26 = vmax.f32 %v218_v18, 0.0  ;;  %v189_v27 = vadd.f32 %v421_v23, %v341_v14  ;;  %v221_v28 = vadd.f32 %v429_v24, %v341_v14  ;;  %v180_v29 = vpop.f32.mrb[3].mxu0  ;;  %v212_v30 = vpop.f32.mrb[3].mxu1 }
  0xed   :  { %v240_v31 = vmax.f32 %v178_v21, 0.0  ;;  %v248_v32 = vmax.f32 %v210_v22, 0.0  ;;  %v181_v33 = vadd.f32 %v341_v14, %v180_v29  ;;  %v213_v34 = vadd.f32 %v341_v14, %v212_v30 }
  0xee   :  { %v381_v35 = vpack.c.bf16 %v242_v25, %v242_v25  ;;  %v389_v36 = vpack.c.bf16 %v250_v26, %v250_v26  ;;  %v243_v37 = vmax.f32 %v189_v27, 0.0  ;;  %v251_v38 = vmax.f32 %v221_v28, 0.0 }
  0xef   :  { %v379_v39 = vpack.c.bf16 %v240_v31, %v240_v31  ;;  %v387_v40 = vpack.c.bf16 %v248_v32, %v248_v32  ;;  %v241_v41 = vmax.f32 %v181_v33, 0.0  ;;  %v249_v42 = vmax.f32 %v213_v34, 0.0 }
  0xf0   :  { %323 = vst.msk [vmem:[%s596_s3 + $0x8] sm:$0xf] %vm320_vm2, %v381_v35  ;;  %331 = vst.msk [vmem:[%s596_s3 + $0x28] sm:$0xf] %vm320_vm2, %v389_v36  ;;  %v382_v43 = vpack.c.bf16 %v243_v37, %v243_v37  ;;  %v390_v44 = vpack.c.bf16 %v251_v38, %v251_v38 }
  0xf1   :  { %321 = vst.msk [vmem:[%s596_s3] sm:$0xf] %vm320_vm2, %v379_v39  ;;  %329 = vst.msk [vmem:[%s596_s3 + $0x20] sm:$0xf] %vm320_vm2, %v387_v40  ;;  %v380_v45 = vpack.c.bf16 %v241_v41, %v241_v41  ;;  %v388_v46 = vpack.c.bf16 %v249_v42, %v249_v42  ;;  %v424_v47 = vpop.f32.mrb[4].mxu0  ;;  %v432_v48 = vpop.f32.mrb[4].mxu1 }
  0xf2   :  { %324 = vst.msk [vmem:[%s596_s3 + $0xc] sm:$0xf] %vm320_vm2, %v382_v43  ;;  %332 = vst.msk [vmem:[%s596_s3 + $0x2c] sm:$0xf] %vm320_vm2, %v390_v44  ;;  %v202_v49 = vadd.f32 %v424_v47, %v341_v14  ;;  %v234_v50 = vadd.f32 %v432_v48, %v341_v14  ;;  %v193_v51 = vpop.f32.mrb[5].mxu0  ;;  %v225_v52 = vpop.f32.mrb[5].mxu1 }
  0xf3   :  { %322 = vst.msk [vmem:[%s596_s3 + $0x4] sm:$0xf] %vm320_vm2, %v380_v45  ;;  %330 = vst.msk [vmem:[%s596_s3 + $0x24] sm:$0xf] %vm320_vm2, %v388_v46  ;;  %v194_v53 = vadd.f32 %v341_v14, %v193_v51  ;;  %v226_v54 = vadd.f32 %v341_v14, %v225_v52  ;;  %v425_v55 = vpop.f32.mrb[6].mxu0  ;;  %v433_v56 = vpop.f32.mrb[6].mxu1 }
  0xf4   :  { %v246_v57 = vmax.f32 %v202_v49, 0.0  ;;  %v254_v58 = vmax.f32 %v234_v50, 0.0  ;;  %v205_v59 = vadd.f32 %v425_v55, %v341_v14  ;;  %v237_v60 = vadd.f32 %v433_v56, %v341_v14  ;;  %v196_v61 = vpop.f32.mrb[7].mxu0  ;;  %v228_v62 = vpop.f32.mrb[7].mxu1 }
  0xf5   :  { %v244_v63 = vmax.f32 %v194_v53, 0.0  ;;  %v252_v0 = vmax.f32 %v226_v54, 0.0  ;;  %v197_v1 = vadd.f32 %v341_v14, %v196_v61  ;;  %v229_v2 = vadd.f32 %v341_v14, %v228_v62 }
  0xf6   :  { %v385_v3 = vpack.c.bf16 %v246_v57, %v246_v57  ;;  %v393_v4 = vpack.c.bf16 %v254_v58, %v254_v58  ;;  %v247_v5 = vmax.f32 %v205_v59, 0.0  ;;  %v255_v6 = vmax.f32 %v237_v60, 0.0 }
  0xf7   :  { %v383_v7 = vpack.c.bf16 %v244_v63, %v244_v63  ;;  %v391_v8 = vpack.c.bf16 %v252_v0, %v252_v0  ;;  %v245_v9 = vmax.f32 %v197_v1, 0.0  ;;  %v253_v10 = vmax.f32 %v229_v2, 0.0 }
  0xf8   :  { %327 = vst.msk [vmem:[%s596_s3 + $0x18] sm:$0xf] %vm320_vm2, %v385_v3  ;;  %335 = vst.msk [vmem:[%s596_s3 + $0x38] sm:$0xf] %vm320_vm2, %v393_v4  ;;  %v386_v11 = vpack.c.bf16 %v247_v5, %v247_v5  ;;  %v394_v12 = vpack.c.bf16 %v255_v6, %v255_v6 }
  0xf9   :  { %325 = vst.msk [vmem:[%s596_s3 + $0x10] sm:$0xf] %vm320_vm2, %v383_v7  ;;  %333 = vst.msk [vmem:[%s596_s3 + $0x30] sm:$0xf] %vm320_vm2, %v391_v8  ;;  %v384_v13 = vpack.c.bf16 %v245_v9, %v245_v9  ;;  %v392_v14 = vpack.c.bf16 %v253_v10, %v253_v10 }
  0xfa   :  { %328 = vst.msk [vmem:[%s596_s3 + $0x1c] sm:$0xf] %vm320_vm2, %v386_v11  ;;  %336 = vst.msk [vmem:[%s596_s3 + $0x3c] sm:$0xf] %vm320_vm2, %v394_v12 }
  0xfb   :  { %326 = vst.msk [vmem:[%s596_s3 + $0x14] sm:$0xf] %vm320_vm2, %v384_v13  ;;  %334 = vst.msk [vmem:[%s596_s3 + $0x34] sm:$0xf] %vm320_vm2, %v392_v14 }

// kernel: cam_unet_forward.26
= control target key start
LH: loop header
LB: loop body
LE: loop exit
PB: predicated region body
PF: predicated region fallthrough
CT: control target
= control target key end

     0   :  { %s250_s6 = smov 0   ;;  %s267_s0 = inlined_call_operand.vmem [shape: bf16[2,4,2,4,32], index: 0, kind: input, shape index: {}]   ;;  %s268_s1 = inlined_call_operand.vmem [shape: bf16[2,4,4,16], index: 1, kind: output, shape index: {}]  }
   0x1 LB: > { %s209_s7 = sadd.s32 4294967295, %s237_s6   ;;  %p213_p0 = scmp.ge.s32.totalorder %s237_s6, 1  ;;  %s237_s6 = sphi %s250_s6, %s11_s6  }
   0x2   : > { %p87_p1 = scmp.lt.s32.totalorder %s237_s6, 3 }
   0x4   : > { %p88_p2 = pnand %p213_p0, %p87_p1 }
   0x5   : > { %p107_p3 = scmp.lt.s32.totalorder (!%p88_p2), %s209_s7, 1  ;;  %s239_s12 = smov (!%p88_p2), 112   ;;  %vm149_vm0 = vcmask (!%p88_p2), 123904  }
   0x6   : > { %91 = sbr.rel (%p88_p2) target bundleno = 142 (0x8e), region = 24 }
   0xd   : > { %s270_s7 = smov (!%p107_p3, %s209_s7), 1 }
   0xe   : > { %s220_s8 = sshll.u32 %s270_s7, 4  ;;  %s221_s13 = sshll.u32 %s270_s7, 3 }
   0xf   : > { %s111_s11 = scalar_lea.vmem %s267_s0, %s220_s8  ;;  %s116_s16 = scalar_lea.vmem %s268_s1, %s221_s13 }
  0x10   : > { %v121_v0 = vld [vmem:[%s111_s11 + $0x8] sm:$0x3]  ;;  %v122_v1 = vld [vmem:[%s111_s11 + $0xa] sm:$0x3]  ;;  %v117_v2 = vld [vmem:[%s111_s11] sm:$0x3] }
  0x11   : > { %v127_v3 = vmax.bf16 %v122_v1, %v121_v0  ;;  %v118_v4 = vld [vmem:[%s111_s11 + $0x2] sm:$0x3]  ;;  %v123_v5 = vld [vmem:[%s111_s11 + $0xc] sm:$0x3]  ;;  %v124_v6 = vld [vmem:[%s111_s11 + $0xe] sm:$0x3] }
  0x12   : > { %v125_v7 = vmax.bf16 %v118_v4, %v117_v2  ;;  %v119_v8 = vld [vmem:[%s111_s11 + $0x4] sm:$0x3]  ;;  %v120_v9 = vld [vmem:[%s111_s11 + $0x6] sm:$0x3]  ;;  %v128_v10 = vmax.bf16 %v124_v6, %v123_v5 }
  0x13   : > { %137 = vrot.lane.b32.xlu1 %v127_v3, %s239_s12  ;;  %v126_v11 = vmax.bf16 %v120_v9, %v119_v8 }
  0x14   : > { %133 = vrot.lane.b32.xlu0 %v125_v7, %s239_s12 }
  0x17   : > { %139 = vrot.lane.b32.xlu1 %v128_v10, %s239_s12 }
  0x18   : > { %135 = vrot.lane.b32.xlu0 %v126_v11, %s239_s12 }
  0x85   : > { %v138_v12 = vpop.permute.xlu1 %137 }
  0x86   : > { %v147_v13 = vmax.bf16 %v138_v12, %v127_v3  ;;  %v134_v14 = vpop.permute.xlu0 %133 }
  0x87   : > { %v145_v15 = vmax.bf16 %v134_v14, %v125_v7 }
  0x88   : > { %152 = vst.msk [vmem:[%s116_s16 + $0x4] sm:$0x3] %vm149_vm0, %v147_v13 }
  0x89   : > { %150 = vst.msk [vmem:[%s116_s16] sm:$0x3] %vm149_vm0, %v145_v15  ;;  %v140_v16 = vpop.permute.xlu1 %139 }
  0x8a   : > { %v148_v17 = vmax.bf16 %v140_v16, %v128_v10  ;;  %v136_v18 = vpop.permute.xlu0 %135 }
  0x8b   : > { %v146_v19 = vmax.bf16 %v136_v18, %v126_v11 }
  0x8c   : > { %153 = vst.msk [vmem:[%s116_s16 + $0x6] sm:$0x3] %vm149_vm0, %v148_v17 }
  0x8d   : > { %151 = vst.msk [vmem:[%s116_s16 + $0x2] sm:$0x3] %vm149_vm0, %v146_v19 }
  0x8e PF: > { %s11_s6 = sadd.s32 1, %s237_s6  }
  0x8f   : > { %p8_p4 = scmp.ge.s32.totalorder %s11_s6, 4  }
  0x91   :  { %10 = sbr.rel (!%p8_p4) target bundleno = 1 (0x1), region = 54 }

// kernel: cam_unet_forward.25
= control target key start
LH: loop header
LB: loop body
LE: loop exit
PB: predicated region body
PF: predicated region fallthrough
CT: control target
= control target key end

     0   :  { %v523_v0 = vmov 0   ;;  %vm182_vm0 = vcmask 130048   ;;  %vm384_vm1 = vcmask 125952   ;;  %s712_s1 = inlined_call_operand.vmem [shape: bf16[144,16], index: 1, kind: input, shape index: {}]   ;;  %s713_s0 = inlined_call_operand.vmem [shape: bf16[128,144], index: 0, kind: input, shape index: {}]   ;;  %s714_s2 = inlined_call_operand.vmem [shape: f32[1,16], index: 2, kind: input, shape index: {}]   ;;  %s715_s3 = inlined_call_operand.vmem [shape: bf16[128,16], index: 3, kind: output, shape index: {}]  }
   0x1   :  { %207 = vmatprep.subr.bf16.mxu0 %v523_v0  ;;  %471 = vmatprep.subr.bf16.mxu1 %v523_v0  ;;  %v490_v1 = vld [vmem:[%s712_s1] sm:$0xff]   ;;  %v491_v2 = vld [vmem:[%s712_s1 + $0x8] sm:$0xff]   ;;  %v492_v3 = vld [vmem:[%s712_s1 + $0x10] sm:$0xff]  }
   0x2   :  { %208 = vmatpush1.bf16.msra.mxu0 %v490_v1  ;;  %480 = vmatpush1.bf16.msra.mxu1 %v490_v1  ;;  %v493_v4 = vld [vmem:[%s712_s1 + $0x18] sm:$0xff]   ;;  %v501_v5 = vld [vmem:[%s713_s0 + $0x4] ss:$8 sps:$4 sm:$0xff]   ;;  %v496_v9 = vld [vmem:[%s712_s1 + $0x30] sm:$0xff]  }
   0x3   :  { %209 = vmatprep.subr.bf16.mxu0 %v523_v0  ;;  %472 = vmatprep.subr.bf16.mxu1 %v523_v0  ;;  %v504_v6 = vld [vmem:[%s713_s0 + $0x44] ss:$8 sps:$4 sm:$0xff]   ;;  %v497_v10 = vld [vmem:[%s712_s1 + $0x38] sm:$0xff]   ;;  %v499_v12 = vld [vmem:[%s713_s0] ss:$8 sps:$4 sm:$0xff]  }
   0x4   :  { %431 = vmatprep.mubr.msk.bf16.mxu0 %vm182_vm0, %v501_v5  ;;  %435 = vmatprep.mubr.msk.bf16.mxu1 %vm182_vm0, %v504_v6  ;;  %v494_v7 = vld [vmem:[%s712_s1 + $0x20] sm:$0xff]   ;;  %v495_v8 = vld [vmem:[%s712_s1 + $0x28] sm:$0xff]   ;;  %v505_v14 = vld [vmem:[%s713_s0 + $0x14] ss:$8 sps:$4 sm:$0xff]  }
   0x5   :  { %v498_v11 = vld [vmem:[%s712_s1 + $0x40] sm:$0xff]   ;;  %v507_v15 = vld [vmem:[%s713_s0 + $0x54] ss:$8 sps:$4 sm:$0xff]   ;;  %v509_v16 = vld [vmem:[%s713_s0 + $0x10] ss:$8 sps:$4 sm:$0xff]  }
   0x6   :  { %210 = vmatpush1.bf16.msra.mxu0 %v491_v2  ;;  %481 = vmatpush1.bf16.msra.mxu1 %v491_v2  ;;  %v502_v13 = vld [vmem:[%s713_s0 + $0x40] ss:$8 sps:$4 sm:$0xff]   ;;  %v510_v17 = vld [vmem:[%s713_s0 + $0x50] ss:$8 sps:$4 sm:$0xff]   ;;  %v511_v18 = vld [vmem:[%s713_s0 + $0x24] ss:$8 sps:$4 sm:$0xff]  }
   0x7   :  { %211 = vmatprep.subr.bf16.mxu0 %v523_v0  ;;  %473 = vmatprep.subr.bf16.mxu1 %v523_v0  ;;  %v513_v19 = vld [vmem:[%s713_s0 + $0x64] ss:$8 sps:$4 sm:$0xff]   ;;  %v515_v20 = vld [vmem:[%s713_s0 + $0x20] ss:$8 sps:$4 sm:$0xff]   ;;  %v517_v22 = vld [vmem:[%s713_s0 + $0x34] ss:$8 sps:$4 sm:$0xff]  }
   0x8   :  { %v516_v21 = vld [vmem:[%s713_s0 + $0x60] ss:$8 sps:$4 sm:$0xff]   ;;  %v519_v23 = vld [vmem:[%s713_s0 + $0x74] ss:$8 sps:$4 sm:$0xff]   ;;  %v521_v24 = vld [vmem:[%s713_s0 + $0x30] ss:$8 sps:$4 sm:$0xff]  }
   0x9   :  { %v522_v25 = vld [vmem:[%s713_s0 + $0x70] ss:$8 sps:$4 sm:$0xff]   ;;  %v630_v26 = vld [vmem:[%s714_s2] ss:$0 sm:$0xff] }
   0xa   :  { %212 = vmatpush1.bf16.msra.mxu0 %v492_v3  ;;  %482 = vmatpush1.bf16.msra.mxu1 %v492_v3 }
   0xb   :  { %213 = vmatprep.subr.bf16.mxu0 %v523_v0  ;;  %474 = vmatprep.subr.bf16.mxu1 %v523_v0 }
   0xe   :  { %214 = vmatpush1.bf16.msra.mxu0 %v493_v4  ;;  %483 = vmatpush1.bf16.msra.mxu1 %v493_v4 }
   0xf   :  { %215 = vmatprep.subr.bf16.mxu0 %v523_v0  ;;  %475 = vmatprep.subr.bf16.mxu1 %v523_v0 }
  0x12   :  { %216 = vmatpush1.bf16.msra.mxu0 %v494_v7  ;;  %484 = vmatpush1.bf16.msra.mxu1 %v494_v7 }
  0x13   :  { %217 = vmatprep.subr.bf16.mxu0 %v523_v0  ;;  %476 = vmatprep.subr.bf16.mxu1 %v523_v0 }
  0x16   :  { %218 = vmatpush1.bf16.msra.mxu0 %v495_v8  ;;  %485 = vmatpush1.bf16.msra.mxu1 %v495_v8 }
  0x17   :  { %219 = vmatprep.subr.bf16.mxu0 %v523_v0  ;;  %477 = vmatprep.subr.bf16.mxu1 %v523_v0 }
  0x1a   :  { %220 = vmatpush1.bf16.msra.mxu0 %v496_v9  ;;  %486 = vmatpush1.bf16.msra.mxu1 %v496_v9 }
  0x1b   :  { %221 = vmatprep.subr.bf16.mxu0 %v523_v0  ;;  %478 = vmatprep.subr.bf16.mxu1 %v523_v0 }
  0x1e   :  { %222 = vmatpush1.bf16.msra.mxu0 %v497_v10  ;;  %487 = vmatpush1.bf16.msra.mxu1 %v497_v10 }
  0x1f   :  { %223 = vmatprep.subr.bf16.mxu0 %v523_v0  ;;  %479 = vmatprep.subr.bf16.mxu1 %v523_v0 }
  0x22   :  { %224 = vmatpush1.bf16.msra.mxu0 %v498_v11  ;;  %488 = vmatpush1.bf16.msra.mxu1 %v498_v11 }
  0x25   :  { %240 = vmatmul.mubr.bf16.vlgmr.msra.gmra.mrb[0].mxu0 %v499_v12  ;;  %272 = vmatmul.mubr.bf16.vlgmr.msra.gmra.mrb[0].mxu1 %v502_v13 }
  0x26   :  { %432 = vmatprep.mubr.msk.bf16.mxu0 %vm182_vm0, %v505_v14  ;;  %436 = vmatprep.mubr.msk.bf16.mxu1 %vm182_vm0, %v507_v15 }
  0x2d   :  { %248 = vmatmul.mubr.bf16.gmra.mrb[4].mxu0 %v509_v16  ;;  %280 = vmatmul.mubr.bf16.gmra.mrb[4].mxu1 %v510_v17 }
  0x2e   :  { %433 = vmatprep.mubr.msk.bf16.mxu0 %vm182_vm0, %v511_v18  ;;  %437 = vmatprep.mubr.msk.bf16.mxu1 %vm182_vm0, %v513_v19 }
  0x35   :  { %256 = vmatmul.mubr.bf16.gmra.mrb[8].mxu0 %v515_v20  ;;  %288 = vmatmul.mubr.bf16.gmra.mrb[8].mxu1 %v516_v21 }
  0x36   :  { %434 = vmatprep.mubr.msk.bf16.mxu0 %vm182_vm0, %v517_v22  ;;  %438 = vmatprep.mubr.msk.bf16.mxu1 %vm182_vm0, %v519_v23 }
  0x3d   :  { %264 = vmatmul.mubr.bf16.gmra.mrb[12].mxu0 %v521_v24  ;;  %296 = vmatmul.mubr.bf16.gmra.mrb[12].mxu1 %v522_v25 }
  0xf8   :  { %v241_v27 = vpop.f32.mrb[0].mxu0  ;;  %v273_v28 = vpop.f32.mrb[0].mxu1 }
  0xf9   :  { %v242_v29 = vadd.f32 %v630_v26, %v241_v27  ;;  %v274_v30 = vadd.f32 %v630_v26, %v273_v28  ;;  %v243_v31 = vpop.f32.mrb[1].mxu0  ;;  %v275_v32 = vpop.f32.mrb[1].mxu1 }
  0xfa   :  { %v244_v33 = vpop.f32.mrb[2].mxu0  ;;  %v276_v34 = vpop.f32.mrb[2].mxu1 }
  0xfb   :  { %v304_v35 = vmax.f32 %v242_v29, 0.0  ;;  %v312_v36 = vmax.f32 %v274_v30, 0.0  ;;  %v245_v37 = vadd.f32 %v630_v26, %v244_v33  ;;  %v277_v38 = vadd.f32 %v630_v26, %v276_v34  ;;  %v246_v39 = vpop.f32.mrb[3].mxu0  ;;  %v278_v40 = vpop.f32.mrb[3].mxu1 }
  0xfd   :  { %v455_v41 = vpack.c.bf16 %v304_v35, %v304_v35  ;;  %v463_v42 = vpack.c.bf16 %v312_v36, %v312_v36  ;;  %v305_v43 = vmax.f32 %v245_v37, 0.0  ;;  %v313_v44 = vmax.f32 %v277_v38, 0.0 }
  0xff   :  { %385 = vst.msk [vmem:[%s715_s3] sm:$0xf] %vm384_vm1, %v455_v41  ;;  %393 = vst.msk [vmem:[%s715_s3 + $0x20] sm:$0xf] %vm384_vm1, %v463_v42  ;;  %v456_v45 = vpack.c.bf16 %v305_v43, %v305_v43  ;;  %v464_v46 = vpack.c.bf16 %v313_v44, %v313_v44 }
 0x100   :  { %v249_v47 = vpop.f32.mrb[4].mxu0  ;;  %v281_v48 = vpop.f32.mrb[4].mxu1 }
 0x101   :  { %386 = vst.msk [vmem:[%s715_s3 + $0x4] sm:$0xf] %vm384_vm1, %v456_v45  ;;  %394 = vst.msk [vmem:[%s715_s3 + $0x24] sm:$0xf] %vm384_vm1, %v464_v46  ;;  %v250_v49 = vadd.f32 %v630_v26, %v249_v47  ;;  %v282_v50 = vadd.f32 %v630_v26, %v281_v48  ;;  %v251_v51 = vpop.f32.mrb[5].mxu0  ;;  %v283_v52 = vpop.f32.mrb[5].mxu1 }
 0x102   :  { %v252_v53 = vpop.f32.mrb[6].mxu0  ;;  %v284_v54 = vpop.f32.mrb[6].mxu1 }
 0x103   :  { %v306_v55 = vmax.f32 %v250_v49, 0.0  ;;  %v314_v56 = vmax.f32 %v282_v50, 0.0  ;;  %v253_v57 = vadd.f32 %v630_v26, %v252_v53  ;;  %v285_v58 = vadd.f32 %v630_v26, %v284_v54  ;;  %v254_v59 = vpop.f32.mrb[7].mxu0  ;;  %v286_v60 = vpop.f32.mrb[7].mxu1 }
 0x105   :  { %v457_v61 = vpack.c.bf16 %v306_v55, %v306_v55  ;;  %v465_v62 = vpack.c.bf16 %v314_v56, %v314_v56  ;;  %v307_v63 = vmax.f32 %v253_v57, 0.0  ;;  %v315_v0 = vmax.f32 %v285_v58, 0.0 }
 0x107   :  { %387 = vst.msk [vmem:[%s715_s3 + $0x8] sm:$0xf] %vm384_vm1, %v457_v61  ;;  %395 = vst.msk [vmem:[%s715_s3 + $0x28] sm:$0xf] %vm384_vm1, %v465_v62  ;;  %v458_v1 = vpack.c.bf16 %v307_v63, %v307_v63  ;;  %v466_v2 = vpack.c.bf16 %v315_v0, %v315_v0 }
 0x108   :  { %v257_v3 = vpop.f32.mrb[8].mxu0  ;;  %v289_v4 = vpop.f32.mrb[8].mxu1 }
 0x109   :  { %388 = vst.msk [vmem:[%s715_s3 + $0xc] sm:$0xf] %vm384_vm1, %v458_v1  ;;  %396 = vst.msk [vmem:[%s715_s3 + $0x2c] sm:$0xf] %vm384_vm1, %v466_v2  ;;  %v258_v5 = vadd.f32 %v630_v26, %v257_v3  ;;  %v290_v6 = vadd.f32 %v630_v26, %v289_v4  ;;  %v259_v7 = vpop.f32.mrb[9].mxu0  ;;  %v291_v8 = vpop.f32.mrb[9].mxu1 }
 0x10a   :  { %v260_v9 = vpop.f32.mrb[10].mxu0  ;;  %v292_v10 = vpop.f32.mrb[10].mxu1 }
 0x10b   :  { %v308_v11 = vmax.f32 %v258_v5, 0.0  ;;  %v316_v12 = vmax.f32 %v290_v6, 0.0  ;;  %v261_v13 = vadd.f32 %v630_v26, %v260_v9  ;;  %v293_v14 = vadd.f32 %v630_v26, %v292_v10  ;;  %v262_v15 = vpop.f32.mrb[11].mxu0  ;;  %v294_v16 = vpop.f32.mrb[11].mxu1 }
 0x10d   :  { %v459_v17 = vpack.c.bf16 %v308_v11, %v308_v11  ;;  %v467_v18 = vpack.c.bf16 %v316_v12, %v316_v12  ;;  %v309_v19 = vmax.f32 %v261_v13, 0.0  ;;  %v317_v20 = vmax.f32 %v293_v14, 0.0 }
 0x10f   :  { %389 = vst.msk [vmem:[%s715_s3 + $0x10] sm:$0xf] %vm384_vm1, %v459_v17  ;;  %397 = vst.msk [vmem:[%s715_s3 + $0x30] sm:$0xf] %vm384_vm1, %v467_v18  ;;  %v460_v21 = vpack.c.bf16 %v309_v19, %v309_v19  ;;  %v468_v22 = vpack.c.bf16 %v317_v20, %v317_v20 }
 0x110   :  { %v265_v23 = vpop.f32.mrb[12].mxu0  ;;  %v297_v24 = vpop.f32.mrb[12].mxu1 }
 0x111   :  { %390 = vst.msk [vmem:[%s715_s3 + $0x14] sm:$0xf] %vm384_vm1, %v460_v21  ;;  %398 = vst.msk [vmem:[%s715_s3 + $0x34] sm:$0xf] %vm384_vm1, %v468_v22  ;;  %v266_v25 = vadd.f32 %v630_v26, %v265_v23  ;;  %v298_v27 = vadd.f32 %v630_v26, %v297_v24  ;;  %v267_v28 = vpop.f32.mrb[13].mxu0  ;;  %v299_v29 = vpop.f32.mrb[13].mxu1 }
 0x112   :  { %v268_v30 = vpop.f32.mrb[14].mxu0  ;;  %v300_v31 = vpop.f32.mrb[14].mxu1 }
 0x113   :  { %v310_v32 = vmax.f32 %v266_v25, 0.0  ;;  %v318_v33 = vmax.f32 %v298_v27, 0.0  ;;  %v269_v34 = vadd.f32 %v630_v26, %v268_v30  ;;  %v301_v35 = vadd.f32 %v630_v26, %v300_v31  ;;  %v270_v36 = vpop.f32.mrb[15].mxu0  ;;  %v302_v37 = vpop.f32.mrb[15].mxu1 }
 0x115   :  { %v461_v38 = vpack.c.bf16 %v310_v32, %v310_v32  ;;  %v469_v39 = vpack.c.bf16 %v318_v33, %v318_v33  ;;  %v311_v40 = vmax.f32 %v269_v34, 0.0  ;;  %v319_v41 = vmax.f32 %v301_v35, 0.0 }
 0x117   :  { %391 = vst.msk [vmem:[%s715_s3 + $0x18] sm:$0xf] %vm384_vm1, %v461_v38  ;;  %399 = vst.msk [vmem:[%s715_s3 + $0x38] sm:$0xf] %vm384_vm1, %v469_v39  ;;  %v462_v42 = vpack.c.bf16 %v311_v40, %v311_v40  ;;  %v470_v43 = vpack.c.bf16 %v319_v41, %v319_v41 }
 0x119   :  { %392 = vst.msk [vmem:[%s715_s3 + $0x1c] sm:$0xf] %vm384_vm1, %v462_v42  ;;  %400 = vst.msk [vmem:[%s715_s3 + $0x3c] sm:$0xf] %vm384_vm1, %v470_v43 }

// kernel: tile.13
= control target key start
LH: loop header
LB: loop body
LE: loop exit
PB: predicated region body
PF: predicated region fallthrough
CT: control target
= control target key end

     0   :  { %s22_s0 = inlined_call_operand.vmem [shape: f32[16], index: 0, kind: input, shape index: {}]   ;;  %s23_s1 = inlined_call_operand.vmem [shape: f32[4,16], index: 1, kind: output, shape index: {}]  }
   0x1   :  { %v4_v0 = vld [vmem:[%s22_s0] ss:$0 sm:$0xff] }
   0x2   :  { %5 = vst [vmem:[%s23_s1] sm:$0xf] %v4_v0 }

// kernel: tile.14
= control target key start
LH: loop header
LB: loop body
LE: loop exit
PB: predicated region body
PF: predicated region fallthrough
CT: control target
= control target key end

     0   :  { %vm7_vm0 = vcmask 130048   ;;  %s37_s8 = smov 16   ;;  %s38_s9 = smov 32   ;;  %vm13_vm1 = vcmask 523648   ;;  %vm19_vm2 = vcmask 392448   ;;  %vm25_vm3 = vcmask 261248   ;;  %s55_s0 = inlined_call_operand.vmem [shape: f32[4,16], index: 0, kind: input, shape index: {}]   ;;  %s56_s1 = inlined_call_operand.vmem [shape: f32[1,64], index: 1, kind: output, shape index: {}]  }
   0x1   :  { %v4_v0 = vld [vmem:[%s55_s0] sm:$0xf]  ;;  %s36_s0 = smov 48  }
   0x2   :  { %5 = vst [vmem:[#allocation1] sm:$0xf] %v4_v0 }
   0x9   :  { %v10_v1 = vld [vmem:[#allocation1 + $0x3] sm:$0x1]   ;;  %v22_v2 = vld [vmem:[#allocation1 + $0x1] sm:$0x1]   ;;  %v6_v3 = vld [vmem:[#allocation1] sm:$0x1]  }
   0xa   :  { %11 = vrot.lane.b32.xlu0 %v10_v1, %s36_s0  ;;  %23 = vrot.lane.b32.xlu1 %v22_v2, %s37_s8  ;;  %v16_v4 = vld [vmem:[#allocation1 + $0x2] sm:$0x1]   ;;  %8 = vst.msk [vmem:[#allocation0] sm:$0x1] %vm7_vm0, %v6_v3  }
   0xe   :  { %17 = vrot.lane.b32.xlu0 %v16_v4, %s38_s9 }
  0x7c   :  { %v12_v5 = vpop.permute.xlu0 %11   ;;  %v24_v6 = vpop.permute.xlu1 %23  }
  0x7d   :  { %14 = vst.msk [vmem:[#allocation0] sm:$0x1] %vm13_vm1, %v12_v5  }
  0x80   :  { %v18_v7 = vpop.permute.xlu0 %17  }
  0x81   :  { %20 = vst.msk [vmem:[#allocation0] sm:$0x1] %vm19_vm2, %v18_v7  }
  0x82   :  { %26 = vst.msk [vmem:[#allocation0] sm:$0x1] %vm25_vm3, %v24_v6  }
  0x89   :  { %v30_v8 = vld [vmem:[#allocation0] sm:$0x1] }
  0x8a   :  { %32 = vst [vmem:[%s56_s1] sm:$0x1] %v30_v8 }

// kernel: cam_unet_forward.27
= control target key start
LH: loop header
LB: loop body
LE: loop exit
PB: predicated region body
PF: predicated region fallthrough
CT: control target
= control target key end

     0   :  { %v259_v0 = vmov 0   ;;  %vm116_vm0 = vcmask 130048   ;;  %vm192_vm1 = vcmask 257024   ;;  %s334_s1 = inlined_call_operand.vmem [shape: bf16[144,32], index: 1, kind: input, shape index: {}]   ;;  %s335_s0 = inlined_call_operand.vmem [shape: bf16[32,144], index: 0, kind: input, shape index: {}]   ;;  %s336_s2 = inlined_call_operand.vmem [shape: f32[1,32], index: 2, kind: input, shape index: {}]   ;;  %s337_s3 = inlined_call_operand.vmem [shape: bf16[32,32], index: 3, kind: output, shape index: {}]  }
   0x1   :  { %123 = vmatprep.subr.bf16.mxu0 %v259_v0  ;;  %225 = vmatprep.subr.bf16.mxu1 %v259_v0  ;;  %v244_v1 = vld [vmem:[%s334_s1] sm:$0xff]   ;;  %v245_v2 = vld [vmem:[%s334_s1 + $0x8] sm:$0xff]   ;;  %v246_v3 = vld [vmem:[%s334_s1 + $0x10] sm:$0xff]  }
   0x2   :  { %124 = vmatpush1.bf16.msra.mxu0 %v244_v1  ;;  %234 = vmatpush1.bf16.msra.mxu1 %v244_v1  ;;  %v247_v4 = vld [vmem:[%s334_s1 + $0x18] sm:$0xff]   ;;  %v255_v5 = vld [vmem:[%s335_s0 + $0x4] ss:$8 sps:$4 sm:$0xff]   ;;  %v250_v9 = vld [vmem:[%s334_s1 + $0x30] sm:$0xff]  }
   0x3   :  { %125 = vmatprep.subr.bf16.mxu0 %v259_v0  ;;  %226 = vmatprep.subr.bf16.mxu1 %v259_v0  ;;  %v258_v6 = vld [vmem:[%s335_s0 + $0x14] ss:$8 sps:$4 sm:$0xff]   ;;  %v248_v7 = vld [vmem:[%s334_s1 + $0x20] sm:$0xff]   ;;  %v249_v8 = vld [vmem:[%s334_s1 + $0x28] sm:$0xff]  }
   0x4   :  { %215 = vmatprep.mubr.msk.bf16.mxu0 %vm116_vm0, %v255_v5  ;;  %216 = vmatprep.mubr.msk.bf16.mxu1 %vm116_vm0, %v258_v6  ;;  %v251_v10 = vld [vmem:[%s334_s1 + $0x38] sm:$0xff]   ;;  %v252_v11 = vld [vmem:[%s334_s1 + $0x40] sm:$0xff]  }
   0x5   :  { %v253_v12 = vld [vmem:[%s335_s0] ss:$8 sps:$4 sm:$0xff]   ;;  %v256_v13 = vld [vmem:[%s335_s0 + $0x10] ss:$8 sps:$4 sm:$0xff]  }
   0x6   :  { %126 = vmatpush1.bf16.msra.mxu0 %v245_v2  ;;  %235 = vmatpush1.bf16.msra.mxu1 %v245_v2  ;;  %v201_v14 = vld [vmem:[%s336_s2] ss:$0 sm:$0xff] }
   0x7   :  { %127 = vmatprep.subr.bf16.mxu0 %v259_v0  ;;  %227 = vmatprep.subr.bf16.mxu1 %v259_v0 }
   0xa   :  { %128 = vmatpush1.bf16.msra.mxu0 %v246_v3  ;;  %236 = vmatpush1.bf16.msra.mxu1 %v246_v3 }
   0xb   :  { %129 = vmatprep.subr.bf16.mxu0 %v259_v0  ;;  %228 = vmatprep.subr.bf16.mxu1 %v259_v0 }
   0xe   :  { %130 = vmatpush1.bf16.msra.mxu0 %v247_v4  ;;  %237 = vmatpush1.bf16.msra.mxu1 %v247_v4 }
   0xf   :  { %131 = vmatprep.subr.bf16.mxu0 %v259_v0  ;;  %229 = vmatprep.subr.bf16.mxu1 %v259_v0 }
  0x12   :  { %132 = vmatpush1.bf16.msra.mxu0 %v248_v7  ;;  %238 = vmatpush1.bf16.msra.mxu1 %v248_v7 }
  0x13   :  { %133 = vmatprep.subr.bf16.mxu0 %v259_v0  ;;  %230 = vmatprep.subr.bf16.mxu1 %v259_v0 }
  0x16   :  { %134 = vmatpush1.bf16.msra.mxu0 %v249_v8  ;;  %239 = vmatpush1.bf16.msra.mxu1 %v249_v8 }
  0x17   :  { %135 = vmatprep.subr.bf16.mxu0 %v259_v0  ;;  %231 = vmatprep.subr.bf16.mxu1 %v259_v0 }
  0x1a   :  { %136 = vmatpush1.bf16.msra.mxu0 %v250_v9  ;;  %240 = vmatpush1.bf16.msra.mxu1 %v250_v9 }
  0x1b   :  { %137 = vmatprep.subr.bf16.mxu0 %v259_v0  ;;  %232 = vmatprep.subr.bf16.mxu1 %v259_v0 }
  0x1e   :  { %138 = vmatpush1.bf16.msra.mxu0 %v251_v10  ;;  %241 = vmatpush1.bf16.msra.mxu1 %v251_v10 }
  0x1f   :  { %139 = vmatprep.subr.bf16.mxu0 %v259_v0  ;;  %233 = vmatprep.subr.bf16.mxu1 %v259_v0 }
  0x22   :  { %140 = vmatpush1.bf16.msra.mxu0 %v252_v11  ;;  %242 = vmatpush1.bf16.msra.mxu1 %v252_v11 }
  0x25   :  { %156 = vmatmul.mubr.bf16.vlgmr.msra.gmra.mrb[0].mxu0 %v253_v12  ;;  %164 = vmatmul.mubr.bf16.vlgmr.msra.gmra.mrb[0].mxu1 %v256_v13 }
  0xf8   :  { %v157_v15 = vpop.f32.mrb[0].mxu0  ;;  %v165_v16 = vpop.f32.mrb[0].mxu1 }
  0xf9   :  { %v158_v17 = vadd.f32 %v201_v14, %v157_v15  ;;  %v166_v18 = vadd.f32 %v201_v14, %v165_v16  ;;  %v159_v19 = vpop.f32.mrb[1].mxu0  ;;  %v167_v20 = vpop.f32.mrb[1].mxu1 }
  0xfa   :  { %v160_v21 = vpop.f32.mrb[2].mxu0  ;;  %v168_v22 = vpop.f32.mrb[2].mxu1 }
  0xfb   :  { %v172_v23 = vmax.f32 %v158_v17, 0.0  ;;  %v174_v24 = vmax.f32 %v166_v18, 0.0  ;;  %v161_v25 = vadd.f32 %v201_v14, %v160_v21  ;;  %v169_v26 = vadd.f32 %v201_v14, %v168_v22  ;;  %v162_v27 = vpop.f32.mrb[3].mxu0  ;;  %v170_v28 = vpop.f32.mrb[3].mxu1 }
  0xfd   :  { %v221_v29 = vpack.c.bf16 %v172_v23, %v172_v23  ;;  %v223_v30 = vpack.c.bf16 %v174_v24, %v174_v24  ;;  %v173_v31 = vmax.f32 %v161_v25, 0.0  ;;  %v175_v32 = vmax.f32 %v169_v26, 0.0 }
  0xff   :  { %193 = vst.msk [vmem:[%s337_s3] sm:$0xf] %vm192_vm1, %v221_v29  ;;  %195 = vst.msk [vmem:[%s337_s3 + $0x8] sm:$0xf] %vm192_vm1, %v223_v30  ;;  %v222_v33 = vpack.c.bf16 %v173_v31, %v173_v31  ;;  %v224_v34 = vpack.c.bf16 %v175_v32, %v175_v32 }
 0x101   :  { %194 = vst.msk [vmem:[%s337_s3 + $0x4] sm:$0xf] %vm192_vm1, %v222_v33  ;;  %196 = vst.msk [vmem:[%s337_s3 + $0xc] sm:$0xf] %vm192_vm1, %v224_v34 }

// kernel: cam_unet_forward.28
= control target key start
LH: loop header
LB: loop body
LE: loop exit
PB: predicated region body
PF: predicated region fallthrough
CT: control target
= control target key end

     0   :  { %vm204_vm0 = vcmask 261120   ;;  %vm329_vm1 = vcmask 257024   ;;  %s550_s1 = inlined_call_operand.vmem [shape: bf16[288,32], index: 1, kind: input, shape index: {}]   ;;  %s551_s0 = inlined_call_operand.vmem [shape: bf16[32,288], index: 0, kind: input, shape index: {}]   ;;  %s552_s2 = inlined_call_operand.vmem [shape: f32[1,32], index: 2, kind: input, shape index: {}]   ;;  %s553_s3 = inlined_call_operand.vmem [shape: bf16[32,32], index: 3, kind: output, shape index: {}]  }
   0x1   :  { %v413_v0 = vld [vmem:[%s550_s1 + $0x40] sm:$0xff]   ;;  %v415_v2 = vld [vmem:[%s550_s1 + $0x48] sm:$0xff]   ;;  %v417_v4 = vld [vmem:[%s550_s1 + $0x50] sm:$0xff]  }
   0x2   :  { %v414_v1 = vld [vmem:[%s550_s1] sm:$0xff]   ;;  %373 = vmatprep.subr.bf16.mxu0 %v413_v0  ;;  %v416_v3 = vld [vmem:[%s550_s1 + $0x8] sm:$0xff]   ;;  %v418_v5 = vld [vmem:[%s550_s1 + $0x10] sm:$0xff]  }
   0x3   :  { %374 = vmatpush3.bf16.msra.mxu0 %v414_v1  ;;  %v419_v6 = vld [vmem:[%s550_s1 + $0x58] sm:$0xff]   ;;  %v421_v8 = vld [vmem:[%s550_s1 + $0x60] sm:$0xff]   ;;  %v423_v11 = vld [vmem:[%s550_s1 + $0x68] sm:$0xff]  }
   0x4   :  { %375 = vmatprep.subr.bf16.mxu0 %v415_v2  ;;  %v420_v7 = vld [vmem:[%s550_s1 + $0x18] sm:$0xff]   ;;  %v422_v9 = vld [vmem:[%s550_s1 + $0x20] sm:$0xff]   ;;  %v424_v12 = vld [vmem:[%s550_s1 + $0x28] sm:$0xff]  }
   0x5   :  { %v428_v10 = vld [vmem:[%s550_s1 + $0x80] sm:$0xff]   ;;  %v425_v13 = vld [vmem:[%s550_s1 + $0x70] sm:$0xff]   ;;  %v433_v15 = vld [vmem:[%s550_s1 + $0x88] sm:$0xff]  }
   0x6   :  { %405 = vmatprep.subr.bf16.mxu1 %v428_v10  ;;  %v432_v14 = vld [vmem:[%s551_s0 + $0x4] ss:$12 sps:$4 sm:$0xff]   ;;  %v434_v16 = vld [vmem:[%s551_s0 + $0x8] ss:$12 sps:$4 sm:$0xff]   ;;  %v435_v17 = vld [vmem:[%s551_s0 + $0x20] ss:$12 sps:$4 sm:$0xff]  }
   0x7   :  { %376 = vmatpush3.bf16.msra.mxu0 %v416_v3  ;;  %406 = vmatpush3.bf16.msra.mxu1 %v428_v10  ;;  %v426_v18 = vld [vmem:[%s550_s1 + $0x30] sm:$0xff]   ;;  %v427_v19 = vld [vmem:[%s550_s1 + $0x78] sm:$0xff]   ;;  %v430_v21 = vld [vmem:[%s551_s0] ss:$12 sps:$4 sm:$0xff]  }
   0x8   :  { %377 = vmatprep.subr.bf16.mxu0 %v417_v4  ;;  %243 = vmatprep.mubr.bf16.mxu0 %v432_v14  ;;  %v429_v20 = vld [vmem:[%s550_s1 + $0x38] sm:$0xff]   ;;  %v338_v30 = vld [vmem:[%s552_s2] ss:$0 sm:$0xff] }
   0x9   :  { %407 = vmatprep.subr.bf16.mxu1 %v433_v15  ;;  %409 = vmatprep.mubr.msk.bf16.mxu1 %vm204_vm0, %v434_v16  ;;  %v436_v22 = vld [vmem:[%s551_s0 + $0x1c] ss:$12 sps:$4 sm:$0xff]   ;;  %v438_v23 = vld [vmem:[%s551_s0 + $0x18] ss:$12 sps:$4 sm:$0xff]  }
   0xb   :  { %378 = vmatpush3.bf16.msra.mxu0 %v418_v5  ;;  %408 = vmatpush3.bf16.msra.mxu1 %v433_v15 }
   0xc   :  { %379 = vmatprep.subr.bf16.mxu0 %v419_v6 }
   0xe   :  { %410 = vmatmul.mubr.msk.bf16.vlgmr.msra.gmra.mrb[0].mxu1 %vm204_vm0, %v435_v17 }
   0xf   :  { %380 = vmatpush3.bf16.msra.mxu0 %v420_v7 }
  0x10   :  { %381 = vmatprep.subr.bf16.mxu0 %v421_v8 }
  0x13   :  { %382 = vmatpush3.bf16.msra.mxu0 %v422_v9 }
  0x14   :  { %383 = vmatprep.subr.bf16.mxu0 %v423_v11 }
  0x17   :  { %384 = vmatpush3.bf16.msra.mxu0 %v424_v12 }
  0x18   :  { %385 = vmatprep.subr.bf16.mxu0 %v425_v13 }
  0x1b   :  { %386 = vmatpush3.bf16.msra.mxu0 %v426_v18 }
  0x1c   :  { %387 = vmatprep.subr.bf16.mxu0 %v427_v19 }
  0x1f   :  { %388 = vmatpush3.bf16.msra.mxu0 %v429_v20 }
  0x22   :  { %244 = vmatmul.mubr.bf16.vlgmr.msra.gmra.mrb[0].mxu0 %v430_v21 }
  0x23   :  { %251 = vmatprep.mubr.bf16.mxu0 %v436_v22 }
  0x2a   :  { %252 = vmatmul.mubr.bf16.gmra.mrb[4].mxu0 %v438_v23 }
  0xe1   :  { %v411_v24 = vpop.f32.mrb[0].mxu1 }
  0xe2   :  { %v294_v25 = vpop.f32.mrb[1].mxu1 }
  0xe3   :  { %v412_v26 = vpop.f32.mrb[2].mxu1 }
  0xe4   :  { %v297_v27 = vpop.f32.mrb[3].mxu1 }
  0xf5   :  { %v389_v28 = vpop.f32.mrb[0].mxu0 }
  0xf6   :  { %v390_v29 = vpop.f32.mrb[1].mxu0 }
  0xf7   :  { %v391_v31 = vadd.f32 %v390_v29, %v389_v28  ;;  %v392_v32 = vpop.f32.mrb[2].mxu0 }
  0xf8   :  { %v393_v33 = vpop.f32.mrb[3].mxu0 }
  0xf9   :  { %v394_v34 = vadd.f32 %v393_v33, %v392_v32  ;;  %v246_v35 = vadd.f32 %v391_v31, %v338_v30 }
  0xfb   :  { %v295_v36 = vadd.f32 %v294_v25, %v246_v35  ;;  %v249_v37 = vadd.f32 %v394_v34, %v338_v30 }
  0xfd   :  { %v309_v38 = vmax.f32 %v295_v36, 0.0  ;;  %v298_v39 = vadd.f32 %v297_v27, %v249_v37  ;;  %v395_v40 = vpop.f32.mrb[4].mxu0 }
  0xfe   :  { %v396_v41 = vpop.f32.mrb[5].mxu0 }
  0xff   :  { %v369_v42 = vpack.c.bf16 %v309_v38, %v309_v38  ;;  %v310_v43 = vmax.f32 %v298_v39, 0.0  ;;  %v397_v44 = vadd.f32 %v396_v41, %v395_v40  ;;  %v398_v45 = vpop.f32.mrb[6].mxu0 }
 0x100   :  { %v399_v46 = vpop.f32.mrb[7].mxu0 }
 0x101   :  { %330 = vst.msk [vmem:[%s553_s3] sm:$0xf] %vm329_vm1, %v369_v42  ;;  %v370_v47 = vpack.c.bf16 %v310_v43, %v310_v43  ;;  %v254_v48 = vadd.f32 %v397_v44, %v338_v30  ;;  %v400_v49 = vadd.f32 %v399_v46, %v398_v45 }
 0x103   :  { %331 = vst.msk [vmem:[%s553_s3 + $0x4] sm:$0xf] %vm329_vm1, %v370_v47  ;;  %v303_v50 = vadd.f32 %v411_v24, %v254_v48  ;;  %v257_v51 = vadd.f32 %v400_v49, %v338_v30 }
 0x105   :  { %v311_v52 = vmax.f32 %v303_v50, 0.0  ;;  %v306_v53 = vadd.f32 %v412_v26, %v257_v51 }
 0x107   :  { %v371_v54 = vpack.c.bf16 %v311_v52, %v311_v52  ;;  %v312_v55 = vmax.f32 %v306_v53, 0.0 }
 0x109   :  { %332 = vst.msk [vmem:[%s553_s3 + $0x8] sm:$0xf] %vm329_vm1, %v371_v54  ;;  %v372_v56 = vpack.c.bf16 %v312_v55, %v312_v55 }
 0x10b   :  { %333 = vst.msk [vmem:[%s553_s3 + $0xc] sm:$0xf] %vm329_vm1, %v372_v56 }

// kernel: cam_unet_forward.31
= control target key start
LH: loop header
LB: loop body
LE: loop exit
PB: predicated region body
PF: predicated region fallthrough
CT: control target
= control target key end

     0   :  { %s456_s12 = smov 0   ;;  %s490_s0 = inlined_call_operand.vmem [shape: bf16[2,16,32], index: 0, kind: input, shape index: {}]   ;;  %s491_s1 = inlined_call_operand.vmem [shape: bf16[32,64], index: 1, kind: input, shape index: {}]   ;;  %s492_s2 = inlined_call_operand.vmem [shape: f32[1,64], index: 2, kind: input, shape index: {}]   ;;  %s493_s3 = inlined_call_operand.vmem [shape: bf16[2,8,4,32], index: 3, kind: output, shape index: {}]  }
   0x1 LB: > { %s373_s13 = sadd.s32 4294967295, %s430_s12   ;;  %p377_p0 = scmp.ge.s32.totalorder %s430_s12, 1  ;;  %s430_s12 = sphi %s456_s12, %s13_s12  }
   0x2   : > { %p137_p1 = scmp.lt.s32.totalorder %s430_s12, 3 }
   0x4   : > { %p138_p2 = pnand %p377_p0, %p137_p1 }
   0x5   : > { %v421_v0 = vld [vmem:[%s491_s1] sm:$0xff] (!%p138_p2)   ;;  %v432_v1 = vmov (!%p138_p2), 0.0   ;;  %v422_v2 = vld [vmem:[%s491_s1 + $0x8] sm:$0xff] (!%p138_p2)   ;;  %vm433_vm0 = vmmov (!%p138_p2), 0   ;;  %p161_p3 = scmp.lt.s32.totalorder (!%p138_p2), %s373_s13, 1  ;;  %vm202_vm1 = vcmask (!%p138_p2), 261120   ;;  %v258_v10 = vlaneseq (!%p138_p2) }
   0x6   : > { %141 = sbr.rel (%p138_p2) target bundleno = 365 (0x16d), region = 32  ;;  %401 = vmatprep.subr.bf16.mxu0 (!%p138_p2), %v432_v1  ;;  %405 = vmatprep.mubr.msk.bf16.mxu0 (!%p138_p2), %vm433_vm0, %v432_v1  ;;  %v382_v4 = vld [vmem:[%s492_s2] ss:$0 sm:$0xff] (!%p138_p2)  ;;  %vm247_vm2 = vcmask (!%p138_p2), 523264   ;;  %v434_v8 = vmov (!%p138_p2), 1983009808  }
   0x7   : > { %402 = vmatpush3.bf16.msra.mxu0 (!%p138_p2), %v421_v0  ;;  %v256_v9 = vunpack.c.l.s4 (!%p138_p2), %v434_v8  ;;  %v259_v15 = vshrl.u32 (!%p138_p2), %v258_v10, 7  ;;  %vm252_vm3 = vcmask (!%p138_p2), 254976   ;;  %s435_s28 = smov (!%p138_p2), 96  }
   0x8   : > { %403 = vmatprep.subr.bf16.mxu0 (!%p138_p2), %v432_v1 }
   0x9   : > { %v257_v14 = vunpack.c.0.s8 (!%p138_p2), %v256_v9 }
   0xb   : > { %404 = vmatpush3.bf16.msra.mxu0 (!%p138_p2), %v422_v2  ;;  %v260_v16 = vsub.s32 (!%p138_p2), %v257_v14, %v259_v15 }
   0xd   : > { %s495_s13 = smov (!%p161_p3, %s373_s13), 1 }
   0xe   : > { %s396_s18 = sshll.u32 %s495_s13, 3  ;;  %s397_s24 = sshll.u32 %s495_s13, 4 }
   0xf   : > { %s165_s21 = scalar_lea.vmem %s490_s0, %s396_s18  ;;  %s170_s27 = scalar_lea.vmem %s493_s3, %s397_s24 }
  0x10   : > { %v423_v3 = vld [vmem:[%s165_s21] sm:$0xff]  }
  0x11   : > { %406 = vmatmul.mubr.msk.bf16.vlgmr.msra.gmra.mrb[0].mxu0 %vm202_vm1, %v423_v3 }
  0xe4   : > { %v240_v5 = vpop.f32.mrb[0].mxu0 }
  0xe5   : > { %v241_v6 = vadd.f32 %v382_v4, %v240_v5  ;;  %v407_v7 = vpop.f32.mrb[1].mxu0 }
  0xe6   : > { %v243_v11 = vpop.f32.mrb[2].mxu0 }
  0xe7   : > { %248 = vst.msk [vmem:[#allocation2] sm:$0xff] %vm247_vm2, %v241_v6  ;;  %v244_v12 = vadd.f32 %v382_v4, %v243_v11  ;;  %v408_v13 = vpop.f32.mrb[3].mxu0 }
  0xe9   : > { %249 = vst.msk [vmem:[#allocation2 + $0x8] sm:$0xff] %vm247_vm2, %v244_v12 }
  0xee   : > { %v250_v17 = vld [vmem:[#allocation2] sm:$0xf]  ;;  %v267_v18 = vld [vmem:[#allocation2 + $0x4] sm:$0xf] }
  0xef   : > { %v251_v19 = vpack.c.bf16 %v250_v17, %v250_v17  ;;  %v268_v20 = vpack.c.bf16 %v267_v18, %v267_v18 }
  0xf0   : > { %v284_v21 = vld [vmem:[#allocation2 + $0x8] sm:$0xf]  ;;  %v301_v22 = vld [vmem:[#allocation2 + $0xc] sm:$0xf] }
  0xf1   : > { %v261_v23 = vrot.slane %v251_v19, %v260_v16  ;;  %253 = vst.msk [vmem:[%s170_s27] sm:$0x3] %vm252_vm3, %v251_v19  ;;  %v285_v24 = vpack.c.bf16 %v284_v21, %v284_v21  ;;  %388 = vst.msk [vmem:[%s170_s27 + $0x4] sm:$0x3] %vm252_vm3, %v268_v20  ;;  %v302_v25 = vpack.c.bf16 %v301_v22, %v301_v22 }
  0xf2   : > { %v278_v27 = vrot.slane %v268_v20, %v260_v16 }
  0xf3   : > { %262 = vrot.lane.b32.xlu0 %v261_v23, %s435_s28  ;;  %v295_v26 = vrot.slane %v285_v24, %v260_v16  ;;  %390 = vst.msk [vmem:[%s170_s27 + $0x8] sm:$0x3] %vm252_vm3, %v285_v24  ;;  %392 = vst.msk [vmem:[%s170_s27 + $0xc] sm:$0x3] %vm252_vm3, %v302_v25  ;;  %v312_v28 = vrot.slane %v302_v25, %v260_v16 }
  0xf5   : > { %296 = vrot.lane.b32.xlu1 %v295_v26, %s435_s28 }
  0xf7   : > { %279 = vrot.lane.b32.xlu0 %v278_v27, %s435_s28 }
  0xf9   : > { %313 = vrot.lane.b32.xlu1 %v312_v28, %s435_s28 }
 0x165   : > { %v263_v29 = vpop.permute.xlu0 %262 }
 0x166   : > { %387 = vst.msk [vmem:[%s170_s27 + $0x2] sm:$0x3] %vm252_vm3, %v263_v29 }
 0x167   : > { %v297_v30 = vpop.permute.xlu1 %296 }
 0x168   : > { %391 = vst.msk [vmem:[%s170_s27 + $0xa] sm:$0x3] %vm252_vm3, %v297_v30 }
 0x169   : > { %v280_v31 = vpop.permute.xlu0 %279 }
 0x16a   : > { %389 = vst.msk [vmem:[%s170_s27 + $0x6] sm:$0x3] %vm252_vm3, %v280_v31 }
 0x16b   : > { %v314_v32 = vpop.permute.xlu1 %313 }
 0x16c   : > { %393 = vst.msk [vmem:[%s170_s27 + $0xe] sm:$0x3] %vm252_vm3, %v314_v32 }
 0x16d PF: > { %s13_s12 = sadd.s32 1, %s430_s12  }
 0x16e   : > { %p10_p4 = scmp.ge.s32.totalorder %s13_s12, 4  }
 0x170   :  { %12 = sbr.rel (!%p10_p4) target bundleno = 1 (0x1), region = 69 }

// kernel: tile.18
= control target key start
LH: loop header
LB: loop body
LE: loop exit
PB: predicated region body
PF: predicated region fallthrough
CT: control target
= control target key end

     0   :  { %s22_s0 = inlined_call_operand.vmem [shape: f32[8], index: 0, kind: input, shape index: {}]   ;;  %s23_s1 = inlined_call_operand.vmem [shape: f32[4,8], index: 1, kind: output, shape index: {}]  }
   0x1   :  { %v4_v0 = vld [vmem:[%s22_s0] ss:$0 sm:$0xff] }
   0x2   :  { %5 = vst [vmem:[%s23_s1] sm:$0xf] %v4_v0 }

// kernel: tile.19
= control target key start
LH: loop header
LB: loop body
LE: loop exit
PB: predicated region body
PF: predicated region fallthrough
CT: control target
= control target key end

     0   :  { %vm7_vm0 = vcmask 64512   ;;  %s37_s8 = smov 8   ;;  %s38_s9 = smov 16   ;;  %vm13_vm1 = vcmask 261312   ;;  %vm19_vm2 = vcmask 195712   ;;  %vm25_vm3 = vcmask 130112   ;;  %s55_s0 = inlined_call_operand.vmem [shape: f32[4,8], index: 0, kind: input, shape index: {}]   ;;  %s56_s1 = inlined_call_operand.vmem [shape: f32[1,32], index: 1, kind: output, shape index: {}]  }
   0x1   :  { %v4_v0 = vld [vmem:[%s55_s0] sm:$0xf]  ;;  %s36_s0 = smov 24  }
   0x2   :  { %5 = vst [vmem:[#allocation1] sm:$0xf] %v4_v0 }
   0x9   :  { %v10_v1 = vld [vmem:[#allocation1 + $0x3] sm:$0x1]   ;;  %v22_v2 = vld [vmem:[#allocation1 + $0x1] sm:$0x1]   ;;  %v6_v3 = vld [vmem:[#allocation1] sm:$0x1]  }
   0xa   :  { %11 = vrot.lane.b32.xlu0 %v10_v1, %s36_s0  ;;  %23 = vrot.lane.b32.xlu1 %v22_v2, %s37_s8  ;;  %v16_v4 = vld [vmem:[#allocation1 + $0x2] sm:$0x1]   ;;  %8 = vst.msk [vmem:[#allocation0] sm:$0x1] %vm7_vm0, %v6_v3  }
   0xe   :  { %17 = vrot.lane.b32.xlu0 %v16_v4, %s38_s9 }
  0x7c   :  { %v12_v5 = vpop.permute.xlu0 %11   ;;  %v24_v6 = vpop.permute.xlu1 %23  }
  0x7d   :  { %14 = vst.msk [vmem:[#allocation0] sm:$0x1] %vm13_vm1, %v12_v5  }
  0x80   :  { %v18_v7 = vpop.permute.xlu0 %17  }
  0x81   :  { %20 = vst.msk [vmem:[#allocation0] sm:$0x1] %vm19_vm2, %v18_v7  }
  0x82   :  { %26 = vst.msk [vmem:[#allocation0] sm:$0x1] %vm25_vm3, %v24_v6  }
  0x89   :  { %v30_v8 = vld [vmem:[#allocation0] sm:$0x1] }
  0x8a   :  { %32 = vst [vmem:[%s56_s1] sm:$0x1] %v30_v8 }

// kernel: cam_unet_forward.32
= control target key start
LH: loop header
LB: loop body
LE: loop exit
PB: predicated region body
PF: predicated region fallthrough
CT: control target
= control target key end

     0   :  { %vm318_vm0 = vcmask 261120   ;;  %vm617_vm1 = vcmask 125952   ;;  %s1132_s1 = inlined_call_operand.vmem [shape: bf16[288,16], index: 1, kind: input, shape index: {}]   ;;  %s1133_s0 = inlined_call_operand.vmem [shape: bf16[128,288], index: 0, kind: input, shape index: {}]   ;;  %s1134_s2 = inlined_call_operand.vmem [shape: f32[1,16], index: 2, kind: input, shape index: {}]   ;;  %s1135_s3 = inlined_call_operand.vmem [shape: bf16[128,16], index: 3, kind: output, shape index: {}]  }
   0x1   :  { %v831_v0 = vld [vmem:[%s1132_s1 + $0x40] sm:$0xff]   ;;  %v833_v2 = vld [vmem:[%s1132_s1 + $0x48] sm:$0xff]   ;;  %v835_v4 = vld [vmem:[%s1132_s1 + $0x50] sm:$0xff]  }
   0x2   :  { %v832_v1 = vld [vmem:[%s1132_s1] sm:$0xff]   ;;  %721 = vmatprep.subr.bf16.mxu0 %v831_v0  ;;  %815 = vmatprep.subr.bf16.mxu1 %v831_v0  ;;  %v834_v3 = vld [vmem:[%s1132_s1 + $0x8] sm:$0xff]   ;;  %v836_v5 = vld [vmem:[%s1132_s1 + $0x10] sm:$0xff]  }
   0x3   :  { %722 = vmatpush3.bf16.msra.mxu0 %v832_v1  ;;  %823 = vmatpush3.bf16.msra.mxu1 %v832_v1  ;;  %v837_v6 = vld [vmem:[%s1132_s1 + $0x58] sm:$0xff]   ;;  %v839_v8 = vld [vmem:[%s1132_s1 + $0x60] sm:$0xff]   ;;  %v841_v10 = vld [vmem:[%s1132_s1 + $0x68] sm:$0xff]  }
   0x4   :  { %723 = vmatprep.subr.bf16.mxu0 %v833_v2  ;;  %816 = vmatprep.subr.bf16.mxu1 %v833_v2  ;;  %v838_v7 = vld [vmem:[%s1132_s1 + $0x18] sm:$0xff]   ;;  %v840_v9 = vld [vmem:[%s1132_s1 + $0x20] sm:$0xff]   ;;  %v842_v13 = vld [vmem:[%s1132_s1 + $0x28] sm:$0xff]  }
   0x5   :  { %v849_v11 = vld [vmem:[%s1133_s0 + $0x4] ss:$12 sps:$4 sm:$0xff]   ;;  %v852_v12 = vld [vmem:[%s1133_s0 + $0x94] ss:$12 sps:$4 sm:$0xff]   ;;  %v845_v16 = vld [vmem:[%s1132_s1 + $0x78] sm:$0xff]  }
   0x6   :  { %v843_v14 = vld [vmem:[%s1132_s1 + $0x70] sm:$0xff]   ;;  %375 = vmatprep.mubr.bf16.mxu0 %v849_v11  ;;  %423 = vmatprep.mubr.bf16.mxu1 %v852_v12  ;;  %v846_v17 = vld [vmem:[%s1132_s1 + $0x38] sm:$0xff]   ;;  %v847_v18 = vld [vmem:[%s1133_s0] ss:$12 sps:$4 sm:$0xff]  }
   0x7   :  { %724 = vmatpush3.bf16.msra.mxu0 %v834_v3  ;;  %824 = vmatpush3.bf16.msra.mxu1 %v834_v3  ;;  %v844_v15 = vld [vmem:[%s1132_s1 + $0x30] sm:$0xff]   ;;  %v853_v19 = vld [vmem:[%s1132_s1 + $0x80] sm:$0xff]   ;;  %v854_v21 = vld [vmem:[%s1133_s0 + $0x1c] ss:$12 sps:$4 sm:$0xff]  }
   0x8   :  { %725 = vmatprep.subr.bf16.mxu0 %v835_v4  ;;  %817 = vmatprep.subr.bf16.mxu1 %v835_v4  ;;  %v850_v20 = vld [vmem:[%s1133_s0 + $0x90] ss:$12 sps:$4 sm:$0xff]   ;;  %v856_v22 = vld [vmem:[%s1133_s0 + $0xac] ss:$12 sps:$4 sm:$0xff]   ;;  %v859_v25 = vld [vmem:[%s1133_s0 + $0xa8] ss:$12 sps:$4 sm:$0xff]  }
   0x9   :  { %v860_v23 = vld [vmem:[%s1132_s1 + $0x88] sm:$0xff]   ;;  %v858_v24 = vld [vmem:[%s1133_s0 + $0x18] ss:$12 sps:$4 sm:$0xff]   ;;  %v861_v26 = vld [vmem:[%s1133_s0 + $0x34] ss:$12 sps:$4 sm:$0xff]  }
   0xa   :  { %v863_v27 = vld [vmem:[%s1133_s0 + $0x8] ss:$12 sps:$4 sm:$0xff]   ;;  %v864_v28 = vld [vmem:[%s1133_s0 + $0x30] ss:$12 sps:$4 sm:$0xff]   ;;  %v865_v29 = vld [vmem:[%s1133_s0 + $0x20] ss:$12 sps:$4 sm:$0xff]  }
   0xb   :  { %726 = vmatpush3.bf16.msra.mxu0 %v836_v5  ;;  %825 = vmatpush3.bf16.msra.mxu1 %v836_v5  ;;  %v866_v30 = vld [vmem:[%s1133_s0 + $0x4c] ss:$12 sps:$4 sm:$0xff]   ;;  %v869_v32 = vld [vmem:[%s1133_s0 + $0x48] ss:$12 sps:$4 sm:$0xff]   ;;  %v870_v33 = vld [vmem:[%s1133_s0 + $0x50] ss:$12 sps:$4 sm:$0xff]  }
   0xc   :  { %727 = vmatprep.subr.bf16.mxu0 %v837_v6  ;;  %818 = vmatprep.subr.bf16.mxu1 %v837_v6  ;;  %v868_v31 = vld [vmem:[%s1133_s0 + $0x38] ss:$12 sps:$4 sm:$0xff]   ;;  %v873_v35 = vld [vmem:[%s1133_s0 + $0x68] ss:$12 sps:$4 sm:$0xff]   ;;  %v874_v36 = vld [vmem:[%s1133_s0 + $0x60] ss:$12 sps:$4 sm:$0xff]  }
   0xd   :  { %v871_v34 = vld [vmem:[%s1133_s0 + $0x64] ss:$12 sps:$4 sm:$0xff]   ;;  %v875_v37 = vld [vmem:[%s1133_s0 + $0x80] ss:$12 sps:$4 sm:$0xff]   ;;  %v876_v38 = vld [vmem:[%s1133_s0 + $0x7c] ss:$12 sps:$4 sm:$0xff]  }
   0xe   :  { %v878_v39 = vld [vmem:[%s1133_s0 + $0x98] ss:$12 sps:$4 sm:$0xff]   ;;  %v880_v41 = vld [vmem:[%s1133_s0 + $0xb0] ss:$12 sps:$4 sm:$0xff]   ;;  %v1046_v2 = vld [vmem:[%s1134_s2] ss:$0 sm:$0xff] }
   0xf   :  { %728 = vmatpush3.bf16.msra.mxu0 %v838_v7  ;;  %826 = vmatpush3.bf16.msra.mxu1 %v838_v7  ;;  %v879_v40 = vld [vmem:[%s1133_s0 + $0x78] ss:$12 sps:$4 sm:$0xff]  }
  0x10   :  { %729 = vmatprep.subr.bf16.mxu0 %v839_v8  ;;  %819 = vmatprep.subr.bf16.mxu1 %v839_v8 }
  0x13   :  { %730 = vmatpush3.bf16.msra.mxu0 %v840_v9  ;;  %827 = vmatpush3.bf16.msra.mxu1 %v840_v9 }
  0x14   :  { %731 = vmatprep.subr.bf16.mxu0 %v841_v10  ;;  %820 = vmatprep.subr.bf16.mxu1 %v841_v10 }
  0x17   :  { %732 = vmatpush3.bf16.msra.mxu0 %v842_v13  ;;  %828 = vmatpush3.bf16.msra.mxu1 %v842_v13 }
  0x18   :  { %733 = vmatprep.subr.bf16.mxu0 %v843_v14  ;;  %821 = vmatprep.subr.bf16.mxu1 %v843_v14 }
  0x1b   :  { %734 = vmatpush3.bf16.msra.mxu0 %v844_v15  ;;  %829 = vmatpush3.bf16.msra.mxu1 %v844_v15 }
  0x1c   :  { %735 = vmatprep.subr.bf16.mxu0 %v845_v16  ;;  %822 = vmatprep.subr.bf16.mxu1 %v845_v16 }
  0x1f   :  { %736 = vmatpush3.bf16.msra.mxu0 %v846_v17  ;;  %830 = vmatpush3.bf16.msra.mxu1 %v846_v17 }
  0x20   :  { %795 = vmatprep.subr.bf16.mxu1 %v853_v19 }
  0x22   :  { %376 = vmatmul.mubr.bf16.vlgmr.msra.gmra.mrb[0].mxu0 %v847_v18  ;;  %424 = vmatmul.mubr.bf16.vlgmr.msra.gmra.mrb[0].mxu1 %v850_v20 }
  0x23   :  { %796 = vmatpush3.bf16.msra.mxu1 %v853_v19  ;;  %383 = vmatprep.mubr.bf16.mxu0 %v854_v21 }
  0x24   :  { %431 = vmatprep.mubr.bf16.mxu1 %v856_v22  ;;  %797 = vmatprep.subr.bf16.mxu1 %v860_v23 }
  0x27   :  { %798 = vmatpush3.bf16.msra.mxu1 %v860_v23 }
  0x2a   :  { %384 = vmatmul.mubr.bf16.gmra.mrb[4].mxu0 %v858_v24  ;;  %432 = vmatmul.mubr.bf16.gmra.mrb[4].mxu1 %v859_v25 }
  0x2b   :  { %391 = vmatprep.mubr.bf16.mxu0 %v861_v26  ;;  %799 = vmatprep.mubr.msk.bf16.mxu1 %vm318_vm0, %v863_v27 }
  0x32   :  { %392 = vmatmul.mubr.bf16.gmra.mrb[8].mxu0 %v864_v28  ;;  %800 = vmatmul.mubr.msk.bf16.vlgmr.msra.gmra.mrb[8].mxu1 %vm318_vm0, %v865_v29 }
  0x33   :  { %399 = vmatprep.mubr.bf16.mxu0 %v866_v30  ;;  %803 = vmatprep.mubr.msk.bf16.mxu1 %vm318_vm0, %v868_v31 }
  0x3a   :  { %400 = vmatmul.mubr.bf16.gmra.mrb[12].mxu0 %v869_v32  ;;  %804 = vmatmul.mubr.msk.bf16.gmra.mrb[12].mxu1 %vm318_vm0, %v870_v33 }
  0x3b   :  { %407 = vmatprep.mubr.bf16.mxu0 %v871_v34  ;;  %807 = vmatprep.mubr.msk.bf16.mxu1 %vm318_vm0, %v873_v35 }
  0x42   :  { %408 = vmatmul.mubr.bf16.gmra.mrb[16].mxu0 %v874_v36  ;;  %808 = vmatmul.mubr.msk.bf16.gmra.mrb[16].mxu1 %vm318_vm0, %v875_v37 }
  0x43   :  { %415 = vmatprep.mubr.bf16.mxu0 %v876_v38  ;;  %811 = vmatprep.mubr.msk.bf16.mxu1 %vm318_vm0, %v878_v39 }
  0x4a   :  { %416 = vmatmul.mubr.bf16.gmra.mrb[20].mxu0 %v879_v40  ;;  %812 = vmatmul.mubr.msk.bf16.gmra.mrb[20].mxu1 %vm318_vm0, %v880_v41 }
  0xf5   :  { %v737_v42 = vpop.f32.mrb[0].mxu0  ;;  %v773_v43 = vpop.f32.mrb[0].mxu1 }
  0xf6   :  { %v738_v44 = vpop.f32.mrb[1].mxu0  ;;  %v774_v45 = vpop.f32.mrb[1].mxu1 }
  0xf7   :  { %v739_v46 = vadd.f32 %v738_v44, %v737_v42  ;;  %v740_v47 = vpop.f32.mrb[2].mxu0  ;;  %v1035_v48 = vadd.f32 %v774_v45, %v773_v43  ;;  %v776_v49 = vpop.f32.mrb[2].mxu1 }
  0xf8   :  { %v741_v50 = vpop.f32.mrb[3].mxu0  ;;  %v777_v51 = vpop.f32.mrb[3].mxu1 }
  0xf9   :  { %v742_v52 = vadd.f32 %v741_v50, %v740_v47  ;;  %v1037_v53 = vadd.f32 %v777_v51, %v776_v49  ;;  %v378_v6 = vadd.f32 %v739_v46, %v1046_v2 }
  0xfb   :  { %v381_v15 = vadd.f32 %v742_v52, %v1046_v2 }
  0xfd   :  { %v743_v54 = vpop.f32.mrb[4].mxu0  ;;  %v779_v55 = vpop.f32.mrb[4].mxu1 }
  0xfe   :  { %v744_v56 = vpop.f32.mrb[5].mxu0  ;;  %v780_v57 = vpop.f32.mrb[5].mxu1 }
  0xff   :  { %v745_v58 = vadd.f32 %v744_v56, %v743_v54  ;;  %v746_v59 = vpop.f32.mrb[6].mxu0  ;;  %v1039_v60 = vadd.f32 %v780_v57, %v779_v55  ;;  %v782_v61 = vpop.f32.mrb[6].mxu1 }
 0x100   :  { %v747_v62 = vpop.f32.mrb[7].mxu0  ;;  %v783_v63 = vpop.f32.mrb[7].mxu1 }
 0x101   :  { %v748_v0 = vadd.f32 %v747_v62, %v746_v59  ;;  %v1041_v1 = vadd.f32 %v783_v63, %v782_v61  ;;  %v386_v3 = vadd.f32 %v745_v58, %v1046_v2 }
 0x103   :  { %v389_v10 = vadd.f32 %v748_v0, %v1046_v2 }
 0x105   :  { %v749_v4 = vpop.f32.mrb[8].mxu0  ;;  %v801_v5 = vpop.f32.mrb[8].mxu1 }
 0x106   :  { %v483_v7 = vadd.f32 %v801_v5, %v386_v3  ;;  %v750_v8 = vpop.f32.mrb[9].mxu0  ;;  %v474_v9 = vpop.f32.mrb[9].mxu1 }
 0x107   :  { %v751_v11 = vadd.f32 %v750_v8, %v749_v4  ;;  %v475_v12 = vadd.f32 %v474_v9, %v378_v6  ;;  %v752_v13 = vpop.f32.mrb[10].mxu0  ;;  %v802_v14 = vpop.f32.mrb[10].mxu1  ;;  %v434_v9 = vadd.f32 %v1039_v60, %v1046_v2 }
 0x108   :  { %v539_v16 = vmax.f32 %v483_v7, 0.0  ;;  %v486_v17 = vadd.f32 %v802_v14, %v389_v10  ;;  %v753_v18 = vpop.f32.mrb[11].mxu0  ;;  %v477_v19 = vpop.f32.mrb[11].mxu1  ;;  %v426_v14 = vadd.f32 %v1035_v48, %v1046_v2 }
 0x109   :  { %v537_v20 = vmax.f32 %v475_v12, 0.0  ;;  %v754_v21 = vadd.f32 %v753_v18, %v752_v13  ;;  %v478_v22 = vadd.f32 %v477_v19, %v381_v15  ;;  %v394_v31 = vadd.f32 %v751_v11, %v1046_v2 }
 0x10a   :  { %v707_v23 = vpack.c.bf16 %v539_v16, %v539_v16  ;;  %v540_v24 = vmax.f32 %v486_v17, 0.0  ;;  %v437_v18 = vadd.f32 %v1041_v1, %v1046_v2 }
 0x10b   :  { %v705_v25 = vpack.c.bf16 %v537_v20, %v537_v20  ;;  %v538_v26 = vmax.f32 %v478_v22, 0.0  ;;  %v397_v38 = vadd.f32 %v754_v21, %v1046_v2 }
 0x10c   :  { %620 = vst.msk [vmem:[%s1135_s3 + $0x8] sm:$0xf] %vm617_vm1, %v707_v23  ;;  %v708_v27 = vpack.c.bf16 %v540_v24, %v540_v24 }
 0x10d   :  { %618 = vst.msk [vmem:[%s1135_s3] sm:$0xf] %vm617_vm1, %v705_v25  ;;  %v706_v28 = vpack.c.bf16 %v538_v26, %v538_v26  ;;  %v755_v29 = vpop.f32.mrb[12].mxu0  ;;  %v805_v30 = vpop.f32.mrb[12].mxu1 }
 0x10e   :  { %621 = vst.msk [vmem:[%s1135_s3 + $0xc] sm:$0xf] %vm617_vm1, %v708_v27  ;;  %v756_v32 = vpop.f32.mrb[13].mxu0  ;;  %v490_v33 = vpop.f32.mrb[13].mxu1  ;;  %v429_v27 = vadd.f32 %v1037_v53, %v1046_v2 }
 0x10f   :  { %619 = vst.msk [vmem:[%s1135_s3 + $0x4] sm:$0xf] %vm617_vm1, %v706_v28  ;;  %v757_v34 = vadd.f32 %v756_v32, %v755_v29  ;;  %v491_v35 = vadd.f32 %v490_v33, %v394_v31  ;;  %v758_v36 = vpop.f32.mrb[14].mxu0  ;;  %v806_v37 = vpop.f32.mrb[14].mxu1 }
 0x110   :  { %v759_v39 = vpop.f32.mrb[15].mxu0  ;;  %v493_v40 = vpop.f32.mrb[15].mxu1 }
 0x111   :  { %v402_v41 = vadd.f32 %v757_v34, %v1046_v2  ;;  %v541_v42 = vmax.f32 %v491_v35, 0.0  ;;  %v760_v43 = vadd.f32 %v759_v39, %v758_v36  ;;  %v494_v44 = vadd.f32 %v493_v40, %v397_v38 }
 0x113   :  { %v499_v45 = vadd.f32 %v805_v30, %v402_v41  ;;  %v709_v46 = vpack.c.bf16 %v541_v42, %v541_v42  ;;  %v405_v47 = vadd.f32 %v760_v43, %v1046_v2  ;;  %v542_v49 = vmax.f32 %v494_v44, 0.0 }
 0x115   :  { %v543_v50 = vmax.f32 %v499_v45, 0.0  ;;  %622 = vst.msk [vmem:[%s1135_s3 + $0x10] sm:$0xf] %vm617_vm1, %v709_v46  ;;  %v502_v51 = vadd.f32 %v806_v37, %v405_v47  ;;  %v710_v52 = vpack.c.bf16 %v542_v49, %v542_v49  ;;  %v761_v54 = vpop.f32.mrb[16].mxu0  ;;  %v809_v55 = vpop.f32.mrb[16].mxu1 }
 0x116   :  { %v762_v56 = vpop.f32.mrb[17].mxu0  ;;  %v506_v57 = vpop.f32.mrb[17].mxu1 }
 0x117   :  { %v711_v58 = vpack.c.bf16 %v543_v50, %v543_v50  ;;  %v544_v59 = vmax.f32 %v502_v51, 0.0  ;;  %623 = vst.msk [vmem:[%s1135_s3 + $0x14] sm:$0xf] %vm617_vm1, %v710_v52  ;;  %v763_v61 = vadd.f32 %v762_v56, %v761_v54  ;;  %v764_v62 = vpop.f32.mrb[18].mxu0  ;;  %v810_v63 = vpop.f32.mrb[18].mxu1 }
 0x118   :  { %v765_v0 = vpop.f32.mrb[19].mxu0  ;;  %v509_v3 = vpop.f32.mrb[19].mxu1 }
 0x119   :  { %624 = vst.msk [vmem:[%s1135_s3 + $0x18] sm:$0xf] %vm617_vm1, %v711_v58  ;;  %v712_v4 = vpack.c.bf16 %v544_v59, %v544_v59  ;;  %v410_v5 = vadd.f32 %v763_v61, %v1046_v2  ;;  %v766_v6 = vadd.f32 %v765_v0, %v764_v62 }
 0x11b   :  { %625 = vst.msk [vmem:[%s1135_s3 + $0x1c] sm:$0xf] %vm617_vm1, %v712_v4  ;;  %v507_v7 = vadd.f32 %v506_v57, %v410_v5  ;;  %v413_v8 = vadd.f32 %v766_v6, %v1046_v2 }
 0x11d   :  { %v545_v10 = vmax.f32 %v507_v7, 0.0  ;;  %v510_v11 = vadd.f32 %v509_v3, %v413_v8  ;;  %v767_v12 = vpop.f32.mrb[20].mxu0  ;;  %v813_v13 = vpop.f32.mrb[20].mxu1 }
 0x11e   :  { %v531_v15 = vadd.f32 %v813_v13, %v434_v9  ;;  %v768_v16 = vpop.f32.mrb[21].mxu0  ;;  %v522_v17 = vpop.f32.mrb[21].mxu1 }
 0x11f   :  { %v713_v19 = vpack.c.bf16 %v545_v10, %v545_v10  ;;  %v546_v20 = vmax.f32 %v510_v11, 0.0  ;;  %v769_v21 = vadd.f32 %v768_v16, %v767_v12  ;;  %v523_v22 = vadd.f32 %v522_v17, %v426_v14  ;;  %v770_v23 = vpop.f32.mrb[22].mxu0  ;;  %v814_v24 = vpop.f32.mrb[22].mxu1 }
 0x120   :  { %v551_v60 = vmax.f32 %v531_v15, 0.0  ;;  %v534_v25 = vadd.f32 %v814_v24, %v437_v18  ;;  %v771_v26 = vpop.f32.mrb[23].mxu0  ;;  %v525_v28 = vpop.f32.mrb[23].mxu1 }
 0x121   :  { %626 = vst.msk [vmem:[%s1135_s3 + $0x20] sm:$0xf] %vm617_vm1, %v713_v19  ;;  %v714_v48 = vpack.c.bf16 %v546_v20, %v546_v20  ;;  %v418_v1 = vadd.f32 %v769_v21, %v1046_v2  ;;  %v549_v29 = vmax.f32 %v523_v22, 0.0  ;;  %v772_v30 = vadd.f32 %v771_v26, %v770_v23 }
 0x122   :  { %v719_v31 = vpack.c.bf16 %v551_v60, %v551_v60  ;;  %v552_v32 = vmax.f32 %v534_v25, 0.0  ;;  %v526_v33 = vadd.f32 %v525_v28, %v429_v27 }
 0x123   :  { %627 = vst.msk [vmem:[%s1135_s3 + $0x24] sm:$0xf] %vm617_vm1, %v714_v48  ;;  %v515_v53 = vadd.f32 %v809_v55, %v418_v1  ;;  %v717_v34 = vpack.c.bf16 %v549_v29, %v549_v29  ;;  %v421_v35 = vadd.f32 %v772_v30, %v1046_v2 }
 0x124   :  { %632 = vst.msk [vmem:[%s1135_s3 + $0x38] sm:$0xf] %vm617_vm1, %v719_v31  ;;  %v720_v36 = vpack.c.bf16 %v552_v32, %v552_v32  ;;  %v550_v37 = vmax.f32 %v526_v33, 0.0 }
 0x125   :  { %v547_v38 = vmax.f32 %v515_v53, 0.0  ;;  %630 = vst.msk [vmem:[%s1135_s3 + $0x30] sm:$0xf] %vm617_vm1, %v717_v34  ;;  %v518_v39 = vadd.f32 %v810_v63, %v421_v35 }
 0x126   :  { %633 = vst.msk [vmem:[%s1135_s3 + $0x3c] sm:$0xf] %vm617_vm1, %v720_v36  ;;  %v718_v2 = vpack.c.bf16 %v550_v37, %v550_v37 }
 0x127   :  { %v715_v40 = vpack.c.bf16 %v547_v38, %v547_v38  ;;  %v548_v41 = vmax.f32 %v518_v39, 0.0 }
 0x128   :  { %631 = vst.msk [vmem:[%s1135_s3 + $0x34] sm:$0xf] %vm617_vm1, %v718_v2 }
 0x129   :  { %628 = vst.msk [vmem:[%s1135_s3 + $0x28] sm:$0xf] %vm617_vm1, %v715_v40  ;;  %v716_v42 = vpack.c.bf16 %v548_v41, %v548_v41 }
 0x12b   :  { %629 = vst.msk [vmem:[%s1135_s3 + $0x2c] sm:$0xf] %vm617_vm1, %v716_v42 }

// kernel: cam_unet_forward.34
= control target key start
LH: loop header
LB: loop body
LE: loop exit
PB: predicated region body
PF: predicated region fallthrough
CT: control target
= control target key end

     0   :  { %s567_s12 = smov 0   ;;  %s636_s0 = inlined_call_operand.vmem [shape: bf16[2,64,16], index: 0, kind: input, shape index: {}]   ;;  %s637_s1 = inlined_call_operand.vmem [shape: bf16[16,32], index: 1, kind: input, shape index: {}]   ;;  %s638_s2 = inlined_call_operand.vmem [shape: f32[1,32], index: 2, kind: input, shape index: {}]   ;;  %s639_s3 = inlined_call_operand.vmem [shape: bf16[2,16,8,16], index: 3, kind: output, shape index: {}]  }
   0x1 LB: > { %s453_s13 = sadd.s32 4294967295, %s544_s12   ;;  %p457_p0 = scmp.ge.s32.totalorder %s544_s12, 1  ;;  %s544_s12 = sphi %s567_s12, %s13_s12  }
   0x2   : > { %p137_p1 = scmp.lt.s32.totalorder %s544_s12, 3 }
   0x4   : > { %p138_p2 = pnand %p457_p0, %p137_p1 }
   0x5   : > { %v533_v0 = vld [vmem:[%s637_s1] sm:$0xff] (!%p138_p2)   ;;  %p161_p3 = scmp.lt.s32.totalorder (!%p138_p2), %s453_s13, 1  ;;  %vm215_vm0 = vcmask (!%p138_p2), 130048   ;;  %vm293_vm1 = vcmask (!%p138_p2), 261120   ;;  %vm304_vm2 = vcmask (!%p138_p2), 125952   ;;  %s546_s26 = smov (!%p138_p2), 112  }
   0x6   : > { %141 = sbr.rel (%p138_p2) target bundleno = 371 (0x173), region = 32  ;;  %512 = vmatprep.subr.bf16.mxu0 (!%p138_p2), %v533_v0  ;;  %522 = vmatprep.subr.bf16.mxu1 (!%p138_p2), %v533_v0  ;;  %v462_v5 = vld [vmem:[%s638_s2] ss:$0 sm:$0xff] (!%p138_p2) }
   0x7   : > { %513 = vmatpush3.bf16.msra.mxu0 (!%p138_p2), %v533_v0  ;;  %523 = vmatpush3.bf16.msra.mxu1 (!%p138_p2), %v533_v0 }
   0xd   : > { %s641_s13 = smov (!%p161_p3, %s453_s13), 1 }
   0xe   : > { %s497_s16 = sshll.u32 %s641_s13, 5  ;;  %s498_s22 = sshll.u32 %s641_s13, 6 }
   0xf   : > { %s165_s19 = scalar_lea.vmem %s636_s0, %s497_s16  ;;  %s599_s25 = scalar_lea.vmem %s639_s3, %s498_s22 }
  0x10   : > { %v534_v1 = vld [vmem:[%s165_s19] sm:$0xff]   ;;  %v535_v2 = vld [vmem:[%s165_s19 + $0x8] sm:$0xff]   ;;  %v536_v3 = vld [vmem:[%s165_s19 + $0x10] sm:$0xff]  }
  0x11   : > { %514 = vmatprep.mubr.msk.bf16.mxu0 %vm215_vm0, %v534_v1  ;;  %v537_v4 = vld [vmem:[%s165_s19 + $0x18] sm:$0xff]   ;;  %518 = vmatprep.mubr.msk.bf16.mxu1 %vm215_vm0, %v536_v3 }
  0x12   : > { %515 = vmatmul.mubr.msk.bf16.vlgmr.msra.gmra.mrb[0].mxu0 %vm215_vm0, %v535_v2  ;;  %519 = vmatmul.mubr.msk.bf16.vlgmr.msra.gmra.mrb[0].mxu1 %vm215_vm0, %v537_v4 }
  0xe5   : > { %v516_v6 = vpop.f32.mrb[0].mxu0  ;;  %v520_v10 = vpop.f32.mrb[0].mxu1 }
  0xe6   : > { %v271_v7 = vadd.f32 %v516_v6, %v462_v5  ;;  %v262_v8 = vpop.f32.mrb[1].mxu0  ;;  %v287_v12 = vadd.f32 %v520_v10, %v462_v5  ;;  %v278_v14 = vpop.f32.mrb[1].mxu1 }
  0xe7   : > { %v263_v9 = vadd.f32 %v462_v5, %v262_v8  ;;  %v517_v11 = vpop.f32.mrb[2].mxu0  ;;  %v279_v16 = vadd.f32 %v462_v5, %v278_v14  ;;  %v521_v18 = vpop.f32.mrb[2].mxu1 }
  0xe8   : > { %296 = vst.msk [vmem:[#allocation2 + $0x10] sm:$0xff] %vm293_vm1, %v271_v7  ;;  %v274_v13 = vadd.f32 %v517_v11, %v462_v5  ;;  %v265_v15 = vpop.f32.mrb[3].mxu0  ;;  %300 = vst.msk [vmem:[#allocation2 + $0x30] sm:$0xff] %vm293_vm1, %v287_v12  ;;  %v290_v19 = vadd.f32 %v521_v18, %v462_v5  ;;  %v281_v20 = vpop.f32.mrb[3].mxu1 }
  0xe9   : > { %294 = vst.msk [vmem:[#allocation2] sm:$0xff] %vm293_vm1, %v263_v9  ;;  %v266_v17 = vadd.f32 %v462_v5, %v265_v15  ;;  %298 = vst.msk [vmem:[#allocation2 + $0x20] sm:$0xff] %vm293_vm1, %v279_v16  ;;  %v282_v21 = vadd.f32 %v462_v5, %v281_v20 }
  0xea   : > { %297 = vst.msk [vmem:[#allocation2 + $0x18] sm:$0xff] %vm293_vm1, %v274_v13  ;;  %301 = vst.msk [vmem:[#allocation2 + $0x38] sm:$0xff] %vm293_vm1, %v290_v19 }
  0xeb   : > { %295 = vst.msk [vmem:[#allocation2 + $0x8] sm:$0xff] %vm293_vm1, %v266_v17  ;;  %299 = vst.msk [vmem:[#allocation2 + $0x28] sm:$0xff] %vm293_vm1, %v282_v21 }
  0xef   : > { %v326_v22 = vld [vmem:[#allocation2 + $0x10] sm:$0xff] }
  0xf0   : > { %v327_v23 = vpack.c.bf16 %v326_v22, %v326_v22  ;;  %v302_v24 = vld [vmem:[#allocation2] sm:$0xff]  ;;  %v374_v27 = vld [vmem:[#allocation2 + $0x30] sm:$0xff] }
  0xf1   : > { %v303_v25 = vpack.c.bf16 %v302_v24, %v302_v24  ;;  %v338_v26 = vld [vmem:[#allocation2 + $0x18] sm:$0xff]  ;;  %v350_v29 = vld [vmem:[#allocation2 + $0x20] sm:$0xff]  ;;  %v375_v31 = vpack.c.bf16 %v374_v27, %v374_v27 }
  0xf2   : > { %333 = vrot.lane.b32.xlu1 %v327_v23, %s546_s26  ;;  %477 = vst.msk [vmem:[%s599_s25 + $0x10] sm:$0xf] %vm304_vm2, %v327_v23  ;;  %v339_v28 = vpack.c.bf16 %v338_v26, %v338_v26  ;;  %v314_v30 = vld [vmem:[#allocation2 + $0x8] sm:$0xff]  ;;  %v351_v32 = vpack.c.bf16 %v350_v29, %v350_v29  ;;  %v386_v34 = vld [vmem:[#allocation2 + $0x38] sm:$0xff] }
  0xf3   : > { %309 = vrot.lane.b32.xlu0 %v303_v25, %s546_s26  ;;  %305 = vst.msk [vmem:[%s599_s25] sm:$0xf] %vm304_vm2, %v303_v25  ;;  %v315_v33 = vpack.c.bf16 %v314_v30, %v314_v30  ;;  %v362_v35 = vld [vmem:[#allocation2 + $0x28] sm:$0xff]  ;;  %v387_v36 = vpack.c.bf16 %v386_v34, %v386_v34  ;;  %489 = vst.msk [vmem:[%s599_s25 + $0x30] sm:$0xf] %vm304_vm2, %v375_v31 }
  0xf4   : > { %480 = vst.msk [vmem:[%s599_s25 + $0x18] sm:$0xf] %vm304_vm2, %v339_v28  ;;  %483 = vst.msk [vmem:[%s599_s25 + $0x20] sm:$0xf] %vm304_vm2, %v351_v32  ;;  %v363_v37 = vpack.c.bf16 %v362_v35, %v362_v35 }
  0xf5   : > { %474 = vst.msk [vmem:[%s599_s25 + $0x8] sm:$0xf] %vm304_vm2, %v315_v33  ;;  %492 = vst.msk [vmem:[%s599_s25 + $0x38] sm:$0xf] %vm304_vm2, %v387_v36 }
  0xf6   : > { %345 = vrot.lane.b32.xlu1 %v339_v28, %s546_s26  ;;  %486 = vst.msk [vmem:[%s599_s25 + $0x28] sm:$0xf] %vm304_vm2, %v363_v37 }
  0xf7   : > { %357 = vrot.lane.b32.xlu0 %v351_v32, %s546_s26 }
  0xfa   : > { %369 = vrot.lane.b32.xlu1 %v363_v37, %s546_s26 }
  0xfb   : > { %321 = vrot.lane.b32.xlu0 %v315_v33, %s546_s26 }
  0xfe   : > { %393 = vrot.lane.b32.xlu1 %v387_v36, %s546_s26 }
  0xff   : > { %381 = vrot.lane.b32.xlu0 %v375_v31, %s546_s26 }
 0x164   : > { %v334_v38 = vpop.permute.xlu1 %333 }
 0x165   : > { %479 = vst.msk [vmem:[%s599_s25 + $0x14] sm:$0xf] %vm304_vm2, %v334_v38  ;;  %v310_v39 = vpop.permute.xlu0 %309 }
 0x166   : > { %473 = vst.msk [vmem:[%s599_s25 + $0x4] sm:$0xf] %vm304_vm2, %v310_v39 }
 0x168   : > { %v346_v40 = vpop.permute.xlu1 %345 }
 0x169   : > { %482 = vst.msk [vmem:[%s599_s25 + $0x1c] sm:$0xf] %vm304_vm2, %v346_v40  ;;  %v358_v41 = vpop.permute.xlu0 %357 }
 0x16a   : > { %485 = vst.msk [vmem:[%s599_s25 + $0x24] sm:$0xf] %vm304_vm2, %v358_v41 }
 0x16c   : > { %v370_v42 = vpop.permute.xlu1 %369 }
 0x16d   : > { %488 = vst.msk [vmem:[%s599_s25 + $0x2c] sm:$0xf] %vm304_vm2, %v370_v42  ;;  %v322_v43 = vpop.permute.xlu0 %321 }
 0x16e   : > { %476 = vst.msk [vmem:[%s599_s25 + $0xc] sm:$0xf] %vm304_vm2, %v322_v43 }
 0x170   : > { %v394_v44 = vpop.permute.xlu1 %393 }
 0x171   : > { %494 = vst.msk [vmem:[%s599_s25 + $0x3c] sm:$0xf] %vm304_vm2, %v394_v44  ;;  %v382_v45 = vpop.permute.xlu0 %381 }
 0x172   : > { %491 = vst.msk [vmem:[%s599_s25 + $0x34] sm:$0xf] %vm304_vm2, %v382_v45 }
 0x173 PF: > { %s13_s12 = sadd.s32 1, %s544_s12  }
 0x174   : > { %p10_p4 = scmp.ge.s32.totalorder %s13_s12, 4  }
 0x176   :  { %12 = sbr.rel (!%p10_p4) target bundleno = 1 (0x1), region = 77 }

// kernel: cam_unet_forward.37
= control target key start
LH: loop header
LB: loop body
LE: loop exit
PB: predicated region body
PF: predicated region fallthrough
CT: control target
= control target key end

     0   :  { %s749_s12 = smov 0   ;;  %s910_s0 = inlined_call_operand.vmem [shape: bf16[512,8], index: 0, kind: input, shape index: {}]   ;;  %s911_s1 = inlined_call_operand.vmem [shape: bf16[8,2], index: 1, kind: input, shape index: {}]   ;;  %s912_s2 = inlined_call_operand.vmem [shape: f32[1,2], index: 2, kind: input, shape index: {}]   ;;  %s913_s3 = inlined_call_operand.vmem [shape: f32[512,2], index: 3, kind: output, shape index: {}]  }
   0x1 LB: > { %s598_s13 = sadd.s32 4294967295, %s727_s12   ;;  %p602_p0 = scmp.ge.s32.totalorder %s727_s12, 1  ;;  %s727_s12 = sphi %s749_s12, %s13_s12  }
   0x2   : > { %p138_p1 = scmp.lt.s32.totalorder %s727_s12, 3 }
   0x4   : > { %p139_p2 = pnand %p602_p0, %p138_p1 }
   0x5   : > { %v207_v0 = vld [vmem:[%s911_s1] sm:$0xf] (!%p139_p2)  ;;  %vm344_vm0 = vcmask (!%p139_p2), 1043456   ;;  %s603_s16 = sshll.u32 (!%p139_p2), %s598_s13, 5  ;;  %vm295_vm1 = vcmask (!%p139_p2), 64512   ;;  %vm509_vm2 = vcmask (!%p139_p2), 15360  }
   0x6   : > { %142 = sbr.rel (%p139_p2) target bundleno = 261 (0x105), region = 32  ;;  %695 = vmatprep.subr.msk.bf16.mxu0 (!%p139_p2), %vm344_vm0, %v207_v0  ;;  %696 = vmatprep.subr.msk.bf16.mxu1 (!%p139_p2), %vm344_vm0, %v207_v0  ;;  %v346_v1 = vsel (!%p139_p2), %vm344_vm0, %v207_v0, 0  ;;  %p163_p3 = scmp.lt.s32.totalorder (!%p139_p2), %s603_s16, 63  ;;  %v804_v18 = vld [vmem:[%s912_s2] ss:$0 sm:$0xff] (!%p139_p2) }
   0x7   : > { %660 = vmatpush3.bf16.msra.mxu0 (!%p139_p2), %v346_v1  ;;  %694 = vmatpush3.bf16.msra.mxu1 (!%p139_p2), %v346_v1 }
   0xd   : > { %s915_s16 = smov (!%p163_p3, %s603_s16), 63 }
   0xe   : > { %s604_s17 = sshll.u32 %s915_s16, 2  ;;  %s606_s21 = sshll.u32 %s915_s16, 3 }
   0xf   : > { %s766_s20 = scalar_lea.vmem %s910_s0, %s604_s17  ;;  %s809_s26 = scalar_lea.vmem %s913_s3, %s606_s21 }
  0x10   : > { %v705_v2 = vld [vmem:[%s766_s20] sm:$0xff]   ;;  %v707_v4 = vld [vmem:[%s766_s20 + $0x8] sm:$0xff]   ;;  %v709_v6 = vld [vmem:[%s766_s20 + $0x10] sm:$0xff]  }
  0x11   : > { %v706_v3 = vld [vmem:[%s766_s20 + $0x40] sm:$0xff]   ;;  %661 = vmatprep.mubr.msk.bf16.mxu0 %vm295_vm1, %v705_v2  ;;  %v708_v5 = vld [vmem:[%s766_s20 + $0x48] sm:$0xff]   ;;  %v710_v7 = vld [vmem:[%s766_s20 + $0x50] sm:$0xff]  }
  0x12   : > { %677 = vmatprep.mubr.msk.bf16.mxu1 %vm295_vm1, %v706_v3  ;;  %662 = vmatmul.mubr.msk.bf16.vlgmr.msra.gmra.mrb[0].mxu0 %vm295_vm1, %v707_v4  ;;  %v711_v8 = vld [vmem:[%s766_s20 + $0x18] sm:$0xff]   ;;  %v713_v10 = vld [vmem:[%s766_s20 + $0x20] sm:$0xff]   ;;  %v715_v12 = vld [vmem:[%s766_s20 + $0x28] sm:$0xff]  }
  0x13   : > { %678 = vmatmul.mubr.msk.bf16.vlgmr.msra.gmra.mrb[0].mxu1 %vm295_vm1, %v708_v5  ;;  %665 = vmatprep.mubr.msk.bf16.mxu0 %vm295_vm1, %v709_v6  ;;  %v712_v9 = vld [vmem:[%s766_s20 + $0x58] sm:$0xff]   ;;  %v714_v11 = vld [vmem:[%s766_s20 + $0x60] sm:$0xff]   ;;  %v716_v13 = vld [vmem:[%s766_s20 + $0x68] sm:$0xff]  }
  0x14   : > { %681 = vmatprep.mubr.msk.bf16.mxu1 %vm295_vm1, %v710_v7  ;;  %v717_v14 = vld [vmem:[%s766_s20 + $0x30] sm:$0xff]   ;;  %v719_v16 = vld [vmem:[%s766_s20 + $0x38] sm:$0xff]  }
  0x15   : > { %v718_v15 = vld [vmem:[%s766_s20 + $0x70] sm:$0xff]   ;;  %v720_v17 = vld [vmem:[%s766_s20 + $0x78] sm:$0xff]  }
  0x1a   : > { %666 = vmatmul.mubr.msk.bf16.gmra.mrb[4].mxu0 %vm295_vm1, %v711_v8 }
  0x1b   : > { %682 = vmatmul.mubr.msk.bf16.gmra.mrb[4].mxu1 %vm295_vm1, %v712_v9  ;;  %669 = vmatprep.mubr.msk.bf16.mxu0 %vm295_vm1, %v713_v10 }
  0x1c   : > { %685 = vmatprep.mubr.msk.bf16.mxu1 %vm295_vm1, %v714_v11 }
  0x22   : > { %670 = vmatmul.mubr.msk.bf16.gmra.mrb[8].mxu0 %vm295_vm1, %v715_v12 }
  0x23   : > { %686 = vmatmul.mubr.msk.bf16.gmra.mrb[8].mxu1 %vm295_vm1, %v716_v13  ;;  %673 = vmatprep.mubr.msk.bf16.mxu0 %vm295_vm1, %v717_v14 }
  0x24   : > { %689 = vmatprep.mubr.msk.bf16.mxu1 %vm295_vm1, %v718_v15 }
  0x2a   : > { %674 = vmatmul.mubr.msk.bf16.gmra.mrb[12].mxu0 %vm295_vm1, %v719_v16 }
  0x2b   : > { %690 = vmatmul.mubr.msk.bf16.gmra.mrb[12].mxu1 %vm295_vm1, %v720_v17 }
  0xe5   : > { %v663_v19 = vpop.f32.mrb[0].mxu0 }
  0xe6   : > { %v391_v20 = vadd.f32 %v663_v19, %v804_v18  ;;  %v679_v21 = vpop.f32.mrb[0].mxu1  ;;  %v382_v22 = vpop.f32.mrb[1].mxu0 }
  0xe7   : > { %v455_v23 = vadd.f32 %v679_v21, %v804_v18  ;;  %v383_v24 = vadd.f32 %v804_v18, %v382_v22  ;;  %v446_v25 = vpop.f32.mrb[1].mxu1  ;;  %v664_v26 = vpop.f32.mrb[2].mxu0 }
  0xe8   : > { %512 = vst.msk [vmem:[%s809_s26 + $0x10] sm:$0xff] %vm509_vm2, %v391_v20  ;;  %v447_v27 = vadd.f32 %v804_v18, %v446_v25  ;;  %v394_v28 = vadd.f32 %v664_v26, %v804_v18  ;;  %v680_v29 = vpop.f32.mrb[2].mxu1  ;;  %v385_v30 = vpop.f32.mrb[3].mxu0 }
  0xe9   : > { %528 = vst.msk [vmem:[%s809_s26 + $0x90] sm:$0xff] %vm509_vm2, %v455_v23  ;;  %510 = vst.msk [vmem:[%s809_s26] sm:$0xff] %vm509_vm2, %v383_v24  ;;  %v458_v31 = vadd.f32 %v680_v29, %v804_v18  ;;  %v386_v32 = vadd.f32 %v804_v18, %v385_v30  ;;  %v449_v33 = vpop.f32.mrb[3].mxu1 }
  0xea   : > { %526 = vst.msk [vmem:[%s809_s26 + $0x80] sm:$0xff] %vm509_vm2, %v447_v27  ;;  %513 = vst.msk [vmem:[%s809_s26 + $0x18] sm:$0xff] %vm509_vm2, %v394_v28  ;;  %v450_v34 = vadd.f32 %v804_v18, %v449_v33 }
  0xeb   : > { %529 = vst.msk [vmem:[%s809_s26 + $0x98] sm:$0xff] %vm509_vm2, %v458_v31  ;;  %511 = vst.msk [vmem:[%s809_s26 + $0x8] sm:$0xff] %vm509_vm2, %v386_v32 }
  0xec   : > { %527 = vst.msk [vmem:[%s809_s26 + $0x88] sm:$0xff] %vm509_vm2, %v450_v34 }
  0xed   : > { %v667_v35 = vpop.f32.mrb[4].mxu0 }
  0xee   : > { %v407_v36 = vadd.f32 %v667_v35, %v804_v18  ;;  %v683_v37 = vpop.f32.mrb[4].mxu1  ;;  %v398_v38 = vpop.f32.mrb[5].mxu0 }
  0xef   : > { %v471_v39 = vadd.f32 %v683_v37, %v804_v18  ;;  %v399_v40 = vadd.f32 %v804_v18, %v398_v38  ;;  %v462_v41 = vpop.f32.mrb[5].mxu1  ;;  %v668_v42 = vpop.f32.mrb[6].mxu0 }
  0xf0   : > { %516 = vst.msk [vmem:[%s809_s26 + $0x30] sm:$0xff] %vm509_vm2, %v407_v36  ;;  %v463_v43 = vadd.f32 %v804_v18, %v462_v41  ;;  %v410_v44 = vadd.f32 %v668_v42, %v804_v18  ;;  %v684_v45 = vpop.f32.mrb[6].mxu1  ;;  %v401_v46 = vpop.f32.mrb[7].mxu0 }
  0xf1   : > { %532 = vst.msk [vmem:[%s809_s26 + $0xb0] sm:$0xff] %vm509_vm2, %v471_v39  ;;  %514 = vst.msk [vmem:[%s809_s26 + $0x20] sm:$0xff] %vm509_vm2, %v399_v40  ;;  %v474_v47 = vadd.f32 %v684_v45, %v804_v18  ;;  %v402_v48 = vadd.f32 %v804_v18, %v401_v46  ;;  %v465_v49 = vpop.f32.mrb[7].mxu1 }
  0xf2   : > { %530 = vst.msk [vmem:[%s809_s26 + $0xa0] sm:$0xff] %vm509_vm2, %v463_v43  ;;  %517 = vst.msk [vmem:[%s809_s26 + $0x38] sm:$0xff] %vm509_vm2, %v410_v44  ;;  %v466_v50 = vadd.f32 %v804_v18, %v465_v49 }
  0xf3   : > { %533 = vst.msk [vmem:[%s809_s26 + $0xb8] sm:$0xff] %vm509_vm2, %v474_v47  ;;  %515 = vst.msk [vmem:[%s809_s26 + $0x28] sm:$0xff] %vm509_vm2, %v402_v48 }
  0xf4   : > { %531 = vst.msk [vmem:[%s809_s26 + $0xa8] sm:$0xff] %vm509_vm2, %v466_v50 }
  0xf5   : > { %v671_v51 = vpop.f32.mrb[8].mxu0 }
  0xf6   : > { %v423_v52 = vadd.f32 %v671_v51, %v804_v18  ;;  %v687_v53 = vpop.f32.mrb[8].mxu1  ;;  %v414_v54 = vpop.f32.mrb[9].mxu0 }
  0xf7   : > { %v487_v55 = vadd.f32 %v687_v53, %v804_v18  ;;  %v415_v56 = vadd.f32 %v804_v18, %v414_v54  ;;  %v478_v57 = vpop.f32.mrb[9].mxu1  ;;  %v672_v58 = vpop.f32.mrb[10].mxu0 }
  0xf8   : > { %520 = vst.msk [vmem:[%s809_s26 + $0x50] sm:$0xff] %vm509_vm2, %v423_v52  ;;  %v479_v59 = vadd.f32 %v804_v18, %v478_v57  ;;  %v426_v60 = vadd.f32 %v672_v58, %v804_v18  ;;  %v688_v61 = vpop.f32.mrb[10].mxu1  ;;  %v417_v62 = vpop.f32.mrb[11].mxu0 }
  0xf9   : > { %536 = vst.msk [vmem:[%s809_s26 + $0xd0] sm:$0xff] %vm509_vm2, %v487_v55  ;;  %518 = vst.msk [vmem:[%s809_s26 + $0x40] sm:$0xff] %vm509_vm2, %v415_v56  ;;  %v490_v63 = vadd.f32 %v688_v61, %v804_v18  ;;  %v418_v0 = vadd.f32 %v804_v18, %v417_v62  ;;  %v481_v1 = vpop.f32.mrb[11].mxu1 }
  0xfa   : > { %534 = vst.msk [vmem:[%s809_s26 + $0xc0] sm:$0xff] %vm509_vm2, %v479_v59  ;;  %521 = vst.msk [vmem:[%s809_s26 + $0x58] sm:$0xff] %vm509_vm2, %v426_v60  ;;  %v482_v2 = vadd.f32 %v804_v18, %v481_v1 }
  0xfb   : > { %537 = vst.msk [vmem:[%s809_s26 + $0xd8] sm:$0xff] %vm509_vm2, %v490_v63  ;;  %519 = vst.msk [vmem:[%s809_s26 + $0x48] sm:$0xff] %vm509_vm2, %v418_v0 }
  0xfc   : > { %535 = vst.msk [vmem:[%s809_s26 + $0xc8] sm:$0xff] %vm509_vm2, %v482_v2 }
  0xfd   : > { %v675_v3 = vpop.f32.mrb[12].mxu0 }
  0xfe   : > { %v439_v4 = vadd.f32 %v675_v3, %v804_v18  ;;  %v691_v5 = vpop.f32.mrb[12].mxu1  ;;  %v430_v6 = vpop.f32.mrb[13].mxu0 }
  0xff   : > { %v503_v7 = vadd.f32 %v691_v5, %v804_v18  ;;  %v431_v8 = vadd.f32 %v804_v18, %v430_v6  ;;  %v494_v9 = vpop.f32.mrb[13].mxu1  ;;  %v676_v10 = vpop.f32.mrb[14].mxu0 }
 0x100   : > { %524 = vst.msk [vmem:[%s809_s26 + $0x70] sm:$0xff] %vm509_vm2, %v439_v4  ;;  %v495_v11 = vadd.f32 %v804_v18, %v494_v9  ;;  %v442_v12 = vadd.f32 %v676_v10, %v804_v18  ;;  %v692_v13 = vpop.f32.mrb[14].mxu1  ;;  %v433_v14 = vpop.f32.mrb[15].mxu0 }
 0x101   : > { %540 = vst.msk [vmem:[%s809_s26 + $0xf0] sm:$0xff] %vm509_vm2, %v503_v7  ;;  %522 = vst.msk [vmem:[%s809_s26 + $0x60] sm:$0xff] %vm509_vm2, %v431_v8  ;;  %v506_v15 = vadd.f32 %v692_v13, %v804_v18  ;;  %v434_v16 = vadd.f32 %v804_v18, %v433_v14  ;;  %v497_v17 = vpop.f32.mrb[15].mxu1 }
 0x102   : > { %538 = vst.msk [vmem:[%s809_s26 + $0xe0] sm:$0xff] %vm509_vm2, %v495_v11  ;;  %525 = vst.msk [vmem:[%s809_s26 + $0x78] sm:$0xff] %vm509_vm2, %v442_v12  ;;  %v498_v19 = vadd.f32 %v804_v18, %v497_v17 }
 0x103   : > { %541 = vst.msk [vmem:[%s809_s26 + $0xf8] sm:$0xff] %vm509_vm2, %v506_v15  ;;  %523 = vst.msk [vmem:[%s809_s26 + $0x68] sm:$0xff] %vm509_vm2, %v434_v16 }
 0x104   : > { %539 = vst.msk [vmem:[%s809_s26 + $0xe8] sm:$0xff] %vm509_vm2, %v498_v19 }
 0x105 PF: > { %s13_s12 = sadd.s32 1, %s727_s12  }
 0x106   : > { %p10_p4 = scmp.ge.s32.totalorder %s13_s12, 4  }
 0x108   :  { %12 = sbr.rel (!%p10_p4) target bundleno = 1 (0x1), region = 62 }

// kernel: cam_unet_forward.35
= control target key start
LH: loop header
LB: loop body
LE: loop exit
PB: predicated region body
PF: predicated region fallthrough
CT: control target
= control target key end

     0   :  { %s1140_s12 = smov 0   ;;  %s1341_s0 = inlined_call_operand.vmem [shape: bf16[512,144], index: 0, kind: input, shape index: {}]   ;;  %s1342_s1 = inlined_call_operand.vmem [shape: bf16[144,8], index: 1, kind: input, shape index: {}]   ;;  %s1343_s2 = inlined_call_operand.vmem [shape: f32[1,8], index: 2, kind: input, shape index: {}]   ;;  %s1344_s3 = inlined_call_operand.vmem [shape: bf16[512,8], index: 3, kind: output, shape index: {}]  }
   0x1 LB: > { %s892_s13 = sadd.s32 4294967295, %s1117_s12   ;;  %p896_p0 = scmp.ge.s32.totalorder %s1117_s12, 1  ;;  %s1117_s12 = sphi %s1140_s12, %s13_s12  }
   0x2   : > { %p139_p1 = scmp.lt.s32.totalorder %s1117_s12, 3 }
   0x4   : > { %p140_p2 = pnand %p896_p0, %p139_p1 }
   0x5   : > { %v1054_v0 = vld [vmem:[%s1342_s1] sm:$0xff] (!%p140_p2)   ;;  %v1119_v1 = vmov (!%p140_p2), 0   ;;  %s897_s16 = sshll.u32 (!%p140_p2), %s892_s13, 5  ;;  %v1055_v2 = vld [vmem:[%s1342_s1 + $0x8] sm:$0xff] (!%p140_p2)   ;;  %v1056_v3 = vld [vmem:[%s1342_s1 + $0x10] sm:$0xff] (!%p140_p2)   ;;  %vm433_vm0 = vcmask (!%p140_p2), 130048  }
   0x6   : > { %143 = sbr.rel (%p140_p2) target bundleno = 319 (0x13f), region = 32  ;;  %482 = vmatprep.subr.bf16.mxu0 (!%p140_p2), %v1119_v1  ;;  %1027 = vmatprep.subr.bf16.mxu1 (!%p140_p2), %v1119_v1  ;;  %p165_p3 = scmp.lt.s32.totalorder (!%p140_p2), %s897_s16, 63  ;;  %v1057_v4 = vld [vmem:[%s1342_s1 + $0x18] sm:$0xff] (!%p140_p2)   ;;  %v1058_v7 = vld [vmem:[%s1342_s1 + $0x20] sm:$0xff] (!%p140_p2)   ;;  %v1059_v8 = vld [vmem:[%s1342_s1 + $0x28] sm:$0xff] (!%p140_p2)   ;;  %vm803_vm1 = vcmask (!%p140_p2), 60416  }
   0x7   : > { %483 = vmatpush1.bf16.msra.mxu0 (!%p140_p2), %v1054_v0  ;;  %1036 = vmatpush1.bf16.msra.mxu1 (!%p140_p2), %v1054_v0  ;;  %v1060_v9 = vld [vmem:[%s1342_s1 + $0x30] sm:$0xff] (!%p140_p2)   ;;  %v1061_v10 = vld [vmem:[%s1342_s1 + $0x38] sm:$0xff] (!%p140_p2)   ;;  %v1062_v11 = vld [vmem:[%s1342_s1 + $0x40] sm:$0xff] (!%p140_p2)  }
   0x8   : > { %484 = vmatprep.subr.bf16.mxu0 (!%p140_p2), %v1119_v1  ;;  %1028 = vmatprep.subr.bf16.mxu1 (!%p140_p2), %v1119_v1  ;;  %v1234_v42 = vld [vmem:[%s1343_s2] ss:$0 sm:$0xff] (!%p140_p2) }
   0xb   : > { %485 = vmatpush1.bf16.msra.mxu0 (!%p140_p2), %v1055_v2  ;;  %1037 = vmatpush1.bf16.msra.mxu1 (!%p140_p2), %v1055_v2 }
   0xc   : > { %486 = vmatprep.subr.bf16.mxu0 (!%p140_p2), %v1119_v1  ;;  %1029 = vmatprep.subr.bf16.mxu1 (!%p140_p2), %v1119_v1 }
   0xd   : > { %s1346_s16 = smov (!%p165_p3, %s897_s16), 63 }
   0xe   : > { %s994_s21 = sshll.u32 %s1346_s16, 3  ;;  %s901_s13 = sshll.u32 %s1346_s16, 2 }
   0xf   : > { %s1163_s24 = scalar_lea.vmem %s1341_s0, %s994_s21  ;;  %487 = vmatpush1.bf16.msra.mxu0 %v1056_v3  ;;  %1038 = vmatpush1.bf16.msra.mxu1 %v1056_v3  ;;  %s1244_s16 = scalar_lea.vmem %s1344_s3, %s901_s13 }
  0x10   : > { %v1065_v5 = vld [vmem:[%s1163_s24 + $0x4] ss:$8 sps:$4 sm:$0xff]   ;;  %488 = vmatprep.subr.bf16.mxu0 %v1119_v1  ;;  %1030 = vmatprep.subr.bf16.mxu1 %v1119_v1  ;;  %v1063_v12 = vld [vmem:[%s1163_s24] ss:$8 sps:$4 sm:$0xff]   ;;  %v1069_v14 = vld [vmem:[%s1163_s24 + $0x14] ss:$8 sps:$4 sm:$0xff]  }
  0x11   : > { %v1068_v6 = vld [vmem:[%s1163_s24 + $0x84] ss:$8 sps:$4 sm:$0xff]   ;;  %944 = vmatprep.mubr.msk.bf16.mxu0 %vm433_vm0, %v1065_v5  ;;  %v1066_v13 = vld [vmem:[%s1163_s24 + $0x80] ss:$8 sps:$4 sm:$0xff]   ;;  %v1071_v15 = vld [vmem:[%s1163_s24 + $0x94] ss:$8 sps:$4 sm:$0xff]  }
  0x12   : > { %952 = vmatprep.mubr.msk.bf16.mxu1 %vm433_vm0, %v1068_v6  ;;  %v1073_v16 = vld [vmem:[%s1163_s24 + $0x10] ss:$8 sps:$4 sm:$0xff]   ;;  %v1075_v18 = vld [vmem:[%s1163_s24 + $0x24] ss:$8 sps:$4 sm:$0xff]   ;;  %v1079_v20 = vld [vmem:[%s1163_s24 + $0x20] ss:$8 sps:$4 sm:$0xff]  }
  0x13   : > { %489 = vmatpush1.bf16.msra.mxu0 %v1057_v4  ;;  %1039 = vmatpush1.bf16.msra.mxu1 %v1057_v4  ;;  %v1074_v17 = vld [vmem:[%s1163_s24 + $0x90] ss:$8 sps:$4 sm:$0xff]   ;;  %v1077_v19 = vld [vmem:[%s1163_s24 + $0xa4] ss:$8 sps:$4 sm:$0xff]   ;;  %v1080_v21 = vld [vmem:[%s1163_s24 + $0xa0] ss:$8 sps:$4 sm:$0xff]  }
  0x14   : > { %490 = vmatprep.subr.bf16.mxu0 %v1119_v1  ;;  %1031 = vmatprep.subr.bf16.mxu1 %v1119_v1  ;;  %v1081_v22 = vld [vmem:[%s1163_s24 + $0x34] ss:$8 sps:$4 sm:$0xff]   ;;  %v1085_v24 = vld [vmem:[%s1163_s24 + $0x30] ss:$8 sps:$4 sm:$0xff]   ;;  %v1087_v26 = vld [vmem:[%s1163_s24 + $0x44] ss:$8 sps:$4 sm:$0xff]  }
  0x15   : > { %v1083_v23 = vld [vmem:[%s1163_s24 + $0xb4] ss:$8 sps:$4 sm:$0xff]   ;;  %v1086_v25 = vld [vmem:[%s1163_s24 + $0xb0] ss:$8 sps:$4 sm:$0xff]   ;;  %v1089_v27 = vld [vmem:[%s1163_s24 + $0xc4] ss:$8 sps:$4 sm:$0xff]  }
  0x16   : > { %v1091_v28 = vld [vmem:[%s1163_s24 + $0x40] ss:$8 sps:$4 sm:$0xff]   ;;  %v1093_v30 = vld [vmem:[%s1163_s24 + $0x54] ss:$8 sps:$4 sm:$0xff]   ;;  %v1097_v32 = vld [vmem:[%s1163_s24 + $0x50] ss:$8 sps:$4 sm:$0xff]  }
  0x17   : > { %491 = vmatpush1.bf16.msra.mxu0 %v1058_v7  ;;  %1040 = vmatpush1.bf16.msra.mxu1 %v1058_v7  ;;  %v1092_v29 = vld [vmem:[%s1163_s24 + $0xc0] ss:$8 sps:$4 sm:$0xff]   ;;  %v1095_v31 = vld [vmem:[%s1163_s24 + $0xd4] ss:$8 sps:$4 sm:$0xff]   ;;  %v1098_v33 = vld [vmem:[%s1163_s24 + $0xd0] ss:$8 sps:$4 sm:$0xff]  }
  0x18   : > { %492 = vmatprep.subr.bf16.mxu0 %v1119_v1  ;;  %1032 = vmatprep.subr.bf16.mxu1 %v1119_v1  ;;  %v1099_v34 = vld [vmem:[%s1163_s24 + $0x64] ss:$8 sps:$4 sm:$0xff]   ;;  %v1103_v36 = vld [vmem:[%s1163_s24 + $0x60] ss:$8 sps:$4 sm:$0xff]   ;;  %v1105_v38 = vld [vmem:[%s1163_s24 + $0x74] ss:$8 sps:$4 sm:$0xff]  }
  0x19   : > { %v1101_v35 = vld [vmem:[%s1163_s24 + $0xe4] ss:$8 sps:$4 sm:$0xff]   ;;  %v1104_v37 = vld [vmem:[%s1163_s24 + $0xe0] ss:$8 sps:$4 sm:$0xff]   ;;  %v1107_v39 = vld [vmem:[%s1163_s24 + $0xf4] ss:$8 sps:$4 sm:$0xff]  }
  0x1a   : > { %v1109_v40 = vld [vmem:[%s1163_s24 + $0x70] ss:$8 sps:$4 sm:$0xff]  }
  0x1b   : > { %493 = vmatpush1.bf16.msra.mxu0 %v1059_v8  ;;  %1041 = vmatpush1.bf16.msra.mxu1 %v1059_v8  ;;  %v1110_v41 = vld [vmem:[%s1163_s24 + $0xf0] ss:$8 sps:$4 sm:$0xff]  }
  0x1c   : > { %494 = vmatprep.subr.bf16.mxu0 %v1119_v1  ;;  %1033 = vmatprep.subr.bf16.mxu1 %v1119_v1 }
  0x1f   : > { %495 = vmatpush1.bf16.msra.mxu0 %v1060_v9  ;;  %1042 = vmatpush1.bf16.msra.mxu1 %v1060_v9 }
  0x20   : > { %496 = vmatprep.subr.bf16.mxu0 %v1119_v1  ;;  %1034 = vmatprep.subr.bf16.mxu1 %v1119_v1 }
  0x23   : > { %497 = vmatpush1.bf16.msra.mxu0 %v1061_v10  ;;  %1043 = vmatpush1.bf16.msra.mxu1 %v1061_v10 }
  0x24   : > { %498 = vmatprep.subr.bf16.mxu0 %v1119_v1  ;;  %1035 = vmatprep.subr.bf16.mxu1 %v1119_v1 }
  0x27   : > { %499 = vmatpush1.bf16.msra.mxu0 %v1062_v11  ;;  %1044 = vmatpush1.bf16.msra.mxu1 %v1062_v11 }
  0x2a   : > { %515 = vmatmul.mubr.bf16.vlgmr.msra.gmra.mrb[0].mxu0 %v1063_v12  ;;  %579 = vmatmul.mubr.bf16.vlgmr.msra.gmra.mrb[0].mxu1 %v1066_v13 }
  0x2b   : > { %945 = vmatprep.mubr.msk.bf16.mxu0 %vm433_vm0, %v1069_v14  ;;  %953 = vmatprep.mubr.msk.bf16.mxu1 %vm433_vm0, %v1071_v15 }
  0x32   : > { %523 = vmatmul.mubr.bf16.gmra.mrb[4].mxu0 %v1073_v16  ;;  %587 = vmatmul.mubr.bf16.gmra.mrb[4].mxu1 %v1074_v17 }
  0x33   : > { %946 = vmatprep.mubr.msk.bf16.mxu0 %vm433_vm0, %v1075_v18  ;;  %954 = vmatprep.mubr.msk.bf16.mxu1 %vm433_vm0, %v1077_v19 }
  0x3a   : > { %531 = vmatmul.mubr.bf16.gmra.mrb[8].mxu0 %v1079_v20  ;;  %595 = vmatmul.mubr.bf16.gmra.mrb[8].mxu1 %v1080_v21 }
  0x3b   : > { %947 = vmatprep.mubr.msk.bf16.mxu0 %vm433_vm0, %v1081_v22  ;;  %955 = vmatprep.mubr.msk.bf16.mxu1 %vm433_vm0, %v1083_v23 }
  0x42   : > { %539 = vmatmul.mubr.bf16.gmra.mrb[12].mxu0 %v1085_v24  ;;  %603 = vmatmul.mubr.bf16.gmra.mrb[12].mxu1 %v1086_v25 }
  0x43   : > { %948 = vmatprep.mubr.msk.bf16.mxu0 %vm433_vm0, %v1087_v26  ;;  %956 = vmatprep.mubr.msk.bf16.mxu1 %vm433_vm0, %v1089_v27 }
  0x4a   : > { %547 = vmatmul.mubr.bf16.gmra.mrb[16].mxu0 %v1091_v28  ;;  %611 = vmatmul.mubr.bf16.gmra.mrb[16].mxu1 %v1092_v29 }
  0x4b   : > { %949 = vmatprep.mubr.msk.bf16.mxu0 %vm433_vm0, %v1093_v30  ;;  %957 = vmatprep.mubr.msk.bf16.mxu1 %vm433_vm0, %v1095_v31 }
  0x52   : > { %555 = vmatmul.mubr.bf16.gmra.mrb[20].mxu0 %v1097_v32  ;;  %619 = vmatmul.mubr.bf16.gmra.mrb[20].mxu1 %v1098_v33 }
  0x53   : > { %950 = vmatprep.mubr.msk.bf16.mxu0 %vm433_vm0, %v1099_v34  ;;  %958 = vmatprep.mubr.msk.bf16.mxu1 %vm433_vm0, %v1101_v35 }
  0x5a   : > { %563 = vmatmul.mubr.bf16.gmra.mrb[24].mxu0 %v1103_v36  ;;  %627 = vmatmul.mubr.bf16.gmra.mrb[24].mxu1 %v1104_v37 }
  0x5b   : > { %951 = vmatprep.mubr.msk.bf16.mxu0 %vm433_vm0, %v1105_v38  ;;  %959 = vmatprep.mubr.msk.bf16.mxu1 %vm433_vm0, %v1107_v39 }
  0x62   : > { %571 = vmatmul.mubr.bf16.gmra.mrb[28].mxu0 %v1109_v40  ;;  %635 = vmatmul.mubr.bf16.gmra.mrb[28].mxu1 %v1110_v41 }
  0xfd   : > { %v516_v43 = vpop.f32.mrb[0].mxu0  ;;  %v580_v44 = vpop.f32.mrb[0].mxu1 }
  0xfe   : > { %v517_v45 = vadd.f32 %v1234_v42, %v516_v43  ;;  %v581_v46 = vadd.f32 %v1234_v42, %v580_v44  ;;  %v518_v47 = vpop.f32.mrb[1].mxu0  ;;  %v582_v48 = vpop.f32.mrb[1].mxu1 }
  0xff   : > { %v519_v49 = vpop.f32.mrb[2].mxu0  ;;  %v583_v50 = vpop.f32.mrb[2].mxu1 }
 0x100   : > { %v643_v51 = vmax.f32 %v517_v45, 0.0  ;;  %v659_v52 = vmax.f32 %v581_v46, 0.0  ;;  %v520_v53 = vadd.f32 %v1234_v42, %v519_v49  ;;  %v584_v54 = vadd.f32 %v1234_v42, %v583_v50  ;;  %v521_v55 = vpop.f32.mrb[3].mxu0  ;;  %v585_v56 = vpop.f32.mrb[3].mxu1 }
 0x102   : > { %v995_v57 = vpack.c.bf16 %v643_v51, %v643_v51  ;;  %v1011_v58 = vpack.c.bf16 %v659_v52, %v659_v52  ;;  %v644_v59 = vmax.f32 %v520_v53, 0.0  ;;  %v660_v60 = vmax.f32 %v584_v54, 0.0 }
 0x104   : > { %804 = vst.msk [vmem:[%s1244_s16] sm:$0xf] %vm803_vm1, %v995_v57  ;;  %820 = vst.msk [vmem:[%s1244_s16 + $0x40] sm:$0xf] %vm803_vm1, %v1011_v58  ;;  %v996_v61 = vpack.c.bf16 %v644_v59, %v644_v59  ;;  %v1012_v62 = vpack.c.bf16 %v660_v60, %v660_v60 }
 0x105   : > { %v524_v63 = vpop.f32.mrb[4].mxu0  ;;  %v588_v0 = vpop.f32.mrb[4].mxu1 }
 0x106   : > { %805 = vst.msk [vmem:[%s1244_s16 + $0x4] sm:$0xf] %vm803_vm1, %v996_v61  ;;  %821 = vst.msk [vmem:[%s1244_s16 + $0x44] sm:$0xf] %vm803_vm1, %v1012_v62  ;;  %v525_v1 = vadd.f32 %v1234_v42, %v524_v63  ;;  %v589_v2 = vadd.f32 %v1234_v42, %v588_v0  ;;  %v526_v3 = vpop.f32.mrb[5].mxu0  ;;  %v590_v4 = vpop.f32.mrb[5].mxu1 }
 0x107   : > { %v527_v5 = vpop.f32.mrb[6].mxu0  ;;  %v591_v6 = vpop.f32.mrb[6].mxu1 }
 0x108   : > { %v645_v7 = vmax.f32 %v525_v1, 0.0  ;;  %v661_v8 = vmax.f32 %v589_v2, 0.0  ;;  %v528_v9 = vadd.f32 %v1234_v42, %v527_v5  ;;  %v592_v10 = vadd.f32 %v1234_v42, %v591_v6  ;;  %v529_v11 = vpop.f32.mrb[7].mxu0  ;;  %v593_v12 = vpop.f32.mrb[7].mxu1 }
 0x10a   : > { %v997_v13 = vpack.c.bf16 %v645_v7, %v645_v7  ;;  %v1013_v14 = vpack.c.bf16 %v661_v8, %v661_v8  ;;  %v646_v15 = vmax.f32 %v528_v9, 0.0  ;;  %v662_v16 = vmax.f32 %v592_v10, 0.0 }
 0x10c   : > { %806 = vst.msk [vmem:[%s1244_s16 + $0x8] sm:$0xf] %vm803_vm1, %v997_v13  ;;  %822 = vst.msk [vmem:[%s1244_s16 + $0x48] sm:$0xf] %vm803_vm1, %v1013_v14  ;;  %v998_v17 = vpack.c.bf16 %v646_v15, %v646_v15  ;;  %v1014_v18 = vpack.c.bf16 %v662_v16, %v662_v16 }
 0x10d   : > { %v532_v19 = vpop.f32.mrb[8].mxu0  ;;  %v596_v20 = vpop.f32.mrb[8].mxu1 }
 0x10e   : > { %807 = vst.msk [vmem:[%s1244_s16 + $0xc] sm:$0xf] %vm803_vm1, %v998_v17  ;;  %823 = vst.msk [vmem:[%s1244_s16 + $0x4c] sm:$0xf] %vm803_vm1, %v1014_v18  ;;  %v533_v21 = vadd.f32 %v1234_v42, %v532_v19  ;;  %v597_v22 = vadd.f32 %v1234_v42, %v596_v20  ;;  %v534_v23 = vpop.f32.mrb[9].mxu0  ;;  %v598_v24 = vpop.f32.mrb[9].mxu1 }
 0x10f   : > { %v535_v25 = vpop.f32.mrb[10].mxu0  ;;  %v599_v26 = vpop.f32.mrb[10].mxu1 }
 0x110   : > { %v647_v27 = vmax.f32 %v533_v21, 0.0  ;;  %v663_v28 = vmax.f32 %v597_v22, 0.0  ;;  %v536_v29 = vadd.f32 %v1234_v42, %v535_v25  ;;  %v600_v30 = vadd.f32 %v1234_v42, %v599_v26  ;;  %v537_v31 = vpop.f32.mrb[11].mxu0  ;;  %v601_v32 = vpop.f32.mrb[11].mxu1 }
 0x112   : > { %v999_v33 = vpack.c.bf16 %v647_v27, %v647_v27  ;;  %v1015_v34 = vpack.c.bf16 %v663_v28, %v663_v28  ;;  %v648_v35 = vmax.f32 %v536_v29, 0.0  ;;  %v664_v36 = vmax.f32 %v600_v30, 0.0 }
 0x114   : > { %808 = vst.msk [vmem:[%s1244_s16 + $0x10] sm:$0xf] %vm803_vm1, %v999_v33  ;;  %824 = vst.msk [vmem:[%s1244_s16 + $0x50] sm:$0xf] %vm803_vm1, %v1015_v34  ;;  %v1000_v37 = vpack.c.bf16 %v648_v35, %v648_v35  ;;  %v1016_v38 = vpack.c.bf16 %v664_v36, %v664_v36 }
 0x115   : > { %v540_v39 = vpop.f32.mrb[12].mxu0  ;;  %v604_v40 = vpop.f32.mrb[12].mxu1 }
 0x116   : > { %809 = vst.msk [vmem:[%s1244_s16 + $0x14] sm:$0xf] %vm803_vm1, %v1000_v37  ;;  %825 = vst.msk [vmem:[%s1244_s16 + $0x54] sm:$0xf] %vm803_vm1, %v1016_v38  ;;  %v541_v41 = vadd.f32 %v1234_v42, %v540_v39  ;;  %v605_v43 = vadd.f32 %v1234_v42, %v604_v40  ;;  %v542_v44 = vpop.f32.mrb[13].mxu0  ;;  %v606_v45 = vpop.f32.mrb[13].mxu1 }
 0x117   : > { %v543_v46 = vpop.f32.mrb[14].mxu0  ;;  %v607_v47 = vpop.f32.mrb[14].mxu1 }
 0x118   : > { %v649_v48 = vmax.f32 %v541_v41, 0.0  ;;  %v665_v49 = vmax.f32 %v605_v43, 0.0  ;;  %v544_v50 = vadd.f32 %v1234_v42, %v543_v46  ;;  %v608_v51 = vadd.f32 %v1234_v42, %v607_v47  ;;  %v545_v52 = vpop.f32.mrb[15].mxu0  ;;  %v609_v53 = vpop.f32.mrb[15].mxu1 }
 0x11a   : > { %v1001_v54 = vpack.c.bf16 %v649_v48, %v649_v48  ;;  %v1017_v55 = vpack.c.bf16 %v665_v49, %v665_v49  ;;  %v650_v56 = vmax.f32 %v544_v50, 0.0  ;;  %v666_v57 = vmax.f32 %v608_v51, 0.0 }
 0x11c   : > { %810 = vst.msk [vmem:[%s1244_s16 + $0x18] sm:$0xf] %vm803_vm1, %v1001_v54  ;;  %826 = vst.msk [vmem:[%s1244_s16 + $0x58] sm:$0xf] %vm803_vm1, %v1017_v55  ;;  %v1002_v58 = vpack.c.bf16 %v650_v56, %v650_v56  ;;  %v1018_v59 = vpack.c.bf16 %v666_v57, %v666_v57 }
 0x11d   : > { %v548_v60 = vpop.f32.mrb[16].mxu0  ;;  %v612_v61 = vpop.f32.mrb[16].mxu1 }
 0x11e   : > { %811 = vst.msk [vmem:[%s1244_s16 + $0x1c] sm:$0xf] %vm803_vm1, %v1002_v58  ;;  %827 = vst.msk [vmem:[%s1244_s16 + $0x5c] sm:$0xf] %vm803_vm1, %v1018_v59  ;;  %v549_v62 = vadd.f32 %v1234_v42, %v548_v60  ;;  %v613_v63 = vadd.f32 %v1234_v42, %v612_v61  ;;  %v550_v0 = vpop.f32.mrb[17].mxu0  ;;  %v614_v1 = vpop.f32.mrb[17].mxu1 }
 0x11f   : > { %v551_v2 = vpop.f32.mrb[18].mxu0  ;;  %v615_v3 = vpop.f32.mrb[18].mxu1 }
 0x120   : > { %v651_v4 = vmax.f32 %v549_v62, 0.0  ;;  %v667_v5 = vmax.f32 %v613_v63, 0.0  ;;  %v552_v6 = vadd.f32 %v1234_v42, %v551_v2  ;;  %v616_v7 = vadd.f32 %v1234_v42, %v615_v3  ;;  %v553_v8 = vpop.f32.mrb[19].mxu0  ;;  %v617_v9 = vpop.f32.mrb[19].mxu1 }
 0x122   : > { %v1003_v10 = vpack.c.bf16 %v651_v4, %v651_v4  ;;  %v1019_v11 = vpack.c.bf16 %v667_v5, %v667_v5  ;;  %v652_v12 = vmax.f32 %v552_v6, 0.0  ;;  %v668_v13 = vmax.f32 %v616_v7, 0.0 }
 0x124   : > { %812 = vst.msk [vmem:[%s1244_s16 + $0x20] sm:$0xf] %vm803_vm1, %v1003_v10  ;;  %828 = vst.msk [vmem:[%s1244_s16 + $0x60] sm:$0xf] %vm803_vm1, %v1019_v11  ;;  %v1004_v14 = vpack.c.bf16 %v652_v12, %v652_v12  ;;  %v1020_v15 = vpack.c.bf16 %v668_v13, %v668_v13 }
 0x125   : > { %v556_v16 = vpop.f32.mrb[20].mxu0  ;;  %v620_v17 = vpop.f32.mrb[20].mxu1 }
 0x126   : > { %813 = vst.msk [vmem:[%s1244_s16 + $0x24] sm:$0xf] %vm803_vm1, %v1004_v14  ;;  %829 = vst.msk [vmem:[%s1244_s16 + $0x64] sm:$0xf] %vm803_vm1, %v1020_v15  ;;  %v557_v18 = vadd.f32 %v1234_v42, %v556_v16  ;;  %v621_v19 = vadd.f32 %v1234_v42, %v620_v17  ;;  %v558_v20 = vpop.f32.mrb[21].mxu0  ;;  %v622_v21 = vpop.f32.mrb[21].mxu1 }
 0x127   : > { %v559_v22 = vpop.f32.mrb[22].mxu0  ;;  %v623_v23 = vpop.f32.mrb[22].mxu1 }
 0x128   : > { %v653_v24 = vmax.f32 %v557_v18, 0.0  ;;  %v669_v25 = vmax.f32 %v621_v19, 0.0  ;;  %v560_v26 = vadd.f32 %v1234_v42, %v559_v22  ;;  %v624_v27 = vadd.f32 %v1234_v42, %v623_v23  ;;  %v561_v28 = vpop.f32.mrb[23].mxu0  ;;  %v625_v29 = vpop.f32.mrb[23].mxu1 }
 0x12a   : > { %v1005_v30 = vpack.c.bf16 %v653_v24, %v653_v24  ;;  %v1021_v31 = vpack.c.bf16 %v669_v25, %v669_v25  ;;  %v654_v32 = vmax.f32 %v560_v26, 0.0  ;;  %v670_v33 = vmax.f32 %v624_v27, 0.0 }
 0x12c   : > { %814 = vst.msk [vmem:[%s1244_s16 + $0x28] sm:$0xf] %vm803_vm1, %v1005_v30  ;;  %830 = vst.msk [vmem:[%s1244_s16 + $0x68] sm:$0xf] %vm803_vm1, %v1021_v31  ;;  %v1006_v34 = vpack.c.bf16 %v654_v32, %v654_v32  ;;  %v1022_v35 = vpack.c.bf16 %v670_v33, %v670_v33 }
 0x12d   : > { %v564_v36 = vpop.f32.mrb[24].mxu0  ;;  %v628_v37 = vpop.f32.mrb[24].mxu1 }
 0x12e   : > { %815 = vst.msk [vmem:[%s1244_s16 + $0x2c] sm:$0xf] %vm803_vm1, %v1006_v34  ;;  %831 = vst.msk [vmem:[%s1244_s16 + $0x6c] sm:$0xf] %vm803_vm1, %v1022_v35  ;;  %v565_v38 = vadd.f32 %v1234_v42, %v564_v36  ;;  %v629_v39 = vadd.f32 %v1234_v42, %v628_v37  ;;  %v566_v40 = vpop.f32.mrb[25].mxu0  ;;  %v630_v41 = vpop.f32.mrb[25].mxu1 }
 0x12f   : > { %v567_v43 = vpop.f32.mrb[26].mxu0  ;;  %v631_v44 = vpop.f32.mrb[26].mxu1 }
 0x130   : > { %v655_v45 = vmax.f32 %v565_v38, 0.0  ;;  %v671_v46 = vmax.f32 %v629_v39, 0.0  ;;  %v568_v47 = vadd.f32 %v1234_v42, %v567_v43  ;;  %v632_v48 = vadd.f32 %v1234_v42, %v631_v44  ;;  %v569_v49 = vpop.f32.mrb[27].mxu0  ;;  %v633_v50 = vpop.f32.mrb[27].mxu1 }
 0x132   : > { %v1007_v51 = vpack.c.bf16 %v655_v45, %v655_v45  ;;  %v1023_v52 = vpack.c.bf16 %v671_v46, %v671_v46  ;;  %v656_v53 = vmax.f32 %v568_v47, 0.0  ;;  %v672_v54 = vmax.f32 %v632_v48, 0.0 }
 0x134   : > { %816 = vst.msk [vmem:[%s1244_s16 + $0x30] sm:$0xf] %vm803_vm1, %v1007_v51  ;;  %832 = vst.msk [vmem:[%s1244_s16 + $0x70] sm:$0xf] %vm803_vm1, %v1023_v52  ;;  %v1008_v55 = vpack.c.bf16 %v656_v53, %v656_v53  ;;  %v1024_v56 = vpack.c.bf16 %v672_v54, %v672_v54 }
 0x135   : > { %v572_v57 = vpop.f32.mrb[28].mxu0  ;;  %v636_v58 = vpop.f32.mrb[28].mxu1 }
 0x136   : > { %817 = vst.msk [vmem:[%s1244_s16 + $0x34] sm:$0xf] %vm803_vm1, %v1008_v55  ;;  %833 = vst.msk [vmem:[%s1244_s16 + $0x74] sm:$0xf] %vm803_vm1, %v1024_v56  ;;  %v573_v59 = vadd.f32 %v1234_v42, %v572_v57  ;;  %v637_v60 = vadd.f32 %v1234_v42, %v636_v58  ;;  %v574_v61 = vpop.f32.mrb[29].mxu0  ;;  %v638_v62 = vpop.f32.mrb[29].mxu1 }
 0x137   : > { %v575_v63 = vpop.f32.mrb[30].mxu0  ;;  %v639_v0 = vpop.f32.mrb[30].mxu1 }
 0x138   : > { %v657_v1 = vmax.f32 %v573_v59, 0.0  ;;  %v673_v2 = vmax.f32 %v637_v60, 0.0  ;;  %v576_v3 = vadd.f32 %v1234_v42, %v575_v63  ;;  %v640_v4 = vadd.f32 %v1234_v42, %v639_v0  ;;  %v577_v5 = vpop.f32.mrb[31].mxu0  ;;  %v641_v6 = vpop.f32.mrb[31].mxu1 }
 0x13a   : > { %v1009_v7 = vpack.c.bf16 %v657_v1, %v657_v1  ;;  %v1025_v8 = vpack.c.bf16 %v673_v2, %v673_v2  ;;  %v658_v9 = vmax.f32 %v576_v3, 0.0  ;;  %v674_v10 = vmax.f32 %v640_v4, 0.0 }
 0x13c   : > { %818 = vst.msk [vmem:[%s1244_s16 + $0x38] sm:$0xf] %vm803_vm1, %v1009_v7  ;;  %834 = vst.msk [vmem:[%s1244_s16 + $0x78] sm:$0xf] %vm803_vm1, %v1025_v8  ;;  %v1010_v11 = vpack.c.bf16 %v658_v9, %v658_v9  ;;  %v1026_v12 = vpack.c.bf16 %v674_v10, %v674_v10 }
 0x13e   : > { %819 = vst.msk [vmem:[%s1244_s16 + $0x3c] sm:$0xf] %vm803_vm1, %v1010_v11  ;;  %835 = vst.msk [vmem:[%s1244_s16 + $0x7c] sm:$0xf] %vm803_vm1, %v1026_v12 }
 0x13f PF: > { %s13_s12 = sadd.s32 1, %s1117_s12  }
 0x140   : > { %p10_p4 = scmp.ge.s32.totalorder %s13_s12, 4  }
 0x142   :  { %12 = sbr.rel (!%p10_p4) target bundleno = 1 (0x1), region = 62 }

</bundles_post_ra>
